<compile_context>
chip_gen: v5e
topology: v5e:2x2
jax: 0.10.0
libtpu: 0.0.40
codegen_flags: <defaults>
</compile_context>

<pallas_src>
import functools

import jax
import jax.numpy as jnp
from jax import lax
from jax.experimental import pallas as pl
from jax.experimental.pallas import tpu as pltpu

# dot_general dimension numbers (2-D): TN = transposed lhs, NT = transposed rhs.
_TN = (((0,), (0,)), ((), ()))
_NT = (((1,), (1,)), ((), ()))


# ----------------------------- helpers --------------------------------------
def _make_divisible(ch, divisor=8, min_ch=None):
    if min_ch is None:
        min_ch = divisor
    new_ch = max(min_ch, int(ch + divisor / 2) // divisor * divisor)
    if new_ch < 0.9 * ch:
        new_ch += divisor
    return new_ch


def _hardswish(x):
    # PyTorch nn.Hardswish: x * relu6(x + 3) / 6
    return x * jnp.clip(x + 3.0, 0.0, 6.0) * (1.0 / 6.0)


def _hardsigmoid(x):
    # PyTorch F.hardsigmoid: relu6(x + 3) / 6
    return jnp.clip(x + 3.0, 0.0, 6.0) * (1.0 / 6.0)


# ----------------------------- fused kernel ---------------------------------
def _bneck_kernel(x_ref, w_exp_ref, b1_ref, w_dw_ref, b2_ref,
                  w_fc1_ref, b_fc1_ref, w_fc2_ref, b_fc2_ref,
                  w_projT_ref, b3_ref,
                  o_ref,
                  yp_ref, z_ref,
                  *, P, H, W, K, wpad, use_se, use_res_connect):
    """P images per grid step; everything stays in VMEM.

    x_ref    : (P, Cin, HW)        channels-first, HW on the lane axis
    w_exp    : (P*Cin, P*Cexp)     bf16, block-diagonal, BN scale folded
    b1       : (1, P*Cexp)         f32
    w_dw     : (K, K, P*Cexp)      f32, lane-tiled, BN scale folded
    b2       : (1, 1, P*Cexp)      f32
    w_fc1    : (P*Cexp, P*Csq)     f32, block-diagonal;  b_fc1 : (1, P*Csq)
    w_fc2    : (P*Csq, P*Cexp)     f32, block-diagonal;  b_fc2 : (1, P*Cexp)
    w_projT  : (P*Cout, P*Cexp)    f32, block-diagonal, BN scale folded
    b3       : (P*Cout, 1)         f32
    o_ref    : (P, Cout, HW)       channels-first, lane-dense
    yp_ref   : VMEM f32 (H+2*pad, W+2*wpad, P*Cexp)   halo scratch
    z_ref    : VMEM bf16 (HW, P*Cexp)                 depthwise output staging
    """
    pad = (K - 1) // 2
    PC = w_exp_ref.shape[1]                      # P * Cexp (lane-packed channels)
    Cin = x_ref.shape[1]
    Cout = o_ref.shape[1]
    HW = H * W
    Wp = W + 2 * wpad
    woff = wpad - pad
    HS = 8 if H % 8 == 0 else H                  # strip height (one sublane group)

    x_both = x_ref[...].reshape(P * Cin, HW)     # free reshape, channels-first
    x_bf = x_both.astype(jnp.bfloat16)
    w_exp = w_exp_ref[...]                       # bf16
    b1 = b1_ref[...]

    # --- 1x1 expand conv (MXU, bf16) + BN bias + hardswish, strip-mined ------
    # Result strips land directly in the halo scratch interior (8-aligned store).
    for h0 in range(0, H, HS):
        xs = x_bf[:, h0 * W:(h0 + HS) * W]                         # lane-aligned slice
        ys = lax.dot_general(xs, w_exp, _TN,
                             preferred_element_type=jnp.float32)   # (HS*W, PC) f32
        ys = _hardswish(ys + b1)
        yp_ref[pad + h0:pad + h0 + HS, wpad:wpad + W, :] = ys.reshape(HS, W, PC)

    # --- zero only the halo strips (aligned stores; no program_id gating) ----
    if pad > 0:
        yp_ref[0:pad, :, :] = jnp.zeros((pad, Wp, PC), jnp.float32)
        yp_ref[pad + H:pad + H + pad, :, :] = jnp.zeros((pad, Wp, PC), jnp.float32)
        yp_ref[pad:pad + H, 0:wpad, :] = jnp.zeros((H, wpad, PC), jnp.float32)
        yp_ref[pad:pad + H, wpad + W:Wp, :] = jnp.zeros((H, wpad, PC), jnp.float32)

    # --- depthwise KxK conv (VPU, f32) + BN bias + hardswish, strip-mined ----
    b2 = b2_ref[...]
    pooled = jnp.zeros((1, PC), jnp.float32)
    for h0 in range(0, H, HS):
        acc = None
        for dy in range(K):
            for dx in range(K):
                tap = (yp_ref[h0 + dy:h0 + dy + HS,
                              woff + dx:woff + dx + W, :]
                       * w_dw_ref[dy, dx, :])
                acc = tap if acc is None else acc + tap
        zs = _hardswish(acc + b2).reshape(HS * W, PC)              # (HS*W, PC) f32
        if use_se:
            pooled = pooled + jnp.sum(zs, axis=0, keepdims=True)   # f32 mean path
        z_ref[h0 * W:(h0 + HS) * W, :] = zs.astype(jnp.bfloat16)

    # --- SqueezeExcitation: fold the per-(image,channel) scale into w_projT --
    w_proj = w_projT_ref[...]                                      # (P*Cout, PC) f32
    if use_se:
        s = jnp.dot(pooled * (1.0 / HW), w_fc1_ref[...],
                    preferred_element_type=jnp.float32) + b_fc1_ref[...]
        s = jnp.maximum(s, 0.0)                                    # ReLU
        s = jnp.dot(s, w_fc2_ref[...],
                    preferred_element_type=jnp.float32) + b_fc2_ref[...]
        w_proj = w_proj * _hardsigmoid(s)                          # scale Cexp columns

    # --- 1x1 project conv (MXU, bf16) + BN bias + residual, channels-first ---
    out = lax.dot_general(w_proj.astype(jnp.bfloat16), z_ref[...], _NT,
                          preferred_element_type=jnp.float32)      # (P*Cout, HW)
    out = out + b3_ref[...]
    if use_res_connect:
        out = out + x_both                                         # Cin == Cout here
    o_ref[...] = out.reshape(P, Cout, HW)


# ----------------------------- wrapper --------------------------------------
def inverted_residual_forward(x_nchw, p, *, kernel_size, stride, use_se,
                              use_res_connect):
    assert stride == 1, "TODO(synk): stride-2 downsampling bneck not implemented"
    N, Cin, H, W = x_nchw.shape
    Cexp = p["w_exp"].shape[1]
    Cout = p["w_proj"].shape[1]
    Csq = p["w_fc1"].shape[1]
    K = kernel_size
    pad = (K - 1) // 2
    wpad = 8                       # 8-sublane-aligned halo on the W axis
    assert pad <= wpad and H % 8 == 0 and (H * W) % 128 == 0
    HW = H * W

    # Lane packing: P images per grid step so P*Cexp fills the 128 lanes.
    P = 2 if N % 2 == 0 else 1
    G = N // P
    f32 = jnp.float32

    # Fold BN scales into the conv weights (exact, one-time weight transform).
    w_exp_f = (p["w_exp"] * p["s1"][None, :]).astype(f32)          # (Cin, Cexp)
    w_dw_f = (p["w_dw"] * p["s2"][None, None, :]).astype(f32)      # (K, K, Cexp)
    w_projT_f = (jnp.transpose(p["w_proj"]) * p["s3"][:, None]).astype(f32)  # (Cout, Cexp)

    def blockdiag(w):
        A, B = w.shape
        out = jnp.zeros((P * A, P * B), f32)
        for i in range(P):
            out = out.at[i * A:(i + 1) * A, i * B:(i + 1) * B].set(w.astype(f32))
        return out

    tile1 = lambda v: jnp.tile(v.astype(f32), (P,))

    w_exp_big = blockdiag(w_exp_f).astype(jnp.bfloat16)            # MXU operand
    b1_big = tile1(p["b1"]).reshape(1, P * Cexp)
    w_dw_big = jnp.tile(w_dw_f, (1, 1, P))                         # (K, K, P*Cexp) f32
    b2_big = tile1(p["b2"]).reshape(1, 1, P * Cexp)
    w_fc1_big = blockdiag(p["w_fc1"])
    b_fc1_big = tile1(p["b_fc1"]).reshape(1, P * Csq)
    w_fc2_big = blockdiag(p["w_fc2"])
    b_fc2_big = tile1(p["b_fc2"]).reshape(1, P * Cexp)
    w_projT_big = blockdiag(w_projT_f)                             # f32 (SE fold in-kernel)
    b3_big = tile1(p["b3"]).reshape(P * Cout, 1)

    # Channels-first, lane-dense view of the NCHW input: pure reshape, no transpose.
    x_cf = x_nchw.reshape(N, Cin, HW).astype(f32)

    kernel = functools.partial(_bneck_kernel, P=P, H=H, W=W, K=K, wpad=wpad,
                               use_se=use_se, use_res_connect=use_res_connect)

    rep2 = lambda n: (0, 0)
    rep3 = lambda n: (0, 0, 0)

    out_cf = pl.pallas_call(
        kernel,
        out_shape=jax.ShapeDtypeStruct((N, Cout, HW), jnp.float32),
        grid=(G,),
        in_specs=[
            pl.BlockSpec((P, Cin, HW), lambda n: (n, 0, 0)),
            pl.BlockSpec(w_exp_big.shape, rep2),
            pl.BlockSpec(b1_big.shape, rep2),
            pl.BlockSpec(w_dw_big.shape, rep3),
            pl.BlockSpec(b2_big.shape, rep3),
            pl.BlockSpec(w_fc1_big.shape, rep2),
            pl.BlockSpec(b_fc1_big.shape, rep2),
            pl.BlockSpec(w_fc2_big.shape, rep2),
            pl.BlockSpec(b_fc2_big.shape, rep2),
            pl.BlockSpec(w_projT_big.shape, rep2),
            pl.BlockSpec(b3_big.shape, rep2),
        ],
        out_specs=pl.BlockSpec((P, Cout, HW), lambda n: (n, 0, 0)),
        scratch_shapes=[
            pltpu.VMEM((H + 2 * pad, W + 2 * wpad, P * Cexp), jnp.float32),
            pltpu.VMEM((HW, P * Cexp), jnp.bfloat16),
        ],
        compiler_params=pltpu.CompilerParams(
            dimension_semantics=("parallel",),
            vmem_limit_bytes=8 * 1024 * 1024),
    )(x_cf, w_exp_big, b1_big, w_dw_big, b2_big,
      w_fc1_big, b_fc1_big, w_fc2_big, b_fc2_big,
      w_projT_big, b3_big)

    # (N, Cout, HW) is already NCHW order; just restore H, W.
    return out_cf.reshape(N, Cout, H, W)


# ----------------------------- reference (pure JAX) --------------------------
def reference_forward(x_nchw, p, *, kernel_size, use_se, use_res_connect):
    N, Cin, H, W = x_nchw.shape
    Cexp = p["w_exp"].shape[1]
    Cout = p["w_proj"].shape[1]
    K = kernel_size
    pad = (K - 1) // 2
    x = jnp.transpose(x_nchw, (0, 2, 3, 1)).astype(jnp.float32)

    y = x.reshape(-1, Cin) @ p["w_exp"]
    y = _hardswish(y * p["s1"] + p["b1"]).reshape(N, H, W, Cexp)

    yp = jnp.pad(y, ((0, 0), (pad, pad), (pad, pad), (0, 0)))
    acc = jnp.zeros((N, H, W, Cexp), jnp.float32)
    for dy in range(K):
        for dx in range(K):
            acc = acc + yp[:, dy:dy + H, dx:dx + W, :] * p["w_dw"][dy, dx]
    y = _hardswish(acc * p["s2"] + p["b2"])

    if use_se:
        pooled = y.mean(axis=(1, 2))                                  # (N, Cexp)
        s = jnp.maximum(pooled @ p["w_fc1"] + p["b_fc1"], 0.0)
        s = _hardsigmoid(s @ p["w_fc2"] + p["b_fc2"])
        y = y * s[:, None, None, :]

    out = y.reshape(-1, Cexp) @ p["w_proj"]
    out = (out * p["s3"] + p["b3"]).reshape(N, H, W, Cout)
    if use_res_connect:
        out = out + x
    return jnp.transpose(out, (0, 3, 1, 2))


# ----------------------------- params ----------------------------------------
def init_params(key, Cin, Cexp, Cout, Csq, K):
    eps = 1e-5
    ks = jax.random.split(key, 20)

    def rnd(k, shape, scale=0.1):
        return scale * jax.random.normal(k, shape, jnp.float32)

    def bn(kg, kb, km, kv, C):
        gamma = 1.0 + 0.1 * jax.random.normal(kg, (C,), jnp.float32)
        beta = 0.1 * jax.random.normal(kb, (C,), jnp.float32)
        mean = 0.1 * jax.random.normal(km, (C,), jnp.float32)
        var = 1.0 + 0.1 * jnp.abs(jax.random.normal(kv, (C,), jnp.float32))
        scale = gamma / jnp.sqrt(var + eps)
        bias = beta - mean * scale
        return scale, bias

    s1, b1 = bn(ks[1], ks[2], ks[3], ks[4], Cexp)
    s2, b2 = bn(ks[6], ks[7], ks[8], ks[9], Cexp)
    s3, b3 = bn(ks[15], ks[16], ks[17], ks[18], Cout)
    return {
        "w_exp": rnd(ks[0], (Cin, Cexp)),
        "s1": s1, "b1": b1,
        "w_dw": rnd(ks[5], (K, K, Cexp)),
        "s2": s2, "b2": b2,
        "w_fc1": rnd(ks[10], (Cexp, Csq)),
        "b_fc1": rnd(ks[11], (Csq,)),
        "w_fc2": rnd(ks[12], (Csq, Cexp)),
        "b_fc2": rnd(ks[13], (Cexp,)),
        "w_proj": rnd(ks[14], (Cexp, Cout)),
        "s3": s3, "b3": b3,
    }


# ----------------------------- main -------------------------------------------
if __name__ == "__main__":
    # InvertedResidualConfig(input_c=16, kernel=3, expanded_c=64, out_c=16,
    #                        use_se=True, activation='HS', stride=1, width_multi=1.0)
    width_multi = 1.0
    Cin = _make_divisible(16 * width_multi)      # 16
    Cexp = _make_divisible(64 * width_multi)     # 64
    Cout = _make_divisible(16 * width_multi)     # 16
    Csq = _make_divisible(Cexp // 4)             # 16
    K, stride, use_se = 3, 1, True
    use_res_connect = (stride == 1 and Cin == Cout)

    N, H, W = 4, 16, 16                          # N even: 2 images/step, 2 grid steps
    key = jax.random.PRNGKey(0)
    kp, kx = jax.random.split(key)
    params = init_params(kp, Cin, Cexp, Cout, Csq, K)
    x = jax.random.normal(kx, (N, Cin, H, W), jnp.float32)  # NCHW like PyTorch

    out = inverted_residual_forward(
        x, params, kernel_size=K, stride=stride, use_se=use_se,
        use_res_connect=use_res_connect)
    out = jax.block_until_ready(out)

    ref = reference_forward(
        x, params, kernel_size=K, use_se=use_se,
        use_res_connect=use_res_connect)
    assert out.shape == (N, Cout, H, W)
    assert jnp.allclose(out, ref, atol=2e-2, rtol=2e-2), (
        float(jnp.max(jnp.abs(out - ref))))
    print("KERNEL_OK")
</pallas_src>

<mosaic_0001>
module attributes {stable_mosaic.version = 11 : i64} {
  func.func @_bneck_kernel(%arg0: i32, %arg1: memref<2x16x256xf32, #tpu.memory_space<vmem>>, %arg2: memref<32x128xbf16, #tpu.memory_space<vmem>>, %arg3: memref<1x128xf32, #tpu.memory_space<vmem>>, %arg4: memref<3x3x128xf32, #tpu.memory_space<vmem>>, %arg5: memref<1x1x128xf32, #tpu.memory_space<vmem>>, %arg6: memref<128x32xf32, #tpu.memory_space<vmem>>, %arg7: memref<1x32xf32, #tpu.memory_space<vmem>>, %arg8: memref<32x128xf32, #tpu.memory_space<vmem>>, %arg9: memref<1x128xf32, #tpu.memory_space<vmem>>, %arg10: memref<32x128xf32, #tpu.memory_space<vmem>>, %arg11: memref<32x1xf32, #tpu.memory_space<vmem>>, %arg12: memref<2x16x256xf32, #tpu.memory_space<vmem>>, %arg13: memref<18x32x128xf32, #tpu.memory_space<vmem>>, %arg14: memref<256x128xbf16, #tpu.memory_space<vmem>>) attributes {dimension_semantics = [#tpu.dimension_semantics<parallel>], iteration_bounds = array<i64: 2>, scalar_prefetch = 0 : i64, scratch_operands = 2 : i64, tpu.core_type = #tpu.core_type<tc>, window_params = [{transform_indices = @transform_0, window_bounds = array<i64: 2, 16, 256>}, {pipeline_mode = #tpu.pipeline_mode<synchronous>, transform_indices = @transform_1, window_bounds = array<i64: 32, 128>}, {pipeline_mode = #tpu.pipeline_mode<synchronous>, transform_indices = @transform_2, window_bounds = array<i64: 1, 128>}, {pipeline_mode = #tpu.pipeline_mode<synchronous>, transform_indices = @transform_3, window_bounds = array<i64: 3, 3, 128>}, {pipeline_mode = #tpu.pipeline_mode<synchronous>, transform_indices = @transform_4, window_bounds = array<i64: 1, 1, 128>}, {pipeline_mode = #tpu.pipeline_mode<synchronous>, transform_indices = @transform_5, window_bounds = array<i64: 128, 32>}, {pipeline_mode = #tpu.pipeline_mode<synchronous>, transform_indices = @transform_6, window_bounds = array<i64: 1, 32>}, {pipeline_mode = #tpu.pipeline_mode<synchronous>, transform_indices = @transform_7, window_bounds = array<i64: 32, 128>}, {pipeline_mode = #tpu.pipeline_mode<synchronous>, transform_indices = @transform_8, window_bounds = array<i64: 1, 128>}, {pipeline_mode = #tpu.pipeline_mode<synchronous>, transform_indices = @transform_9, window_bounds = array<i64: 32, 128>}, {pipeline_mode = #tpu.pipeline_mode<synchronous>, transform_indices = @transform_10, window_bounds = array<i64: 32, 1>}, {transform_indices = @transform_11, window_bounds = array<i64: 2, 16, 256>}]} {
    %c0 = arith.constant 0 : index
    %c0_0 = arith.constant 0 : index
    %c0_1 = arith.constant 0 : index
    %0 = vector.load %arg1[%c0, %c0_0, %c0_1] : memref<2x16x256xf32, #tpu.memory_space<vmem>>, vector<2x16x256xf32>
    %1 = vector.shape_cast %0 : vector<2x16x256xf32> to vector<32x256xf32>
    %2 = arith.truncf %1 : vector<32x256xf32> to vector<32x256xbf16>
    %c0_2 = arith.constant 0 : index
    %c0_3 = arith.constant 0 : index
    %3 = vector.load %arg2[%c0_2, %c0_3] : memref<32x128xbf16, #tpu.memory_space<vmem>>, vector<32x128xbf16>
    %c0_4 = arith.constant 0 : index
    %c0_5 = arith.constant 0 : index
    %4 = vector.load %arg3[%c0_4, %c0_5] : memref<1x128xf32, #tpu.memory_space<vmem>>, vector<1x128xf32>
    %5 = vector.extract_strided_slice %2 {offsets = [0, 0], sizes = [32, 128], strides = [1, 1]} : vector<32x256xbf16> to vector<32x128xbf16>
    %cst = arith.constant dense<0.000000e+00> : vector<128x128xf32>
    %6 = tpu.matmul %5, %3, %cst {dimension_numbers = #tpu.dot_dimension_numbers<[0], [0], [1], [1], [0, 1, 1, 1], [], []>} : vector<32x128xbf16>, vector<32x128xbf16>, vector<128x128xf32> -> vector<128x128xf32>
    %7 = vector.broadcast %4 : vector<1x128xf32> to vector<128x128xf32>
    %8 = arith.addf %6, %7 : vector<128x128xf32>
    %cst_6 = arith.constant 3.000000e+00 : f32
    %9 = vector.broadcast %cst_6 : f32 to vector<128x128xf32>
    %10 = arith.addf %8, %9 : vector<128x128xf32>
    %cst_7 = arith.constant 0.000000e+00 : f32
    %cst_8 = arith.constant 6.000000e+00 : f32
    %11 = vector.broadcast %cst_7 : f32 to vector<128x128xf32>
    %12 = arith.maximumf %11, %10 : vector<128x128xf32>
    %13 = vector.broadcast %cst_8 : f32 to vector<128x128xf32>
    %14 = arith.minimumf %13, %12 : vector<128x128xf32>
    %15 = arith.mulf %8, %14 : vector<128x128xf32>
    %cst_9 = arith.constant 0.166666672 : f32
    %16 = vector.broadcast %cst_9 : f32 to vector<128x128xf32>
    %17 = arith.mulf %15, %16 : vector<128x128xf32>
    %18 = vector.shape_cast %17 : vector<128x128xf32> to vector<8x16x128xf32>
    %c1 = arith.constant 1 : index
    %c8 = arith.constant 8 : index
    %c0_10 = arith.constant 0 : index
    %19 = vector.load %arg13[%c1, %c8, %c0_10] : memref<18x32x128xf32, #tpu.memory_space<vmem>>, vector<8x16x128xf32>
    tpu.vector_store %arg13[%c1, %c8, %c0_10], %18 {strides = array<i32>} : memref<18x32x128xf32, #tpu.memory_space<vmem>>, vector<8x16x128xf32>,
    %20 = vector.extract_strided_slice %2 {offsets = [0, 128], sizes = [32, 128], strides = [1, 1]} : vector<32x256xbf16> to vector<32x128xbf16>
    %cst_11 = arith.constant dense<0.000000e+00> : vector<128x128xf32>
    %21 = tpu.matmul %20, %3, %cst_11 {dimension_numbers = #tpu.dot_dimension_numbers<[0], [0], [1], [1], [0, 1, 1, 1], [], []>} : vector<32x128xbf16>, vector<32x128xbf16>, vector<128x128xf32> -> vector<128x128xf32>
    %22 = vector.broadcast %4 : vector<1x128xf32> to vector<128x128xf32>
    %23 = arith.addf %21, %22 : vector<128x128xf32>
    %cst_12 = arith.constant 3.000000e+00 : f32
    %24 = vector.broadcast %cst_12 : f32 to vector<128x128xf32>
    %25 = arith.addf %23, %24 : vector<128x128xf32>
    %cst_13 = arith.constant 0.000000e+00 : f32
    %cst_14 = arith.constant 6.000000e+00 : f32
    %26 = vector.broadcast %cst_13 : f32 to vector<128x128xf32>
    %27 = arith.maximumf %26, %25 : vector<128x128xf32>
    %28 = vector.broadcast %cst_14 : f32 to vector<128x128xf32>
    %29 = arith.minimumf %28, %27 : vector<128x128xf32>
    %30 = arith.mulf %23, %29 : vector<128x128xf32>
    %cst_15 = arith.constant 0.166666672 : f32
    %31 = vector.broadcast %cst_15 : f32 to vector<128x128xf32>
    %32 = arith.mulf %30, %31 : vector<128x128xf32>
    %33 = vector.shape_cast %32 : vector<128x128xf32> to vector<8x16x128xf32>
    %c9 = arith.constant 9 : index
    %c8_16 = arith.constant 8 : index
    %c0_17 = arith.constant 0 : index
    %34 = vector.load %arg13[%c9, %c8_16, %c0_17] : memref<18x32x128xf32, #tpu.memory_space<vmem>>, vector<8x16x128xf32>
    tpu.vector_store %arg13[%c9, %c8_16, %c0_17], %33 {strides = array<i32>} : memref<18x32x128xf32, #tpu.memory_space<vmem>>, vector<8x16x128xf32>,
    %cst_18 = arith.constant 0.000000e+00 : f32
    %35 = vector.broadcast %cst_18 : f32 to vector<1x32x128xf32>
    %c0_19 = arith.constant 0 : index
    %c0_20 = arith.constant 0 : index
    %c0_21 = arith.constant 0 : index
    %36 = vector.load %arg13[%c0_19, %c0_20, %c0_21] : memref<18x32x128xf32, #tpu.memory_space<vmem>>, vector<1x32x128xf32>
    tpu.vector_store %arg13[%c0_19, %c0_20, %c0_21], %35 {strides = array<i32>} : memref<18x32x128xf32, #tpu.memory_space<vmem>>, vector<1x32x128xf32>,
    %cst_22 = arith.constant 0.000000e+00 : f32
    %37 = vector.broadcast %cst_22 : f32 to vector<1x32x128xf32>
    %c17 = arith.constant 17 : index
    %c0_23 = arith.constant 0 : index
    %c0_24 = arith.constant 0 : index
    %38 = vector.load %arg13[%c17, %c0_23, %c0_24] : memref<18x32x128xf32, #tpu.memory_space<vmem>>, vector<1x32x128xf32>
    tpu.vector_store %arg13[%c17, %c0_23, %c0_24], %37 {strides = array<i32>} : memref<18x32x128xf32, #tpu.memory_space<vmem>>, vector<1x32x128xf32>,
    %cst_25 = arith.constant 0.000000e+00 : f32
    %39 = vector.broadcast %cst_25 : f32 to vector<16x8x128xf32>
    %c1_26 = arith.constant 1 : index
    %c0_27 = arith.constant 0 : index
    %c0_28 = arith.constant 0 : index
    %40 = vector.load %arg13[%c1_26, %c0_27, %c0_28] : memref<18x32x128xf32, #tpu.memory_space<vmem>>, vector<16x8x128xf32>
    tpu.vector_store %arg13[%c1_26, %c0_27, %c0_28], %39 {strides = array<i32>} : memref<18x32x128xf32, #tpu.memory_space<vmem>>, vector<16x8x128xf32>,
    %cst_29 = arith.constant 0.000000e+00 : f32
    %41 = vector.broadcast %cst_29 : f32 to vector<16x8x128xf32>
    %c1_30 = arith.constant 1 : index
    %c24 = arith.constant 24 : index
    %c0_31 = arith.constant 0 : index
    %42 = vector.load %arg13[%c1_30, %c24, %c0_31] : memref<18x32x128xf32, #tpu.memory_space<vmem>>, vector<16x8x128xf32>
    tpu.vector_store %arg13[%c1_30, %c24, %c0_31], %41 {strides = array<i32>} : memref<18x32x128xf32, #tpu.memory_space<vmem>>, vector<16x8x128xf32>,
    %c0_32 = arith.constant 0 : index
    %c0_33 = arith.constant 0 : index
    %c0_34 = arith.constant 0 : index
    %43 = vector.load %arg5[%c0_32, %c0_33, %c0_34] : memref<1x1x128xf32, #tpu.memory_space<vmem>>, vector<1x1x128xf32>
    %cst_35 = arith.constant 0.000000e+00 : f32
    %44 = vector.broadcast %cst_35 : f32 to vector<1x128xf32>
    %c0_36 = arith.constant 0 : index
    %c7 = arith.constant 7 : index
    %c0_37 = arith.constant 0 : index
    %45 = vector.load %arg13[%c0_36, %c7, %c0_37] : memref<18x32x128xf32, #tpu.memory_space<vmem>>, vector<8x16x128xf32>
    %c0_38 = arith.constant 0 : index
    %c0_39 = arith.constant 0 : index
    %c0_40 = arith.constant 0 : index
    %46 = vector.load %arg4[%c0_38, %c0_39, %c0_40] : memref<3x3x128xf32, #tpu.memory_space<vmem>>, vector<1x1x128xf32>
    %47 = vector.shape_cast %46 : vector<1x1x128xf32> to vector<128xf32>
    %48 = vector.shape_cast %47 : vector<128xf32> to vector<1x1x128xf32>
    %49 = vector.broadcast %48 : vector<1x1x128xf32> to vector<8x16x128xf32>
    %50 = arith.mulf %45, %49 : vector<8x16x128xf32>
    %c0_41 = arith.constant 0 : index
    %c8_42 = arith.constant 8 : index
    %c0_43 = arith.constant 0 : index
    %51 = vector.load %arg13[%c0_41, %c8_42, %c0_43] : memref<18x32x128xf32, #tpu.memory_space<vmem>>, vector<8x16x128xf32>
    %c0_44 = arith.constant 0 : index
    %c1_45 = arith.constant 1 : index
    %c0_46 = arith.constant 0 : index
    %52 = vector.load %arg4[%c0_44, %c1_45, %c0_46] : memref<3x3x128xf32, #tpu.memory_space<vmem>>, vector<1x1x128xf32>
    %53 = vector.shape_cast %52 : vector<1x1x128xf32> to vector<128xf32>
    %54 = vector.shape_cast %53 : vector<128xf32> to vector<1x1x128xf32>
    %55 = vector.broadcast %54 : vector<1x1x128xf32> to vector<8x16x128xf32>
    %56 = arith.mulf %51, %55 : vector<8x16x128xf32>
    %57 = arith.addf %50, %56 : vector<8x16x128xf32>
    %c0_47 = arith.constant 0 : index
    %c9_48 = arith.constant 9 : index
    %c0_49 = arith.constant 0 : index
    %58 = vector.load %arg13[%c0_47, %c9_48, %c0_49] : memref<18x32x128xf32, #tpu.memory_space<vmem>>, vector<8x16x128xf32>
    %c0_50 = arith.constant 0 : index
    %c2 = arith.constant 2 : index
    %c0_51 = arith.constant 0 : index
    %59 = vector.load %arg4[%c0_50, %c2, %c0_51] : memref<3x3x128xf32, #tpu.memory_space<vmem>>, vector<1x1x128xf32>
    %60 = vector.shape_cast %59 : vector<1x1x128xf32> to vector<128xf32>
    %61 = vector.shape_cast %60 : vector<128xf32> to vector<1x1x128xf32>
    %62 = vector.broadcast %61 : vector<1x1x128xf32> to vector<8x16x128xf32>
    %63 = arith.mulf %58, %62 : vector<8x16x128xf32>
    %64 = arith.addf %57, %63 : vector<8x16x128xf32>
    %c1_52 = arith.constant 1 : index
    %c7_53 = arith.constant 7 : index
    %c0_54 = arith.constant 0 : index
    %65 = vector.load %arg13[%c1_52, %c7_53, %c0_54] : memref<18x32x128xf32, #tpu.memory_space<vmem>>, vector<8x16x128xf32>
    %c1_55 = arith.constant 1 : index
    %c0_56 = arith.constant 0 : index
    %c0_57 = arith.constant 0 : index
    %66 = vector.load %arg4[%c1_55, %c0_56, %c0_57] : memref<3x3x128xf32, #tpu.memory_space<vmem>>, vector<1x1x128xf32>
    %67 = vector.shape_cast %66 : vector<1x1x128xf32> to vector<128xf32>
    %68 = vector.shape_cast %67 : vector<128xf32> to vector<1x1x128xf32>
    %69 = vector.broadcast %68 : vector<1x1x128xf32> to vector<8x16x128xf32>
    %70 = arith.mulf %65, %69 : vector<8x16x128xf32>
    %71 = arith.addf %64, %70 : vector<8x16x128xf32>
    %c1_58 = arith.constant 1 : index
    %c8_59 = arith.constant 8 : index
    %c0_60 = arith.constant 0 : index
    %72 = vector.load %arg13[%c1_58, %c8_59, %c0_60] : memref<18x32x128xf32, #tpu.memory_space<vmem>>, vector<8x16x128xf32>
    %c1_61 = arith.constant 1 : index
    %c1_62 = arith.constant 1 : index
    %c0_63 = arith.constant 0 : index
    %73 = vector.load %arg4[%c1_61, %c1_62, %c0_63] : memref<3x3x128xf32, #tpu.memory_space<vmem>>, vector<1x1x128xf32>
    %74 = vector.shape_cast %73 : vector<1x1x128xf32> to vector<128xf32>
    %75 = vector.shape_cast %74 : vector<128xf32> to vector<1x1x128xf32>
    %76 = vector.broadcast %75 : vector<1x1x128xf32> to vector<8x16x128xf32>
    %77 = arith.mulf %72, %76 : vector<8x16x128xf32>
    %78 = arith.addf %71, %77 : vector<8x16x128xf32>
    %c1_64 = arith.constant 1 : index
    %c9_65 = arith.constant 9 : index
    %c0_66 = arith.constant 0 : index
    %79 = vector.load %arg13[%c1_64, %c9_65, %c0_66] : memref<18x32x128xf32, #tpu.memory_space<vmem>>, vector<8x16x128xf32>
    %c1_67 = arith.constant 1 : index
    %c2_68 = arith.constant 2 : index
    %c0_69 = arith.constant 0 : index
    %80 = vector.load %arg4[%c1_67, %c2_68, %c0_69] : memref<3x3x128xf32, #tpu.memory_space<vmem>>, vector<1x1x128xf32>
    %81 = vector.shape_cast %80 : vector<1x1x128xf32> to vector<128xf32>
    %82 = vector.shape_cast %81 : vector<128xf32> to vector<1x1x128xf32>
    %83 = vector.broadcast %82 : vector<1x1x128xf32> to vector<8x16x128xf32>
    %84 = arith.mulf %79, %83 : vector<8x16x128xf32>
    %85 = arith.addf %78, %84 : vector<8x16x128xf32>
    %c2_70 = arith.constant 2 : index
    %c7_71 = arith.constant 7 : index
    %c0_72 = arith.constant 0 : index
    %86 = vector.load %arg13[%c2_70, %c7_71, %c0_72] : memref<18x32x128xf32, #tpu.memory_space<vmem>>, vector<8x16x128xf32>
    %c2_73 = arith.constant 2 : index
    %c0_74 = arith.constant 0 : index
    %c0_75 = arith.constant 0 : index
    %87 = vector.load %arg4[%c2_73, %c0_74, %c0_75] : memref<3x3x128xf32, #tpu.memory_space<vmem>>, vector<1x1x128xf32>
    %88 = vector.shape_cast %87 : vector<1x1x128xf32> to vector<128xf32>
    %89 = vector.shape_cast %88 : vector<128xf32> to vector<1x1x128xf32>
    %90 = vector.broadcast %89 : vector<1x1x128xf32> to vector<8x16x128xf32>
    %91 = arith.mulf %86, %90 : vector<8x16x128xf32>
    %92 = arith.addf %85, %91 : vector<8x16x128xf32>
    %c2_76 = arith.constant 2 : index
    %c8_77 = arith.constant 8 : index
    %c0_78 = arith.constant 0 : index
    %93 = vector.load %arg13[%c2_76, %c8_77, %c0_78] : memref<18x32x128xf32, #tpu.memory_space<vmem>>, vector<8x16x128xf32>
    %c2_79 = arith.constant 2 : index
    %c1_80 = arith.constant 1 : index
    %c0_81 = arith.constant 0 : index
    %94 = vector.load %arg4[%c2_79, %c1_80, %c0_81] : memref<3x3x128xf32, #tpu.memory_space<vmem>>, vector<1x1x128xf32>
    %95 = vector.shape_cast %94 : vector<1x1x128xf32> to vector<128xf32>
    %96 = vector.shape_cast %95 : vector<128xf32> to vector<1x1x128xf32>
    %97 = vector.broadcast %96 : vector<1x1x128xf32> to vector<8x16x128xf32>
    %98 = arith.mulf %93, %97 : vector<8x16x128xf32>
    %99 = arith.addf %92, %98 : vector<8x16x128xf32>
    %c2_82 = arith.constant 2 : index
    %c9_83 = arith.constant 9 : index
    %c0_84 = arith.constant 0 : index
    %100 = vector.load %arg13[%c2_82, %c9_83, %c0_84] : memref<18x32x128xf32, #tpu.memory_space<vmem>>, vector<8x16x128xf32>
    %c2_85 = arith.constant 2 : index
    %c2_86 = arith.constant 2 : index
    %c0_87 = arith.constant 0 : index
    %101 = vector.load %arg4[%c2_85, %c2_86, %c0_87] : memref<3x3x128xf32, #tpu.memory_space<vmem>>, vector<1x1x128xf32>
    %102 = vector.shape_cast %101 : vector<1x1x128xf32> to vector<128xf32>
    %103 = vector.shape_cast %102 : vector<128xf32> to vector<1x1x128xf32>
    %104 = vector.broadcast %103 : vector<1x1x128xf32> to vector<8x16x128xf32>
    %105 = arith.mulf %100, %104 : vector<8x16x128xf32>
    %106 = arith.addf %99, %105 : vector<8x16x128xf32>
    %107 = vector.broadcast %43 : vector<1x1x128xf32> to vector<8x16x128xf32>
    %108 = arith.addf %106, %107 : vector<8x16x128xf32>
    %cst_88 = arith.constant 3.000000e+00 : f32
    %109 = vector.broadcast %cst_88 : f32 to vector<8x16x128xf32>
    %110 = arith.addf %108, %109 : vector<8x16x128xf32>
    %cst_89 = arith.constant 0.000000e+00 : f32
    %cst_90 = arith.constant 6.000000e+00 : f32
    %111 = vector.broadcast %cst_89 : f32 to vector<8x16x128xf32>
    %112 = arith.maximumf %111, %110 : vector<8x16x128xf32>
    %113 = vector.broadcast %cst_90 : f32 to vector<8x16x128xf32>
    %114 = arith.minimumf %113, %112 : vector<8x16x128xf32>
    %115 = arith.mulf %108, %114 : vector<8x16x128xf32>
    %cst_91 = arith.constant 0.166666672 : f32
    %116 = vector.broadcast %cst_91 : f32 to vector<8x16x128xf32>
    %117 = arith.mulf %115, %116 : vector<8x16x128xf32>
    %118 = vector.shape_cast %117 : vector<8x16x128xf32> to vector<128x128xf32>
    %cst_92 = arith.constant dense<0.000000e+00> : vector<128xf32>
    %119 = vector.multi_reduction <add>, %118, %cst_92 [0] : vector<128x128xf32> to vector<128xf32>
    %120 = vector.shape_cast %119 : vector<128xf32> to vector<1x128xf32>
    %121 = arith.addf %44, %120 : vector<1x128xf32>
    %122 = arith.truncf %118 : vector<128x128xf32> to vector<128x128xbf16>
    %c0_93 = arith.constant 0 : index
    %c0_94 = arith.constant 0 : index
    %123 = vector.load %arg14[%c0_93, %c0_94] : memref<256x128xbf16, #tpu.memory_space<vmem>>, vector<128x128xbf16>
    tpu.vector_store %arg14[%c0_93, %c0_94], %122 {strides = array<i32>} : memref<256x128xbf16, #tpu.memory_space<vmem>>, vector<128x128xbf16>,
    %c8_95 = arith.constant 8 : index
    %c7_96 = arith.constant 7 : index
    %c0_97 = arith.constant 0 : index
    %124 = vector.load %arg13[%c8_95, %c7_96, %c0_97] : memref<18x32x128xf32, #tpu.memory_space<vmem>>, vector<8x16x128xf32>
    %c0_98 = arith.constant 0 : index
    %c0_99 = arith.constant 0 : index
    %c0_100 = arith.constant 0 : index
    %125 = vector.load %arg4[%c0_98, %c0_99, %c0_100] : memref<3x3x128xf32, #tpu.memory_space<vmem>>, vector<1x1x128xf32>
    %126 = vector.shape_cast %125 : vector<1x1x128xf32> to vector<128xf32>
    %127 = vector.shape_cast %126 : vector<128xf32> to vector<1x1x128xf32>
    %128 = vector.broadcast %127 : vector<1x1x128xf32> to vector<8x16x128xf32>
    %129 = arith.mulf %124, %128 : vector<8x16x128xf32>
    %c8_101 = arith.constant 8 : index
    %c8_102 = arith.constant 8 : index
    %c0_103 = arith.constant 0 : index
    %130 = vector.load %arg13[%c8_101, %c8_102, %c0_103] : memref<18x32x128xf32, #tpu.memory_space<vmem>>, vector<8x16x128xf32>
    %c0_104 = arith.constant 0 : index
    %c1_105 = arith.constant 1 : index
    %c0_106 = arith.constant 0 : index
    %131 = vector.load %arg4[%c0_104, %c1_105, %c0_106] : memref<3x3x128xf32, #tpu.memory_space<vmem>>, vector<1x1x128xf32>
    %132 = vector.shape_cast %131 : vector<1x1x128xf32> to vector<128xf32>
    %133 = vector.shape_cast %132 : vector<128xf32> to vector<1x1x128xf32>
    %134 = vector.broadcast %133 : vector<1x1x128xf32> to vector<8x16x128xf32>
    %135 = arith.mulf %130, %134 : vector<8x16x128xf32>
    %136 = arith.addf %129, %135 : vector<8x16x128xf32>
    %c8_107 = arith.constant 8 : index
    %c9_108 = arith.constant 9 : index
    %c0_109 = arith.constant 0 : index
    %137 = vector.load %arg13[%c8_107, %c9_108, %c0_109] : memref<18x32x128xf32, #tpu.memory_space<vmem>>, vector<8x16x128xf32>
    %c0_110 = arith.constant 0 : index
    %c2_111 = arith.constant 2 : index
    %c0_112 = arith.constant 0 : index
    %138 = vector.load %arg4[%c0_110, %c2_111, %c0_112] : memref<3x3x128xf32, #tpu.memory_space<vmem>>, vector<1x1x128xf32>
    %139 = vector.shape_cast %138 : vector<1x1x128xf32> to vector<128xf32>
    %140 = vector.shape_cast %139 : vector<128xf32> to vector<1x1x128xf32>
    %141 = vector.broadcast %140 : vector<1x1x128xf32> to vector<8x16x128xf32>
    %142 = arith.mulf %137, %141 : vector<8x16x128xf32>
    %143 = arith.addf %136, %142 : vector<8x16x128xf32>
    %c9_113 = arith.constant 9 : index
    %c7_114 = arith.constant 7 : index
    %c0_115 = arith.constant 0 : index
    %144 = vector.load %arg13[%c9_113, %c7_114, %c0_115] : memref<18x32x128xf32, #tpu.memory_space<vmem>>, vector<8x16x128xf32>
    %c1_116 = arith.constant 1 : index
    %c0_117 = arith.constant 0 : index
    %c0_118 = arith.constant 0 : index
    %145 = vector.load %arg4[%c1_116, %c0_117, %c0_118] : memref<3x3x128xf32, #tpu.memory_space<vmem>>, vector<1x1x128xf32>
    %146 = vector.shape_cast %145 : vector<1x1x128xf32> to vector<128xf32>
    %147 = vector.shape_cast %146 : vector<128xf32> to vector<1x1x128xf32>
    %148 = vector.broadcast %147 : vector<1x1x128xf32> to vector<8x16x128xf32>
    %149 = arith.mulf %144, %148 : vector<8x16x128xf32>
    %150 = arith.addf %143, %149 : vector<8x16x128xf32>
    %c9_119 = arith.constant 9 : index
    %c8_120 = arith.constant 8 : index
    %c0_121 = arith.constant 0 : index
    %151 = vector.load %arg13[%c9_119, %c8_120, %c0_121] : memref<18x32x128xf32, #tpu.memory_space<vmem>>, vector<8x16x128xf32>
    %c1_122 = arith.constant 1 : index
    %c1_123 = arith.constant 1 : index
    %c0_124 = arith.constant 0 : index
    %152 = vector.load %arg4[%c1_122, %c1_123, %c0_124] : memref<3x3x128xf32, #tpu.memory_space<vmem>>, vector<1x1x128xf32>
    %153 = vector.shape_cast %152 : vector<1x1x128xf32> to vector<128xf32>
    %154 = vector.shape_cast %153 : vector<128xf32> to vector<1x1x128xf32>
    %155 = vector.broadcast %154 : vector<1x1x128xf32> to vector<8x16x128xf32>
    %156 = arith.mulf %151, %155 : vector<8x16x128xf32>
    %157 = arith.addf %150, %156 : vector<8x16x128xf32>
    %c9_125 = arith.constant 9 : index
    %c9_126 = arith.constant 9 : index
    %c0_127 = arith.constant 0 : index
    %158 = vector.load %arg13[%c9_125, %c9_126, %c0_127] : memref<18x32x128xf32, #tpu.memory_space<vmem>>, vector<8x16x128xf32>
    %c1_128 = arith.constant 1 : index
    %c2_129 = arith.constant 2 : index
    %c0_130 = arith.constant 0 : index
    %159 = vector.load %arg4[%c1_128, %c2_129, %c0_130] : memref<3x3x128xf32, #tpu.memory_space<vmem>>, vector<1x1x128xf32>
    %160 = vector.shape_cast %159 : vector<1x1x128xf32> to vector<128xf32>
    %161 = vector.shape_cast %160 : vector<128xf32> to vector<1x1x128xf32>
    %162 = vector.broadcast %161 : vector<1x1x128xf32> to vector<8x16x128xf32>
    %163 = arith.mulf %158, %162 : vector<8x16x128xf32>
    %164 = arith.addf %157, %163 : vector<8x16x128xf32>
    %c10 = arith.constant 10 : index
    %c7_131 = arith.constant 7 : index
    %c0_132 = arith.constant 0 : index
    %165 = vector.load %arg13[%c10, %c7_131, %c0_132] : memref<18x32x128xf32, #tpu.memory_space<vmem>>, vector<8x16x128xf32>
    %c2_133 = arith.constant 2 : index
    %c0_134 = arith.constant 0 : index
    %c0_135 = arith.constant 0 : index
    %166 = vector.load %arg4[%c2_133, %c0_134, %c0_135] : memref<3x3x128xf32, #tpu.memory_space<vmem>>, vector<1x1x128xf32>
    %167 = vector.shape_cast %166 : vector<1x1x128xf32> to vector<128xf32>
    %168 = vector.shape_cast %167 : vector<128xf32> to vector<1x1x128xf32>
    %169 = vector.broadcast %168 : vector<1x1x128xf32> to vector<8x16x128xf32>
    %170 = arith.mulf %165, %169 : vector<8x16x128xf32>
    %171 = arith.addf %164, %170 : vector<8x16x128xf32>
    %c10_136 = arith.constant 10 : index
    %c8_137 = arith.constant 8 : index
    %c0_138 = arith.constant 0 : index
    %172 = vector.load %arg13[%c10_136, %c8_137, %c0_138] : memref<18x32x128xf32, #tpu.memory_space<vmem>>, vector<8x16x128xf32>
    %c2_139 = arith.constant 2 : index
    %c1_140 = arith.constant 1 : index
    %c0_141 = arith.constant 0 : index
    %173 = vector.load %arg4[%c2_139, %c1_140, %c0_141] : memref<3x3x128xf32, #tpu.memory_space<vmem>>, vector<1x1x128xf32>
    %174 = vector.shape_cast %173 : vector<1x1x128xf32> to vector<128xf32>
    %175 = vector.shape_cast %174 : vector<128xf32> to vector<1x1x128xf32>
    %176 = vector.broadcast %175 : vector<1x1x128xf32> to vector<8x16x128xf32>
    %177 = arith.mulf %172, %176 : vector<8x16x128xf32>
    %178 = arith.addf %171, %177 : vector<8x16x128xf32>
    %c10_142 = arith.constant 10 : index
    %c9_143 = arith.constant 9 : index
    %c0_144 = arith.constant 0 : index
    %179 = vector.load %arg13[%c10_142, %c9_143, %c0_144] : memref<18x32x128xf32, #tpu.memory_space<vmem>>, vector<8x16x128xf32>
    %c2_145 = arith.constant 2 : index
    %c2_146 = arith.constant 2 : index
    %c0_147 = arith.constant 0 : index
    %180 = vector.load %arg4[%c2_145, %c2_146, %c0_147] : memref<3x3x128xf32, #tpu.memory_space<vmem>>, vector<1x1x128xf32>
    %181 = vector.shape_cast %180 : vector<1x1x128xf32> to vector<128xf32>
    %182 = vector.shape_cast %181 : vector<128xf32> to vector<1x1x128xf32>
    %183 = vector.broadcast %182 : vector<1x1x128xf32> to vector<8x16x128xf32>
    %184 = arith.mulf %179, %183 : vector<8x16x128xf32>
    %185 = arith.addf %178, %184 : vector<8x16x128xf32>
    %186 = vector.broadcast %43 : vector<1x1x128xf32> to vector<8x16x128xf32>
    %187 = arith.addf %185, %186 : vector<8x16x128xf32>
    %cst_148 = arith.constant 3.000000e+00 : f32
    %188 = vector.broadcast %cst_148 : f32 to vector<8x16x128xf32>
    %189 = arith.addf %187, %188 : vector<8x16x128xf32>
    %cst_149 = arith.constant 0.000000e+00 : f32
    %cst_150 = arith.constant 6.000000e+00 : f32
    %190 = vector.broadcast %cst_149 : f32 to vector<8x16x128xf32>
    %191 = arith.maximumf %190, %189 : vector<8x16x128xf32>
    %192 = vector.broadcast %cst_150 : f32 to vector<8x16x128xf32>
    %193 = arith.minimumf %192, %191 : vector<8x16x128xf32>
    %194 = arith.mulf %187, %193 : vector<8x16x128xf32>
    %cst_151 = arith.constant 0.166666672 : f32
    %195 = vector.broadcast %cst_151 : f32 to vector<8x16x128xf32>
    %196 = arith.mulf %194, %195 : vector<8x16x128xf32>
    %197 = vector.shape_cast %196 : vector<8x16x128xf32> to vector<128x128xf32>
    %cst_152 = arith.constant dense<0.000000e+00> : vector<128xf32>
    %198 = vector.multi_reduction <add>, %197, %cst_152 [0] : vector<128x128xf32> to vector<128xf32>
    %199 = vector.shape_cast %198 : vector<128xf32> to vector<1x128xf32>
    %200 = arith.addf %121, %199 : vector<1x128xf32>
    %201 = arith.truncf %197 : vector<128x128xf32> to vector<128x128xbf16>
    %c128 = arith.constant 128 : index
    %c0_153 = arith.constant 0 : index
    %202 = vector.load %arg14[%c128, %c0_153] : memref<256x128xbf16, #tpu.memory_space<vmem>>, vector<128x128xbf16>
    tpu.vector_store %arg14[%c128, %c0_153], %201 {strides = array<i32>} : memref<256x128xbf16, #tpu.memory_space<vmem>>, vector<128x128xbf16>,
    %c0_154 = arith.constant 0 : index
    %c0_155 = arith.constant 0 : index
    %203 = vector.load %arg10[%c0_154, %c0_155] : memref<32x128xf32, #tpu.memory_space<vmem>>, vector<32x128xf32>
    %cst_156 = arith.constant 3.906250e-03 : f32
    %204 = vector.broadcast %cst_156 : f32 to vector<1x128xf32>
    %205 = arith.mulf %200, %204 : vector<1x128xf32>
    %c0_157 = arith.constant 0 : index
    %c0_158 = arith.constant 0 : index
    %206 = vector.load %arg6[%c0_157, %c0_158] : memref<128x32xf32, #tpu.memory_space<vmem>>, vector<128x32xf32>
    %cst_159 = arith.constant dense<0.000000e+00> : vector<1x32xf32>
    %207 = tpu.matmul %205, %206, %cst_159 {dimension_numbers = #tpu.dot_dimension_numbers<[1], [0], [0], [1], [0, 0, 1, 1], [], []>} : vector<1x128xf32>, vector<128x32xf32>, vector<1x32xf32> -> vector<1x32xf32>
    %c0_160 = arith.constant 0 : index
    %c0_161 = arith.constant 0 : index
    %208 = vector.load %arg7[%c0_160, %c0_161] : memref<1x32xf32, #tpu.memory_space<vmem>>, vector<1x32xf32>
    %209 = arith.addf %207, %208 : vector<1x32xf32>
    %cst_162 = arith.constant 0.000000e+00 : f32
    %210 = vector.broadcast %cst_162 : f32 to vector<1x32xf32>
    %211 = arith.maximumf %209, %210 : vector<1x32xf32>
    %c0_163 = arith.constant 0 : index
    %c0_164 = arith.constant 0 : index
    %212 = vector.load %arg8[%c0_163, %c0_164] : memref<32x128xf32, #tpu.memory_space<vmem>>, vector<32x128xf32>
    %cst_165 = arith.constant dense<0.000000e+00> : vector<1x128xf32>
    %213 = tpu.matmul %211, %212, %cst_165 {dimension_numbers = #tpu.dot_dimension_numbers<[1], [0], [0], [1], [0, 0, 1, 1], [], []>} : vector<1x32xf32>, vector<32x128xf32>, vector<1x128xf32> -> vector<1x128xf32>
    %c0_166 = arith.constant 0 : index
    %c0_167 = arith.constant 0 : index
    %214 = vector.load %arg9[%c0_166, %c0_167] : memref<1x128xf32, #tpu.memory_space<vmem>>, vector<1x128xf32>
    %215 = arith.addf %213, %214 : vector<1x128xf32>
    %cst_168 = arith.constant 3.000000e+00 : f32
    %216 = vector.broadcast %cst_168 : f32 to vector<1x128xf32>
    %217 = arith.addf %215, %216 : vector<1x128xf32>
    %cst_169 = arith.constant 0.000000e+00 : f32
    %cst_170 = arith.constant 6.000000e+00 : f32
    %218 = vector.broadcast %cst_169 : f32 to vector<1x128xf32>
    %219 = arith.maximumf %218, %217 : vector<1x128xf32>
    %220 = vector.broadcast %cst_170 : f32 to vector<1x128xf32>
    %221 = arith.minimumf %220, %219 : vector<1x128xf32>
    %cst_171 = arith.constant 0.166666672 : f32
    %222 = vector.broadcast %cst_171 : f32 to vector<1x128xf32>
    %223 = arith.mulf %221, %222 : vector<1x128xf32>
    %224 = vector.broadcast %223 : vector<1x128xf32> to vector<32x128xf32>
    %225 = arith.mulf %203, %224 : vector<32x128xf32>
    %226 = arith.truncf %225 : vector<32x128xf32> to vector<32x128xbf16>
    %c0_172 = arith.constant 0 : index
    %c0_173 = arith.constant 0 : index
    %227 = vector.load %arg14[%c0_172, %c0_173] : memref<256x128xbf16, #tpu.memory_space<vmem>>, vector<256x128xbf16>
    %cst_174 = arith.constant dense<0.000000e+00> : vector<32x256xf32>
    %228 = tpu.matmul %226, %227, %cst_174 {dimension_numbers = #tpu.dot_dimension_numbers<[1], [1], [0], [0], [0, 0, 1, 0], [], []>} : vector<32x128xbf16>, vector<256x128xbf16>, vector<32x256xf32> -> vector<32x256xf32>
    %c0_175 = arith.constant 0 : index
    %c0_176 = arith.constant 0 : index
    %229 = vector.load %arg11[%c0_175, %c0_176] : memref<32x1xf32, #tpu.memory_space<vmem>>, vector<32x1xf32>
    %230 = vector.broadcast %229 : vector<32x1xf32> to vector<32x256xf32>
    %231 = arith.addf %228, %230 : vector<32x256xf32>
    %232 = arith.addf %231, %1 : vector<32x256xf32>
    %233 = vector.shape_cast %232 : vector<32x256xf32> to vector<2x16x256xf32>
    %c0_177 = arith.constant 0 : index
    %c0_178 = arith.constant 0 : index
    %c0_179 = arith.constant 0 : index
    %234 = vector.load %arg12[%c0_177, %c0_178, %c0_179] : memref<2x16x256xf32, #tpu.memory_space<vmem>>, vector<2x16x256xf32>
    tpu.vector_store %arg12[%c0_177, %c0_178, %c0_179], %233 {strides = array<i32>} : memref<2x16x256xf32, #tpu.memory_space<vmem>>, vector<2x16x256xf32>,
    return
  }
  func.func @transform_0(%arg0: i32) -> (i32, i32, i32) {
    %c0_i32 = arith.constant 0 : i32
    %c0_i32_0 = arith.constant 0 : i32
    %c0_i32_1 = arith.constant 0 : i32
    return %arg0, %c0_i32, %c0_i32_0 : i32, i32, i32
  }
  func.func @transform_1(%arg0: i32) -> (i32, i32) {
    %c0_i32 = arith.constant 0 : i32
    %c0_i32_0 = arith.constant 0 : i32
    %c0_i32_1 = arith.constant 0 : i32
    return %c0_i32, %c0_i32_0 : i32, i32
  }
  func.func @transform_2(%arg0: i32) -> (i32, i32) {
    %c0_i32 = arith.constant 0 : i32
    %c0_i32_0 = arith.constant 0 : i32
    %c0_i32_1 = arith.constant 0 : i32
    return %c0_i32, %c0_i32_0 : i32, i32
  }
  func.func @transform_3(%arg0: i32) -> (i32, i32, i32) {
    %c0_i32 = arith.constant 0 : i32
    %c0_i32_0 = arith.constant 0 : i32
    %c0_i32_1 = arith.constant 0 : i32
    %c0_i32_2 = arith.constant 0 : i32
    return %c0_i32, %c0_i32_0, %c0_i32_1 : i32, i32, i32
  }
  func.func @transform_4(%arg0: i32) -> (i32, i32, i32) {
    %c0_i32 = arith.constant 0 : i32
    %c0_i32_0 = arith.constant 0 : i32
    %c0_i32_1 = arith.constant 0 : i32
    %c0_i32_2 = arith.constant 0 : i32
    return %c0_i32, %c0_i32_0, %c0_i32_1 : i32, i32, i32
  }
  func.func @transform_5(%arg0: i32) -> (i32, i32) {
    %c0_i32 = arith.constant 0 : i32
    %c0_i32_0 = arith.constant 0 : i32
    %c0_i32_1 = arith.constant 0 : i32
    return %c0_i32, %c0_i32_0 : i32, i32
  }
  func.func @transform_6(%arg0: i32) -> (i32, i32) {
    %c0_i32 = arith.constant 0 : i32
    %c0_i32_0 = arith.constant 0 : i32
    %c0_i32_1 = arith.constant 0 : i32
    return %c0_i32, %c0_i32_0 : i32, i32
  }
  func.func @transform_7(%arg0: i32) -> (i32, i32) {
    %c0_i32 = arith.constant 0 : i32
    %c0_i32_0 = arith.constant 0 : i32
    %c0_i32_1 = arith.constant 0 : i32
    return %c0_i32, %c0_i32_0 : i32, i32
  }
  func.func @transform_8(%arg0: i32) -> (i32, i32) {
    %c0_i32 = arith.constant 0 : i32
    %c0_i32_0 = arith.constant 0 : i32
    %c0_i32_1 = arith.constant 0 : i32
    return %c0_i32, %c0_i32_0 : i32, i32
  }
  func.func @transform_9(%arg0: i32) -> (i32, i32) {
    %c0_i32 = arith.constant 0 : i32
    %c0_i32_0 = arith.constant 0 : i32
    %c0_i32_1 = arith.constant 0 : i32
    return %c0_i32, %c0_i32_0 : i32, i32
  }
  func.func @transform_10(%arg0: i32) -> (i32, i32) {
    %c0_i32 = arith.constant 0 : i32
    %c0_i32_0 = arith.constant 0 : i32
    %c0_i32_1 = arith.constant 0 : i32
    return %c0_i32, %c0_i32_0 : i32, i32
  }
  func.func @transform_11(%arg0: i32) -> (i32, i32, i32) {
    %c0_i32 = arith.constant 0 : i32
    %c0_i32_0 = arith.constant 0 : i32
    %c0_i32_1 = arith.constant 0 : i32
    return %arg0, %c0_i32, %c0_i32_0 : i32, i32, i32
  }
}

</mosaic_0001>

<bundles_post_ra>
// kernel: tpu_custom_call.1
= control target key start
LH: loop header
LB: loop body
LE: loop exit
PB: predicated region body
PF: predicated region fallthrough
CT: control target
= control target key end

     0   :  { %s4525_s0 = inlined_call_operand.vmem [shape: f32[4,16,256], index: 0, kind: input, shape index: {}]   ;;  %s4526_s1 = inlined_call_operand.hbm [shape: bf16[32,128], index: 1, kind: input, shape index: {}]   ;;  %s4527_s2 = inlined_call_operand.vmem [shape: f32[1,128], index: 2, kind: input, shape index: {}]   ;;  %s4528_s3 = inlined_call_operand.hbm [shape: f32[3,3,128], index: 3, kind: input, shape index: {}]   ;;  %s4529_s4 = inlined_call_operand.vmem [shape: f32[1,1,128], index: 4, kind: input, shape index: {}]   ;;  %s4530_s5 = inlined_call_operand.vmem [shape: f32[128,32], index: 5, kind: input, shape index: {}]   ;;  %s4531_s6 = inlined_call_operand.vmem [shape: f32[1,32], index: 6, kind: input, shape index: {}]   ;;  %s4532_s7 = inlined_call_operand.vmem [shape: f32[32,128], index: 7, kind: input, shape index: {}]   ;;  %s4533_s8 = inlined_call_operand.vmem [shape: f32[1,128], index: 8, kind: input, shape index: {}]   ;;  %s4534_s9 = inlined_call_operand.hbm [shape: f32[32,128], index: 9, kind: input, shape index: {}]   ;;  %s4535_s10 = inlined_call_operand.vmem [shape: f32[32,1], index: 10, kind: input, shape index: {}]   ;;  %s4536_s11 = inlined_call_operand.hbm [shape: f32[4,16,256], index: 11, kind: output, shape index: {}]  }
   0x1   :  { %4555 = sst [smem:[#allocation64_spill]] %s4526_s1 }
   0x2   :  { %4556 = sst [smem:[#allocation65_spill]] %s4528_s3 }
   0x3   :  { %16 = vsyncpa [#allocation5], 0 }
   0x4   :  { %17 = vsyncpa [#allocation8], 0 }
   0x5   :  { %18 = vsyncpa [#allocation6], 0 }
   0x6   :  { %20 = vsyncpa [#allocation6 + $0x1], 0  ;;  %s3093_s17 = smov 0   ;;  %s3095_s18 = smov 0  }
   0x7   :  { %s3097_s19 = smov 0   ;;  %s3099_s20 = smov 0  }
   0x8 LB: > { %4557 = sst [smem:[#allocation14_spill]] %s3016_s19  ;;  %s3114_s21 = sadd.s32 4294967295, %s3020_s20   ;;  %s3020_s20 = sphi %s3099_s20, %s4675_s20   ;;  %s3016_s19 = sphi %s3097_s19, %s4677_s19   ;;  %s3012_s18 = sphi %s3095_s18, %s4679_s18   ;;  %s3008_s17 = sphi %s3093_s17, %s4678_s17  }
   0x9   : > { %s2483_s22 = sadd.s32 4294967294, %s3020_s20   ;;  %s3118_s23 = sadd.s32 1, %s3020_s20  }
   0xa   : > { %4558 = sst [smem:[#allocation15_spill]] %s3118_s23  ;;  %s269_s24 = sadd.s32 1, %s3016_s19 }
   0xb   : > { %s266_s25 = ssub.s32 %s3020_s20, %s3118_s23  ;;  %p279_p0 = scmp.ne.s32.totalorder %s3016_s19, %s3012_s18 }
   0xc   : > { %p267_p1 = scmp.eq.s32.totalorder %s266_s25, 0  ;;  %p280_p2 = scmp.eq.s32.totalorder %s3114_s21, 1 }
   0xd   : > { %p285_p3 = scmp.ne.s32.totalorder %s3012_s18, %s3008_s17  ;;  %p286_p4 = scmp.eq.s32.totalorder %s2483_s22, 1 }
   0xe   : > { %s3129_s26 = scalar_select %p267_p1, %s3016_s19, %s269_s24  }
   0xf   : > { %p3131_p5 = por %p280_p2, %p279_p0  ;;  %p3135_p6 = por %p286_p4, %p285_p3 }
  0x10   : > { %4559 = sst [smem:[#allocation16_spill]] %s3129_s26  ;;  %p2484_p7 = scmp.ge.s32.totalorder %s3020_s20, 1 }
  0x11   : > { %s4561_s28 = scalar_select %p3135_p6, 1, 0 }
  0x12   : > { %p293_p8 = scmp.lt.s32.totalorder %s3020_s20, 3  ;;  %p2736_p9 = scmp.eq.s32.totalorder %s3114_s21, 0 }
  0x13   : > { %4562 = sst [smem:[#allocation17_spill]] %s4561_s28  ;;  %s3022_s24 = smov [#allocation7]  }
  0x14   : > { %p3142_p10 = pnand %p2484_p7, %p293_p8  ;;  %s4564_s3 = sld [smem:[#allocation65_spill]] }
  0x15   : > { %s4565_s1 = sld [smem:[#allocation64_spill]]  ;;  %s323_s25 = sshll.u32 %s3022_s24, 4  ;;  %s324_s25 = int_to_ptr.vmem [resolvable:$true] %s323_s25 }
  0x16   : > { %p2722_p11 = pneg %p3142_p10  ;;  %s3023_s30 = smov 64  }
  0x17   : > { %s3024_s12 = smov 4   ;;  %s3026_s19 = smov [#allocation9]  }
  0x18   : > { %p3156_p12 = pnand %p2736_p9, %p2722_p11  ;;  %s352_s23 = sshll.u32 %s3026_s19, 4  ;;  %s353_s23 = int_to_ptr.vmem [resolvable:$true] %s352_s23 }
  0x19   : > { %s3027_s24 = smov 128   ;;  %s3028_s28 = smov 8  }
  0x1a   : > { %s321_s13 = sshll.u32 %s4564_s3, 4  ;;  %s3025_s3 = smov [#allocation4]   ;;  %s322_s13 = int_to_ptr.hbm [resolvable:$true] %s321_s13 }
  0x1b   : > { %s304_s16 = sshll.u32 %s4565_s1, 4  ;;  %s306_s26 = sshll.u32 %s3025_s3, 4  ;;  %s305_s16 = int_to_ptr.hbm [resolvable:$true] %s304_s16  ;;  %s307_s26 = int_to_ptr.vmem [resolvable:$true] %s306_s26 }
  0x1c   : > { %2728 = dma.hbm_to_vmem [thread:$0]  (!%p3156_p12), %s322_s13, 192, %s324_s25, [#allocation8], %s3023_s30, %s3023_s30, %s3024_s12  }
  0x1d   : > { %s350_s1 = sshll.u32 %s4534_s9, 4  ;;  %381 = sbr.rel (%p3142_p10) target bundleno = 1104 (0x450), region = 64  ;;  %s351_s1 = int_to_ptr.hbm [resolvable:$true] %s350_s1 }
  0x1e   : > { %2725 = dma.hbm_to_vmem [thread:$0]  (!%p3156_p12), %s305_s16, 256, %s307_s26, [#allocation5], %s3023_s30, %s3023_s30, %s3024_s12  }
  0x1f   : > { %2731 = dma.hbm_to_vmem [thread:$0]  (!%p3156_p12), %s351_s1, 512, %s353_s23, [#allocation8], %s3027_s24, %s3027_s24, %s3028_s28  }
  0x22   : > { %2995 = dma.done.wait (%p2736_p9), [#allocation5], 256  }
  0x23   : > { %2997 = vsyncadd (%p2736_p9), [#allocation5], 4294967040 }
  0x24   : > { %2999 = dma.done.wait (%p2736_p9), [#allocation8], 704  }
  0x25   : > { %3001 = vsyncadd (%p2736_p9), [#allocation8], 4294966592  ;;  %s2494_s3 = sshll.u32 %s3114_s21, 1  ;;  %v2594_v6 = vld [vmem:[#allocation4 + $0x8] sm:$0xff]  ;;  %v2593_v9 = vld [vmem:[#allocation4] sm:$0xff]  ;;  %vm502_vm0 = vcmask 261120  }
  0x26   : > { %p434_p13 = scmp.lt.s32.totalorder %s2494_s3, 3  ;;  %533 = vmatpush.bf16.msra.mxu0 %v2594_v6  ;;  %727 = vmatpush.bf16.msra.mxu1 %v2594_v6  ;;  %v3029_v39 = vmov 0.0   ;;  %v3232_v43 = vld [vmem:[%s4527_s2] ss:$0 sm:$0xff]  ;;  %v3254_v57 = vld [vmem:[#allocation7] ss:$0 sm:$0xff] }
  0x27   : > { %867 = vst [vmem:[#allocation2] sm:$0xff] %v3029_v39  ;;  %v3258_v61 = vld [vmem:[#allocation7 + $0x1] ss:$0 sm:$0xff]  ;;  %s430_s28 = sand.u32 1, %s3012_s18   ;;  %s2612_s16 = sshll.u32 %s3114_s21, 6 }
  0x28   : > { %s4681_s3 = smov (!%p434_p13, %s2494_s3), 3  ;;  %868 = vst [vmem:[#allocation2 + $0x8] sm:$0xff] %v3029_v39  ;;  %s2493_s29 = sshll.u32 %s430_s28, 6 }
  0x29   : > { %s2592_s1 = sshll.u32 %s4681_s3, 5  ;;  %869 = vst [vmem:[#allocation2 + $0x10] sm:$0xff] %v3029_v39  ;;  %s4475_s13 = scalar_lea.vmem [#allocation10], %s2493_s29 }
  0x2a   : > { %s3183_s26 = scalar_lea.vmem %s4525_s0, %s2592_s1  ;;  %534 = vmatpush.bf16.msra.mxu0 %v2593_v9  ;;  %728 = vmatpush.bf16.msra.mxu1 %v2593_v9  ;;  %876 = vst [vmem:[#allocation2 + $0x20] sm:$0xff] %v3029_v39  ;;  %s2386_s30 = scalar_lea.hbm %s4536_s11, %s2612_s16 }
  0x2b   : > { %v442_v0 = vld [vmem:[%s3183_s26] sm:$0xff]  ;;  %v443_v1 = vld [vmem:[%s3183_s26 + $0x8] sm:$0xff]  ;;  %v444_v2 = vld [vmem:[%s3183_s26 + $0x10] sm:$0xff]  ;;  %870 = vst [vmem:[#allocation2 + $0x18] sm:$0xff] %v3029_v39  ;;  %s2387_s12 = sshll.u32 %s4475_s13, 4  ;;  %s2389_s14 = sshll.u32 %s2386_s30, 4  ;;  %s2388_s12 = int_to_ptr.vmem [resolvable:$true] %s2387_s12  ;;  %s2390_s14 = int_to_ptr.hbm [resolvable:$true] %s2389_s14 }
  0x2c   : > { %v445_v3 = vld [vmem:[%s3183_s26 + $0x18] sm:$0xff]  ;;  %v450_v4 = vpack.c.bf16 %v443_v1, %v442_v0  ;;  %v446_v14 = vld [vmem:[%s3183_s26 + $0x20] sm:$0xff]  ;;  %v447_v15 = vld [vmem:[%s3183_s26 + $0x28] sm:$0xff]  ;;  %872 = vst [vmem:[#allocation2 + $0x220] sm:$0xff] %v3029_v39  ;;  %v961_v1 = vmul.f32 0.0, %v3258_v61  ;;  %s2374_s21 = scalar_lea.sflag [#allocation6], %s430_s28 }
  0x2d   : > { %v451_v5 = vpack.c.bf16 %v445_v3, %v444_v2  ;;  %v448_v16 = vld [vmem:[%s3183_s26 + $0x30] sm:$0xff]  ;;  %v449_v17 = vld [vmem:[%s3183_s26 + $0x38] sm:$0xff]  ;;  %v452_v18 = vpack.c.bf16 %v447_v15, %v446_v14  ;;  %873 = vst [vmem:[#allocation2 + $0x228] sm:$0xff] %v3029_v39  ;;  %s2964_s15 = sshra.s32 %s2390_s14, 4  ;;  %s2970_s19 = scalar_lea.hbm %s4536_s11, 128  ;;  %s2965_s15 = int_to_ptr.hbm [resolvable:$true] %s2964_s15 }
  0x2e   : > { %v466_v7 = vunpack.c.l.b16 %v450_v4  ;;  %v673_v8 = vunpack.c.h.b16 %v450_v4  ;;  %v453_v19 = vpack.c.bf16 %v449_v17, %v448_v16  ;;  %874 = vst [vmem:[#allocation2 + $0x230] sm:$0xff] %v3029_v39  ;;  %v3264_v2 = vld [vmem:[#allocation7 + $0x2] ss:$0 sm:$0xff]  ;;  %v3271_v17 = vld [vmem:[#allocation7 + $0x4] ss:$0 sm:$0xff]  ;;  %s2966_s24 = scalar_lea.hbm %s2965_s15, 64  ;;  %p2971_p3 = scmp.lt.s32.totalorder %s2965_s15, %s4536_s11 }
  0x2f   : > { %v467_v10 = vunpack.c.l.b16 %v451_v5  ;;  %v674_v11 = vunpack.c.h.b16 %v451_v5  ;;  %v468_v20 = vunpack.c.l.b16 %v452_v18  ;;  %v675_v22 = vunpack.c.h.b16 %v452_v18  ;;  %875 = vst [vmem:[#allocation2 + $0x238] sm:$0xff] %v3029_v39  ;;  %v909_v58 = vld [vmem:[#allocation2 + $0x7] sm:$0xff]  ;;  %p2967_p0 = scmp.ne.s32.totalorder %s2965_s15, %s2966_s24  ;;  %p2972_p4 = scmp.lt.s32.totalorder %s2970_s19, %s2966_s24 }
  0x30   : > { %v469_v21 = vunpack.c.l.b16 %v453_v19  ;;  %v676_v23 = vunpack.c.h.b16 %v453_v19  ;;  %877 = vst [vmem:[#allocation2 + $0x40] sm:$0xff] %v3029_v39  ;;  %v927_v0 = vmul.f32 %v3254_v57, %v909_v58  ;;  %v993_v5 = vld [vmem:[#allocation2 + $0x9] sm:$0xff] }
  0x31   : > { %v470_v12 = vpack.c.b16 %v467_v10, %v466_v7  ;;  %v677_v13 = vpack.c.b16 %v674_v11, %v673_v8  ;;  %878 = vst [vmem:[#allocation2 + $0x60] sm:$0xff] %v3029_v39  ;;  %v910_v10 = vld [vmem:[#allocation2 + $0xf] sm:$0xff]  ;;  %v1011_v16 = vmul.f32 %v3264_v2, %v993_v5  ;;  %p2968_p1 = pnand %p2967_p0, %p3131_p5  ;;  %p2973_p7 = por %p2972_p4, %p2971_p3 }
  0x32   : > { %v471_v24 = vpack.c.b16 %v469_v21, %v468_v20  ;;  %v678_v25 = vpack.c.b16 %v676_v23, %v675_v22  ;;  %879 = vst [vmem:[#allocation2 + $0x80] sm:$0xff] %v3029_v39  ;;  %v977_v15 = vadd.f32 %v961_v1, %v927_v0  ;;  %v928_v19 = vmul.f32 %v3254_v57, %v910_v10  ;;  %v994_v20 = vld [vmem:[#allocation2 + $0x11] sm:$0xff]  ;;  %v3304_v58 = vld [vmem:[#allocation7] ss:$0 sm:$0xff] }
  0x33   : > { %2786 = vxpose.binary.xlu0.c.b16.start [1/4] (short) %v677_v13, %v470_v12, 128  ;;  %880 = vst [vmem:[#allocation2 + $0xa0] sm:$0xff] %v3029_v39  ;;  %p2969_p2 = pneg %p2968_p1 }
  0x34   : > { %881 = vst [vmem:[#allocation2 + $0xc0] sm:$0xff] %v3029_v39  ;;  %v1027_v23 = vadd.f32 %v1011_v16, %v977_v15 }
  0x35   : > { %882 = vst [vmem:[#allocation2 + $0xe0] sm:$0xff] %v3029_v39  ;;  %p2974_p8 = pnand %p2973_p7, %p2969_p2 }
  0x36   : > { %883 = vst [vmem:[#allocation2 + $0x100] sm:$0xff] %v3029_v39 }
  0x37   : > { %884 = vst [vmem:[#allocation2 + $0x120] sm:$0xff] %v3029_v39 }
  0x38   : > { %885 = vst [vmem:[#allocation2 + $0x140] sm:$0xff] %v3029_v39 }
  0x39   : > { %886 = vst [vmem:[#allocation2 + $0x160] sm:$0xff] %v3029_v39 }
  0x3a   : > { %887 = vst [vmem:[#allocation2 + $0x180] sm:$0xff] %v3029_v39 }
  0x3b   : > { %4567 = vst [vmem:[#allocation18_spill] sm:$0xff] %v3232_v43 }
  0x3c   : > { %888 = vst [vmem:[#allocation2 + $0x1a0] sm:$0xff] %v3029_v39 }
  0x3d   : > { %889 = vst [vmem:[#allocation2 + $0x1c0] sm:$0xff] %v3029_v39 }
  0x3e   : > { %890 = vst [vmem:[#allocation2 + $0x1e0] sm:$0xff] %v3029_v39 }
  0x3f   : > { %891 = vst [vmem:[#allocation2 + $0x200] sm:$0xff] %v3029_v39 }
  0x40   : > { %892 = vst [vmem:[#allocation2 + $0x38] sm:$0xff] %v3029_v39 }
  0x41   : > { %893 = vst [vmem:[#allocation2 + $0x58] sm:$0xff] %v3029_v39 }
  0x42   : > { %894 = vst [vmem:[#allocation2 + $0x78] sm:$0xff] %v3029_v39 }
  0x43   : > { %2787 = vxpose.binary.xlu0.c.b16.end [2/4] (short) %v678_v25, %v471_v24, 128  ;;  %895 = vst [vmem:[#allocation2 + $0x98] sm:$0xff] %v3029_v39 }
  0x44   : > { %896 = vst [vmem:[#allocation2 + $0xb8] sm:$0xff] %v3029_v39 }
  0x45   : > { %897 = vst [vmem:[#allocation2 + $0xd8] sm:$0xff] %v3029_v39 }
  0x46   : > { %898 = vst [vmem:[#allocation2 + $0xf8] sm:$0xff] %v3029_v39 }
  0x47   : > { %899 = vst [vmem:[#allocation2 + $0x118] sm:$0xff] %v3029_v39 }
  0x48   : > { %900 = vst [vmem:[#allocation2 + $0x138] sm:$0xff] %v3029_v39 }
  0x49   : > { %901 = vst [vmem:[#allocation2 + $0x158] sm:$0xff] %v3029_v39 }
  0x4a   : > { %902 = vst [vmem:[#allocation2 + $0x178] sm:$0xff] %v3029_v39 }
  0x4b   : > { %903 = vst [vmem:[#allocation2 + $0x198] sm:$0xff] %v3029_v39 }
  0x4c   : > { %904 = vst [vmem:[#allocation2 + $0x1b8] sm:$0xff] %v3029_v39 }
  0x4d   : > { %905 = vst [vmem:[#allocation2 + $0x1d8] sm:$0xff] %v3029_v39 }
  0x4e   : > { %906 = vst [vmem:[#allocation2 + $0x1f8] sm:$0xff] %v3029_v39 }
  0x4f   : > { %907 = vst [vmem:[#allocation2 + $0x218] sm:$0xff] %v3029_v39 }
  0xdf   : > { %v2788_v26 = vpop.trf.xlu0 }
  0xe0   : > { %2505 = vmatmul.msk.bf16.vlgmr.msra.gmra.mxu0 %vm502_vm0, %v2788_v26 }
  0xe7   : > { %v2789_v27 = vpop.trf.xlu0 }
  0xe8   : > { %2513 = vmatmul.msk.bf16.vlgmr.msra.gmra.mxu1 %vm502_vm0, %v2789_v27 }
  0xef   : > { %v2790_v28 = vpop.trf.xlu0 }
  0xf0   : > { %2506 = vmatmul.msk.bf16.gmra.mxu0 %vm502_vm0, %v2790_v28  ;;  %v978_v28 = vadd.f32 %v961_v1, %v928_v19 }
  0xf7   : > { %v2791_v29 = vpop.trf.xlu0 }
  0xf8   : > { %2514 = vmatmul.msk.bf16.gmra.mxu1 %vm502_vm0, %v2791_v29  ;;  %v1012_v29 = vmul.f32 %v3264_v2, %v994_v20 }
  0xff   : > { %v2792_v30 = vpop.trf.xlu0 }
 0x100   : > { %2507 = vmatmul.msk.bf16.gmra.mxu0 %vm502_vm0, %v2792_v30 }
 0x107   : > { %v2793_v31 = vpop.trf.xlu0 }
 0x108   : > { %2515 = vmatmul.msk.bf16.gmra.mxu1 %vm502_vm0, %v2793_v31  ;;  %v3276_v31 = vld [vmem:[#allocation7 + $0x5] ss:$0 sm:$0xff] }
 0x10f   : > { %v2794_v32 = vpop.trf.xlu0 }
 0x110   : > { %2508 = vmatmul.msk.bf16.gmra.mxu0 %vm502_vm0, %v2794_v32 }
 0x117   : > { %v2795_v33 = vpop.trf.xlu0 }
 0x118   : > { %2516 = vmatmul.msk.bf16.gmra.mxu1 %vm502_vm0, %v2795_v33 }
 0x11f   : > { %v2796_v34 = vpop.trf.xlu0 }
 0x120   : > { %2509 = vmatmul.msk.bf16.gmra.mxu0 %vm502_vm0, %v2796_v34 }
 0x127   : > { %v2797_v35 = vpop.trf.xlu0 }
 0x128   : > { %2517 = vmatmul.msk.bf16.gmra.mxu1 %vm502_vm0, %v2797_v35  ;;  %v3280_v35 = vld [vmem:[#allocation7 + $0x9] ss:$0 sm:$0xff] }
 0x12f   : > { %v2798_v36 = vpop.trf.xlu0 }
 0x130   : > { %2510 = vmatmul.msk.bf16.gmra.mxu0 %vm502_vm0, %v2798_v36  ;;  %v3282_v36 = vld [vmem:[#allocation7 + $0x1] ss:$0 sm:$0xff] }
 0x137   : > { %v2799_v37 = vpop.trf.xlu0 }
 0x138   : > { %2518 = vmatmul.msk.bf16.gmra.mxu1 %vm502_vm0, %v2799_v37 }
 0x13f   : > { %v2800_v38 = vpop.trf.xlu0 }
 0x140   : > { %2511 = vmatmul.msk.bf16.gmra.mxu0 %vm502_vm0, %v2800_v38 }
 0x147   : > { %v2801_v40 = vpop.trf.xlu0 }
 0x148   : > { %2519 = vmatmul.msk.bf16.gmra.mxu1 %vm502_vm0, %v2801_v40  ;;  %v3285_v40 = vld [vmem:[#allocation7 + $0x5] ss:$0 sm:$0xff] }
 0x14f   : > { %v2802_v41 = vpop.trf.xlu0 }
 0x150   : > { %2512 = vmatmul.msk.bf16.gmra.mxu0 %vm502_vm0, %v2802_v41 }
 0x157   : > { %v2803_v42 = vpop.trf.xlu0 }
 0x158   : > { %2520 = vmatmul.msk.bf16.gmra.mxu1 %vm502_vm0, %v2803_v42  ;;  %v1028_v42 = vadd.f32 %v1012_v29, %v978_v28 }
 0x15d   : > { %v536_v44 = vpop.f32.mrf.mxu0 }
 0x15e   : > { %v537_v45 = vadd.f32 %v3232_v43, %v536_v44 }
 0x160   : > { %v576_v46 = vadd.f32 3.0, %v537_v45 }
 0x162   : > { %v592_v47 = vmax.f32 %v576_v46, 0.0 }
 0x164   : > { %v608_v48 = vmin.f32 %v592_v47, 6.0 }
 0x165   : > { %v538_v49 = vpop.f32.mrf.mxu0  ;;  %v730_v50 = vpop.f32.mrf.mxu1 }
 0x166   : > { %v624_v51 = vmul.f32 %v608_v48, %v537_v45  ;;  %v539_v52 = vadd.f32 %v3232_v43, %v538_v49  ;;  %v731_v53 = vadd.f32 %v3232_v43, %v730_v50  ;;  %v3290_v45 = vld [vmem:[#allocation7 + $0x6] ss:$0 sm:$0xff] }
 0x168   : > { %v3251_v54 = vmul.f32 0.16666667, %v624_v51  ;;  %v577_v55 = vadd.f32 3.0, %v539_v52  ;;  %v770_v56 = vadd.f32 3.0, %v731_v53 }
 0x16a   : > { %657 = vst [vmem:[#allocation2 + $0x28] sm:$0xff] %v3251_v54  ;;  %v593_v59 = vmax.f32 %v577_v55, 0.0  ;;  %v786_v60 = vmax.f32 %v770_v56, 0.0  ;;  %v963_v47 = vmul.f32 %v3258_v61, %v3251_v54  ;;  %v1112_v48 = vmul.f32 %v3276_v31, %v3251_v54  ;;  %v3299_v55 = vld [vmem:[#allocation7 + $0x8] ss:$0 sm:$0xff] }
 0x16c   : > { %v609_v62 = vmin.f32 %v593_v59, 6.0  ;;  %v802_v63 = vmin.f32 %v786_v60, 6.0 }
 0x16d   : > { %v541_v3 = vpop.f32.mrf.mxu0  ;;  %v732_v4 = vpop.f32.mrf.mxu1 }
 0x16e   : > { %v625_v6 = vmul.f32 %v609_v62, %v539_v52  ;;  %v818_v7 = vmul.f32 %v802_v63, %v731_v53  ;;  %v542_v8 = vadd.f32 %v3232_v43, %v541_v3  ;;  %v733_v9 = vadd.f32 %v3232_v43, %v732_v4 }
 0x170   : > { %v641_v11 = vmul.f32 0.16666667, %v625_v6  ;;  %v834_v12 = vmul.f32 0.16666667, %v818_v7  ;;  %v578_v13 = vadd.f32 3.0, %v542_v8  ;;  %v771_v14 = vadd.f32 3.0, %v733_v9 }
 0x171   : > { %v911_v18 = vld [vmem:[#allocation2 + $0x27] sm:$0xff] }
 0x172   : > { %658 = vst [vmem:[#allocation2 + $0x30] sm:$0xff] %v641_v11  ;;  %v594_v21 = vmax.f32 %v578_v13, 0.0  ;;  %v787_v22 = vmax.f32 %v771_v14, 0.0  ;;  %v1062_v24 = vmul.f32 %v3271_v17, %v911_v18  ;;  %v929_v37 = vmul.f32 %v3254_v57, %v911_v18 }
 0x173   : > { %851 = vst [vmem:[#allocation2 + $0x128] sm:$0xff] %v834_v12  ;;  %v964_v52 = vmul.f32 %v3258_v61, %v641_v11  ;;  %v1113_v53 = vmul.f32 %v3276_v31, %v641_v11  ;;  %v3302_v56 = vmul.f32 %v3280_v35, %v834_v12  ;;  %v1554_v59 = vmul.f32 %v3282_v36, %v834_v12 }
 0x174   : > { %v610_v25 = vmin.f32 %v594_v21, 6.0  ;;  %v803_v30 = vmin.f32 %v787_v22, 6.0  ;;  %v1078_v38 = vadd.f32 %v1062_v24, %v1027_v23  ;;  %v979_v60 = vadd.f32 %v963_v47, %v929_v37 }
 0x175   : > { %v543_v26 = vpop.f32.mrf.mxu0  ;;  %v735_v27 = vpop.f32.mrf.mxu1  ;;  %4568 = vst [vmem:[#allocation19_spill] sm:$0xff] %v3302_v56  ;;  %v3309_v1 = vmul.f32 %v3285_v40, %v834_v12 }
 0x176   : > { %v626_v32 = vmul.f32 %v610_v25, %v542_v8  ;;  %v544_v33 = vadd.f32 %v3232_v43, %v543_v26  ;;  %v736_v34 = vadd.f32 %v3232_v43, %v735_v27  ;;  %v819_v46 = vmul.f32 %v803_v30, %v733_v9  ;;  %v3327_v25 = vld [vmem:[#allocation7 + $0x4] ss:$0 sm:$0xff] }
 0x177   : > { %v1128_v54 = vadd.f32 %v1112_v48, %v1078_v38  ;;  %4569 = vst [vmem:[#allocation20_spill] sm:$0xff] %v3309_v1 }
 0x178   : > { %v3287_v41 = vmul.f32 0.16666667, %v626_v32  ;;  %v579_v50 = vadd.f32 3.0, %v544_v33  ;;  %v772_v51 = vadd.f32 3.0, %v736_v34  ;;  %v835_v8 = vmul.f32 0.16666667, %v819_v46 }
 0x179   : > { %v912_v39 = vld [vmem:[#allocation2 + $0x2f] sm:$0xff] }
 0x17a   : > { %v1063_v44 = vmul.f32 %v3271_v17, %v912_v39  ;;  %v995_v49 = vld [vmem:[#allocation2 + $0x29] sm:$0xff]  ;;  %659 = vst [vmem:[#allocation2 + $0x48] sm:$0xff] %v3287_v41  ;;  %v930_v62 = vmul.f32 %v3254_v57, %v912_v39  ;;  %v996_v63 = vld [vmem:[#allocation2 + $0x31] sm:$0xff]  ;;  %v595_v9 = vmax.f32 %v579_v50, 0.0  ;;  %v788_v10 = vmax.f32 %v772_v51, 0.0 }
 0x17b   : > { %v1209_v0 = vld [vmem:[#allocation2 + $0x127] sm:$0xff]  ;;  %v1013_v5 = vmul.f32 %v3264_v2, %v995_v49  ;;  %v1162_v7 = vmul.f32 %v3290_v45, %v995_v49  ;;  %v1014_v14 = vmul.f32 %v3264_v2, %v996_v63  ;;  %v1163_v12 = vmul.f32 %v3290_v45, %v996_v63  ;;  %852 = vst [vmem:[#allocation2 + $0x130] sm:$0xff] %v835_v8 }
 0x17c   : > { %v1079_v6 = vadd.f32 %v1063_v44, %v1028_v42  ;;  %v3322_v15 = vmul.f32 %v3299_v55, %v1209_v0  ;;  %v1520_v16 = vmul.f32 %v3304_v58, %v1209_v0  ;;  %v611_v18 = vmin.f32 %v595_v9, 6.0 }
 0x17d   : > { %v546_v3 = vpop.f32.mrf.mxu0  ;;  %v737_v4 = vpop.f32.mrf.mxu1  ;;  %v804_v19 = vmin.f32 %v788_v10, 6.0  ;;  %v980_v22 = vadd.f32 %v964_v52, %v930_v62  ;;  %v1029_v23 = vadd.f32 %v1013_v5, %v979_v60  ;;  %v1178_v24 = vadd.f32 %v1162_v7, %v1128_v54  ;;  %v3351_v7 = vld [vmem:[#allocation7 + $0x6] ss:$0 sm:$0xff] }
 0x17e   : > { %v3314_v11 = vadd.f32 %v3232_v43, %v546_v3  ;;  %v3317_v13 = vadd.f32 %v3232_v43, %v737_v4  ;;  %4570 = vst [vmem:[#allocation21_spill] sm:$0xff] %v3322_v15  ;;  %v1114_v27 = vmul.f32 %v3276_v31, %v3287_v41  ;;  %v1129_v28 = vadd.f32 %v1113_v53, %v1079_v6  ;;  %v3341_v53 = vld [vmem:[#allocation7 + $0x2] ss:$0 sm:$0xff]  ;;  %v3345_v4 = vld [vmem:[#allocation7 + $0xa] ss:$0 sm:$0xff] }
 0x17f   : > { %v627_v32 = vmul.f32 %v611_v18, %v544_v33  ;;  %v1264_v37 = vmul.f32 %v3280_v35, %v3287_v41  ;;  %v820_v38 = vmul.f32 %v804_v19, %v736_v34  ;;  %v1570_v51 = vadd.f32 %v1554_v59, %v1520_v16 }
 0x180   : > { %v580_v20 = vadd.f32 3.0, %v3314_v11  ;;  %v773_v21 = vadd.f32 3.0, %v3317_v13  ;;  %v3337_v52 = vmul.f32 %v3327_v25, %v1209_v0  ;;  %v965_v33 = vmul.f32 %v3258_v61, %v3287_v41 }
 0x181   : > { %v913_v26 = vld [vmem:[#allocation2 + $0x47] sm:$0xff]  ;;  %v643_v48 = vmul.f32 0.16666667, %v627_v32  ;;  %v836_v60 = vmul.f32 0.16666667, %v820_v38  ;;  %v1030_v34 = vadd.f32 %v1014_v14, %v980_v22  ;;  %v1179_v59 = vadd.f32 %v1163_v12, %v1129_v28 }
 0x182   : > { %v1064_v29 = vmul.f32 %v3271_v17, %v913_v26  ;;  %v1214_v30 = vmul.f32 %v3299_v55, %v913_v26  ;;  %v596_v39 = vmax.f32 %v580_v20, 0.0  ;;  %v789_v42 = vmax.f32 %v773_v21, 0.0  ;;  %4571 = vst [vmem:[#allocation22_spill] sm:$0xff] %v3337_v52  ;;  %v1210_v63 = vld [vmem:[#allocation2 + $0x12f] sm:$0xff] }
 0x183   : > { %v931_v44 = vmul.f32 %v3254_v57, %v913_v26  ;;  %v1310_v3 = vld [vmem:[#allocation2 + $0x129] sm:$0xff]  ;;  %660 = vst [vmem:[#allocation2 + $0x50] sm:$0xff] %v643_v48  ;;  %v3348_v0 = vmul.f32 %v3280_v35, %v835_v8  ;;  %v1311_v6 = vld [vmem:[#allocation2 + $0x131] sm:$0xff]  ;;  %v1521_v41 = vmul.f32 %v3304_v58, %v1210_v63  ;;  %v1555_v14 = vmul.f32 %v3282_v36, %v835_v8 }
 0x184   : > { %v1080_v46 = vadd.f32 %v1064_v29, %v1029_v23  ;;  %v1230_v47 = vadd.f32 %v1214_v30, %v1178_v24  ;;  %v612_v5 = vmin.f32 %v596_v39, 6.0  ;;  %853 = vst [vmem:[#allocation2 + $0x148] sm:$0xff] %v836_v60  ;;  %v805_v9 = vmin.f32 %v789_v42, 6.0  ;;  %v3372_v24 = vld [vmem:[#allocation7 + $0x9] ss:$0 sm:$0xff] }
 0x185   : > { %v548_v49 = vpop.f32.mrf.mxu0  ;;  %v740_v50 = vpop.f32.mrf.mxu1  ;;  %4572 = vst [vmem:[#allocation23_spill] sm:$0xff] %v3348_v0  ;;  %v981_v10 = vadd.f32 %v965_v33, %v931_v44  ;;  %v3355_v16 = vmul.f32 %v3285_v40, %v835_v8  ;;  %v3361_v12 = vmul.f32 %v3299_v55, %v1210_v63  ;;  %v1604_v19 = vmul.f32 %v3341_v53, %v1310_v3 }
 0x186   : > { %v3343_v54 = vadd.f32 %v1114_v27, %v1080_v46  ;;  %v1280_v62 = vadd.f32 %v1264_v37, %v1230_v47  ;;  %v3358_v18 = vadd.f32 %v3232_v43, %v548_v49  ;;  %v966_v20 = vmul.f32 %v3258_v61, %v643_v48 }
 0x187   : > { %4573 = vst [vmem:[#allocation24_spill] sm:$0xff] %v3355_v16  ;;  %v1115_v21 = vmul.f32 %v3276_v31, %v643_v48  ;;  %v3367_v22 = vmul.f32 %v3345_v4, %v1310_v3  ;;  %v3370_v23 = vmul.f32 %v3345_v4, %v1311_v6  ;;  %v1571_v8 = vadd.f32 %v1555_v14, %v1521_v41 }
 0x188   : > { %4574 = vst [vmem:[#allocation25_spill] sm:$0xff] %v3361_v12  ;;  %v628_v26 = vmul.f32 %v612_v5, %v3314_v11  ;;  %v1605_v27 = vmul.f32 %v3341_v53, %v1311_v6  ;;  %v3377_v28 = vmul.f32 %v3327_v25, %v1210_v63  ;;  %v3380_v29 = vmul.f32 %v3351_v7, %v1310_v3 }
 0x189   : > { %4575 = vst [vmem:[#allocation26_spill] sm:$0xff] %v3367_v22  ;;  %v821_v30 = vmul.f32 %v805_v9, %v3317_v13  ;;  %v3384_v32 = vmul.f32 %v3351_v7, %v1311_v6  ;;  %v1265_v37 = vmul.f32 %v3280_v35, %v643_v48  ;;  %v3390_v39 = vadd.f32 3.0, %v3358_v18 }
 0x18a   : > { %4576 = vst [vmem:[#allocation27_spill] sm:$0xff] %v3370_v23  ;;  %v3387_v38 = vmul.f32 0.16666667, %v628_v26  ;;  %v1620_v44 = vadd.f32 %v1604_v19, %v1570_v51  ;;  %v914_v46 = vld [vmem:[#allocation2 + $0x4f] sm:$0xff]  ;;  %v1556_v49 = vmul.f32 %v3282_v36, %v836_v60  ;;  %v1704_v33 = vmul.f32 %v3285_v40, %v836_v60 }
 0x18b   : > { %4577 = vst [vmem:[#allocation28_spill] sm:$0xff] %v3377_v28  ;;  %v997_v47 = vld [vmem:[#allocation2 + $0x49] sm:$0xff]  ;;  %v837_v13 = vmul.f32 0.16666667, %v821_v30  ;;  %v3394_v63 = vadd.f32 %v1605_v27, %v1571_v8  ;;  %v932_v3 = vmul.f32 %v3254_v57, %v914_v46  ;;  %v1065_v48 = vmul.f32 %v3271_v17, %v914_v46  ;;  %v998_v51 = vld [vmem:[#allocation2 + $0x51] sm:$0xff] }
 0x18c   : > { %4578 = vst [vmem:[#allocation29_spill] sm:$0xff] %v3380_v29  ;;  %v1504_v5 = vld [vmem:[#allocation2 + $0x147] sm:$0xff]  ;;  %v3399_v6 = vmul.f32 %v3372_v24, %v836_v60  ;;  %v1015_v41 = vmul.f32 %v3264_v2, %v997_v47  ;;  %v1215_v9 = vmul.f32 %v3299_v55, %v914_v46  ;;  %v1314_v14 = vmul.f32 %v3345_v4, %v997_v47  ;;  %v3409_v30 = vld [vmem:[#allocation7 + $0x8] ss:$0 sm:$0xff]  ;;  %v3415_v46 = vld [vmem:[%s4529_s4] ss:$0 sm:$0xff] }
 0x18d   : > { %4579 = vst [vmem:[#allocation30_spill] sm:$0xff] %v3384_v32  ;;  %v551_v11 = vpop.f32.mrf.mxu0  ;;  %v742_v42 = vpop.f32.mrf.mxu1  ;;  %v3406_v19 = vadd.f32 %v3232_v43, %v740_v50  ;;  %v982_v8 = vadd.f32 %v966_v20, %v932_v3  ;;  %v1081_v26 = vadd.f32 %v1065_v48, %v1030_v34  ;;  %v1164_v27 = vmul.f32 %v3290_v45, %v997_v47 }
 0x18e   : > { %4580 = vst [vmem:[#allocation31_spill] sm:$0xff] %v3399_v6  ;;  %v597_v60 = vmax.f32 %v3390_v39, 0.0  ;;  %v1231_v6 = vadd.f32 %v1215_v9, %v1179_v59  ;;  %v1330_v32 = vadd.f32 %v1314_v14, %v1280_v62  ;;  %v1522_v23 = vmul.f32 %v3304_v58, %v1504_v5 }
 0x18f   : > { %661 = vst [vmem:[#allocation2 + $0x68] sm:$0xff] %v3387_v38  ;;  %v3419_v50 = vadd.f32 %v3232_v43, %v551_v11  ;;  %v1016_v34 = vmul.f32 %v3264_v2, %v998_v51  ;;  %v1131_v20 = vadd.f32 %v1115_v21, %v1081_v26  ;;  %v1654_v47 = vmul.f32 %v3327_v25, %v1504_v5 }
 0x190   : > { %854 = vst [vmem:[#allocation2 + $0x150] sm:$0xff] %v837_v13  ;;  %v3424_v3 = vadd.f32 %v3232_v43, %v742_v42  ;;  %v1031_v59 = vadd.f32 %v1015_v41, %v981_v10  ;;  %v1165_v62 = vmul.f32 %v3290_v45, %v998_v51  ;;  %v1281_v39 = vadd.f32 %v1265_v37, %v1231_v6 }
 0x191   : > { %4581 = vst [vmem:[#allocation32_spill] sm:$0xff] %v3415_v46  ;;  %v1315_v48 = vmul.f32 %v3345_v4, %v998_v51  ;;  %v3428_v9 = vadd.f32 %v1016_v34, %v982_v8  ;;  %v1180_v14 = vadd.f32 %v1164_v27, %v3343_v54  ;;  %v1670_v11 = vadd.f32 %v1654_v47, %v1620_v44 }
 0x192   : > { %v3432_v22 = vmul.f32 %v3409_v30, %v1504_v5  ;;  %v3435_v42 = vadd.f32 %v3415_v46, %v1330_v32  ;;  %v1572_v10 = vadd.f32 %v1556_v49, %v1522_v23  ;;  %v967_v37 = vmul.f32 %v3258_v61, %v3387_v38 }
 0x193   : > { %v1331_v29 = vadd.f32 %v1315_v48, %v1281_v39  ;;  %v3439_v6 = vadd.f32 %v1165_v62, %v1131_v20  ;;  %v1720_v51 = vadd.f32 %v1704_v33, %v1670_v11  ;;  %v1116_v32 = vmul.f32 %v3276_v31, %v3387_v38 }
 0x194   : > { %4582 = vst [vmem:[#allocation33_spill] sm:$0xff] %v3432_v22  ;;  %v1266_v33 = vmul.f32 %v3280_v35, %v3387_v38  ;;  %v1557_v48 = vmul.f32 %v3282_v36, %v837_v13  ;;  %v1705_v11 = vmul.f32 %v3285_v40, %v837_v13  ;;  %v613_v16 = vmin.f32 %v597_v60, 6.0 }
 0x195   : > { %v553_v21 = vpop.f32.mrf.mxu0  ;;  %v745_v26 = vpop.f32.mrf.mxu1  ;;  %4583 = vst [vmem:[#allocation34_spill] sm:$0xff] %v3435_v42  ;;  %v3452_v39 = vadd.f32 %v3415_v46, %v1331_v29 }
 0x196   : > { %v915_v41 = vld [vmem:[#allocation2 + $0x67] sm:$0xff] }
 0x197   : > { %v1066_v54 = vmul.f32 %v3271_v17, %v915_v41  ;;  %v1216_v44 = vmul.f32 %v3299_v55, %v915_v41  ;;  %v1505_v5 = vld [vmem:[#allocation2 + $0x14f] sm:$0xff]  ;;  %v933_v27 = vmul.f32 %v3254_v57, %v915_v41  ;;  %4584 = vst [vmem:[#allocation35_spill] sm:$0xff] %v3452_v39  ;;  %v3457_v41 = vmul.f32 %v3372_v24, %v837_v13 }
 0x198   : > { %v1588_v8 = vld [vmem:[#allocation2 + $0x149] sm:$0xff]  ;;  %v1523_v23 = vmul.f32 %v3304_v58, %v1505_v5  ;;  %v1589_v49 = vld [vmem:[#allocation2 + $0x151] sm:$0xff]  ;;  %v1655_v62 = vmul.f32 %v3327_v25, %v1505_v5  ;;  %v774_v13 = vadd.f32 3.0, %v3406_v19 }
 0x199   : > { %v1606_v34 = vmul.f32 %v3341_v53, %v1588_v8  ;;  %v1082_v47 = vadd.f32 %v1066_v54, %v1031_v59  ;;  %v1232_v20 = vadd.f32 %v1216_v44, %v1180_v14  ;;  %4585 = vst [vmem:[#allocation36_spill] sm:$0xff] %v3457_v41  ;;  %v1607_v59 = vmul.f32 %v3341_v53, %v1589_v49 }
 0x19a   : > { %v1671_v38 = vadd.f32 %v1655_v62, %v3394_v63  ;;  %v3465_v14 = vadd.f32 %v967_v37, %v933_v27  ;;  %v1573_v54 = vadd.f32 %v1557_v48, %v1523_v23  ;;  %v1754_v44 = vmul.f32 %v3351_v7, %v1588_v8 }
 0x19b   : > { %v3459_v22 = vadd.f32 %v1116_v32, %v1082_v47  ;;  %v3461_v42 = vadd.f32 %v1266_v33, %v1232_v20  ;;  %v3467_v29 = vadd.f32 %v1606_v34, %v1572_v10  ;;  %v582_v32 = vadd.f32 3.0, %v3419_v50 }
 0x19c   : > { %v1721_v39 = vadd.f32 %v1705_v11, %v1671_v38  ;;  %v775_v20 = vadd.f32 3.0, %v3424_v3  ;;  %v554_v33 = vadd.f32 %v3232_v43, %v553_v21  ;;  %v746_v63 = vadd.f32 %v3232_v43, %v745_v26 }
 0x19d   : > { %v556_v47 = vpop.f32.mrf.mxu0  ;;  %v1755_v10 = vmul.f32 %v3351_v7, %v1589_v49  ;;  %v629_v27 = vmul.f32 %v613_v16, %v3358_v18  ;;  %v790_v8 = vmax.f32 %v774_v13, 0.0  ;;  %v598_v23 = vmax.f32 %v582_v32, 0.0  ;;  %v747_v60 = vpop.f32.mrf.mxu1 }
 0x19e   : > { %v557_v37 = vadd.f32 %v3232_v43, %v556_v47  ;;  %v791_v34 = vmax.f32 %v775_v20, 0.0  ;;  %v583_v62 = vadd.f32 3.0, %v554_v33  ;;  %v776_v48 = vadd.f32 3.0, %v746_v63 }
 0x19f   : > { %v3479_v38 = vmul.f32 %v3409_v30, %v1505_v5  ;;  %v645_v41 = vmul.f32 0.16666667, %v629_v27  ;;  %v806_v21 = vmin.f32 %v790_v8, 6.0  ;;  %v614_v0 = vmin.f32 %v598_v23, 6.0 }
 0x1a0   : > { %v584_v11 = vadd.f32 3.0, %v557_v37  ;;  %v807_v26 = vmin.f32 %v791_v34, 6.0  ;;  %v599_v56 = vmax.f32 %v583_v62, 0.0  ;;  %v792_v47 = vmax.f32 %v776_v48, 0.0 }
 0x1a1   : > { %4586 = vst [vmem:[#allocation37_spill] sm:$0xff] %v3479_v38  ;;  %v3481_v49 = vadd.f32 %v1607_v59, %v1573_v54  ;;  %v3483_v16 = vadd.f32 %v1754_v44, %v1720_v51  ;;  %v822_v18 = vmul.f32 %v806_v21, %v3406_v19  ;;  %v3487_v13 = vadd.f32 %v3232_v43, %v747_v60 }
 0x1a2   : > { %v600_v12 = vmax.f32 %v584_v11, 0.0  ;;  %662 = vst [vmem:[#allocation2 + $0x70] sm:$0xff] %v645_v41  ;;  %v630_v5 = vmul.f32 %v614_v0, %v3419_v50  ;;  %v823_v32 = vmul.f32 %v807_v26, %v3424_v3  ;;  %v615_v20 = vmin.f32 %v599_v56, 6.0 }
 0x1a3   : > { %4587 = vst [vmem:[#allocation38_spill] sm:$0xff] %v3487_v13  ;;  %v808_v27 = vmin.f32 %v792_v47, 6.0  ;;  %v3491_v8 = vadd.f32 %v1755_v10, %v1721_v39  ;;  %v968_v23 = vmul.f32 %v3258_v61, %v645_v41  ;;  %v838_v59 = vmul.f32 0.16666667, %v822_v18 }
 0x1a4   : > { %v616_v54 = vmin.f32 %v600_v12, 6.0  ;;  %v646_v51 = vmul.f32 0.16666667, %v630_v5  ;;  %v839_v44 = vmul.f32 0.16666667, %v823_v32  ;;  %v631_v34 = vmul.f32 %v615_v20, %v554_v33 }
 0x1a5   : > { %v824_v62 = vmul.f32 %v808_v27, %v746_v63  ;;  %v558_v19 = vpop.f32.mrf.mxu0  ;;  %v1117_v60 = vmul.f32 %v3276_v31, %v645_v41  ;;  %v1267_v48 = vmul.f32 %v3280_v35, %v645_v41  ;;  %855 = vst [vmem:[#allocation2 + $0x168] sm:$0xff] %v838_v59  ;;  %v3497_v56 = vadd.f32 3.0, %v3487_v13  ;;  %v750_v10 = vpop.f32.mrf.mxu1 }
 0x1a6   : > { %v632_v0 = vmul.f32 %v616_v54, %v557_v37  ;;  %v3500_v50 = vmul.f32 %v3282_v36, %v838_v59  ;;  %v1706_v3 = vmul.f32 %v3285_v40, %v838_v59  ;;  %v3504_v12 = vmul.f32 %v3372_v24, %v838_v59  ;;  %663 = vst [vmem:[#allocation2 + $0x88] sm:$0xff] %v646_v51 }
 0x1a7   : > { %v3507_v39 = vmul.f32 %v3258_v61, %v646_v51  ;;  %v1118_v33 = vmul.f32 %v3276_v31, %v646_v51  ;;  %v3511_v41 = vmul.f32 %v3280_v35, %v646_v51  ;;  %856 = vst [vmem:[#allocation2 + $0x170] sm:$0xff] %v839_v44  ;;  %v3513_v63 = vmul.f32 0.16666667, %v631_v34 }
 0x1a8   : > { %v3515_v37 = vmul.f32 0.16666667, %v824_v62  ;;  %v1559_v47 = vmul.f32 %v3282_v36, %v839_v44  ;;  %v3519_v18 = vmul.f32 %v3285_v40, %v839_v44  ;;  %v3522_v5 = vmul.f32 %v3372_v24, %v839_v44 }
 0x1a9   : > { %v916_v11 = vld [vmem:[#allocation2 + $0x6f] sm:$0xff]  ;;  %v3524_v32 = vmul.f32 0.16666667, %v632_v0  ;;  %664 = vst [vmem:[#allocation2 + $0x90] sm:$0xff] %v3513_v63  ;;  %v3536_v44 = vadd.f32 %v3232_v43, %v558_v19  ;;  %v3542_v54 = vadd.f32 %v3232_v43, %v750_v10 }
 0x1aa   : > { %v999_v21 = vld [vmem:[#allocation2 + $0x69] sm:$0xff]  ;;  %v1000_v26 = vld [vmem:[#allocation2 + $0x71] sm:$0xff]  ;;  %v934_v20 = vmul.f32 %v3254_v57, %v916_v11  ;;  %v1067_v59 = vmul.f32 %v3271_v17, %v916_v11  ;;  %v1217_v34 = vmul.f32 %v3299_v55, %v916_v11  ;;  %857 = vst [vmem:[#allocation2 + $0x188] sm:$0xff] %v3515_v37 }
 0x1ab   : > { %v1017_v27 = vmul.f32 %v3264_v2, %v999_v21  ;;  %v1166_v51 = vmul.f32 %v3290_v45, %v999_v21  ;;  %v1316_v62 = vmul.f32 %v3345_v4, %v999_v21  ;;  %v1018_v38 = vmul.f32 %v3264_v2, %v1000_v26  ;;  %665 = vst [vmem:[#allocation2 + $0xa8] sm:$0xff] %v3524_v32 }
 0x1ac   : > { %v984_v0 = vadd.f32 %v968_v23, %v934_v20  ;;  %v1083_v1 = vadd.f32 %v1067_v59, %v3428_v9  ;;  %v1167_v11 = vmul.f32 %v3290_v45, %v1000_v26  ;;  %v1233_v21 = vadd.f32 %v1217_v34, %v3439_v6  ;;  %v1506_v19 = vld [vmem:[#allocation2 + $0x167] sm:$0xff] }
 0x1ad   : > { %v1033_v28 = vadd.f32 %v1017_v27, %v3465_v14  ;;  %v1317_v52 = vmul.f32 %v3345_v4, %v1000_v26  ;;  %v1182_v23 = vadd.f32 %v1166_v51, %v3459_v22  ;;  %v3550_v20 = vadd.f32 %v1316_v62, %v3461_v42  ;;  %v917_v59 = vld [vmem:[#allocation2 + $0x87] sm:$0xff]  ;;  %v3556_v26 = vpop.f32.mrf.mxu0 }
 0x1ae   : > { %v1133_v15 = vadd.f32 %v1117_v60, %v1083_v1  ;;  %v1656_v9 = vmul.f32 %v3327_v25, %v1506_v19  ;;  %v1283_v10 = vadd.f32 %v1267_v48, %v1233_v21  ;;  %v1524_v46 = vmul.f32 %v3304_v58, %v1506_v19  ;;  %v1507_v6 = vld [vmem:[#allocation2 + $0x16f] sm:$0xff] }
 0x1af   : > { %4588 = vst [vmem:[#allocation39_spill] sm:$0xff] %v3550_v20  ;;  %v1805_v14 = vmul.f32 %v3409_v30, %v1506_v19  ;;  %v1068_v27 = vmul.f32 %v3271_v17, %v917_v59  ;;  %v1590_v34 = vld [vmem:[#allocation2 + $0x169] sm:$0xff]  ;;  %v1034_v1 = vadd.f32 %v1018_v38, %v984_v0  ;;  %v1218_v42 = vmul.f32 %v3299_v55, %v917_v59  ;;  %v1591_v43 = vld [vmem:[#allocation2 + $0x171] sm:$0xff]  ;;  %v3566_v0 = vpop.f32.mrf.mxu1 }
 0x1b0   : > { %v1672_v22 = vadd.f32 %v1656_v9, %v3467_v29  ;;  %v970_v60 = vmul.f32 %v3258_v61, %v3513_v63  ;;  %v1183_v51 = vadd.f32 %v1167_v11, %v1133_v15  ;;  %v935_v62 = vmul.f32 %v3254_v57, %v917_v59  ;;  %v3568_v29 = vld [vmem:[#allocation7 + $0xa] ss:$0 sm:$0xff]  ;;  %v918_v59 = vld [vmem:[#allocation2 + $0x8f] sm:$0xff] }
 0x1b1   : > { %v1821_v48 = vadd.f32 %v1805_v14, %v3483_v16  ;;  %v1084_v21 = vadd.f32 %v1068_v27, %v1033_v28  ;;  %v1234_v20 = vadd.f32 %v1218_v42, %v1182_v23  ;;  %v1525_v13 = vmul.f32 %v3304_v58, %v1507_v6  ;;  %v1001_v27 = vld [vmem:[#allocation2 + $0x89] sm:$0xff] }
 0x1b2   : > { %v1722_v19 = vadd.f32 %v1706_v3, %v1672_v22  ;;  %v1608_v38 = vmul.f32 %v3341_v53, %v1590_v34  ;;  %v1574_v9 = vadd.f32 %v3500_v50, %v1524_v46  ;;  %v1657_v16 = vmul.f32 %v3327_v25, %v1507_v6 }
 0x1b3   : > { %v1871_v15 = vadd.f32 %v3504_v12, %v1821_v48  ;;  %v1134_v11 = vadd.f32 %v1118_v33, %v1084_v21  ;;  %v3573_v28 = vadd.f32 %v1317_v52, %v1283_v10  ;;  %v3576_v3 = vadd.f32 %v3511_v41, %v1234_v20  ;;  %v1002_v20 = vld [vmem:[#allocation2 + $0x91] sm:$0xff] }
 0x1b4   : > { %v1575_v23 = vadd.f32 %v1559_v47, %v1525_v13  ;;  %v1756_v14 = vmul.f32 %v3351_v7, %v1590_v34  ;;  %v1609_v22 = vmul.f32 %v3341_v53, %v1591_v43  ;;  %v1673_v42 = vadd.f32 %v1657_v16, %v3481_v49 }
 0x1b5   : > { %4589 = vst [vmem:[#allocation40_spill] sm:$0xff] %v3573_v28  ;;  %v1806_v46 = vmul.f32 %v3409_v30, %v1507_v6  ;;  %v1905_v50 = vmul.f32 %v3568_v29, %v1590_v34  ;;  %v985_v12 = vadd.f32 %v3507_v39, %v935_v62  ;;  %v1624_v33 = vadd.f32 %v1608_v38, %v1574_v9  ;;  %v563_v16 = vpop.f32.mrf.mxu0 }
 0x1b6   : > { %4590 = vst [vmem:[#allocation41_spill] sm:$0xff] %v3576_v3  ;;  %v1757_v52 = vmul.f32 %v3351_v7, %v1591_v43  ;;  %v936_v41 = vmul.f32 %v3254_v57, %v918_v59  ;;  %v3586_v13 = vadd.f32 %v1609_v22, %v1575_v23  ;;  %v1723_v47 = vadd.f32 %v3519_v18, %v1673_v42 }
 0x1b7   : > { %v1822_v10 = vadd.f32 %v1806_v46, %v3491_v8  ;;  %v1019_v49 = vmul.f32 %v3264_v2, %v1001_v27  ;;  %v1772_v48 = vadd.f32 %v1756_v14, %v1722_v19  ;;  %v1906_v6 = vmul.f32 %v3568_v29, %v1591_v43 }
 0x1b8   : > { %v986_v34 = vadd.f32 %v970_v60, %v936_v41  ;;  %v1069_v39 = vmul.f32 %v3271_v17, %v918_v59  ;;  %v3594_v21 = vadd.f32 %v1905_v50, %v1871_v15  ;;  %v1020_v38 = vmul.f32 %v3264_v2, %v1002_v20  ;;  %v1508_v60 = vld [vmem:[#allocation2 + $0x187] sm:$0xff] }
 0x1b9   : > { %v1872_v62 = vadd.f32 %v3522_v5, %v1822_v10  ;;  %v1168_v9 = vmul.f32 %v3290_v45, %v1001_v27  ;;  %v3598_v18 = vadd.f32 %v1757_v52, %v1723_v47  ;;  %v1119_v19 = vmul.f32 %v3276_v31, %v3513_v63  ;;  %v919_v50 = vld [vmem:[#allocation2 + $0xa7] sm:$0xff]  ;;  %v755_v52 = vpop.f32.mrf.mxu1 }
 0x1ba   : > { %4591 = vst [vmem:[#allocation42_spill] sm:$0xff] %v3594_v21  ;;  %v1085_v8 = vadd.f32 %v1069_v39, %v1034_v1  ;;  %v1219_v43 = vmul.f32 %v3299_v55, %v918_v59  ;;  %v1035_v14 = vadd.f32 %v1019_v49, %v985_v12  ;;  %v3605_v5 = vadd.f32 %v1020_v38, %v986_v34 }
 0x1bb   : > { %v3603_v23 = vadd.f32 %v1906_v6, %v1872_v62  ;;  %v1169_v15 = vmul.f32 %v3290_v45, %v1002_v20  ;;  %v1184_v42 = vadd.f32 %v1168_v9, %v1134_v11  ;;  %v3610_v46 = vmul.f32 %v3280_v35, %v3513_v63 }
 0x1bc   : > { %v1135_v22 = vadd.f32 %v1119_v19, %v1085_v8  ;;  %v3613_v1 = vmul.f32 %v3345_v4, %v1001_v27  ;;  %v3615_v59 = vadd.f32 %v1219_v43, %v1183_v51  ;;  %v3618_v41 = vmul.f32 %v3345_v4, %v1002_v20 }
 0x1bd   : > { %4592 = vst [vmem:[#allocation43_spill] sm:$0xff] %v3603_v23  ;;  %v1658_v12 = vmul.f32 %v3327_v25, %v1508_v60  ;;  %v1807_v47 = vmul.f32 %v3409_v30, %v1508_v60  ;;  %v1526_v11 = vmul.f32 %v3304_v58, %v1508_v60  ;;  %v1560_v63 = vmul.f32 %v3282_v36, %v3515_v37  ;;  %v4600_v23 = vld [vmem:[#allocation38_spill] sm:$0xff] }
 0x1be   : > { %4593 = vst [vmem:[#allocation44_spill] sm:$0xff] %v3610_v46  ;;  %v1708_v27 = vmul.f32 %v3285_v40, %v3515_v37  ;;  %v1857_v10 = vmul.f32 %v3372_v24, %v3515_v37  ;;  %v937_v20 = vmul.f32 %v3254_v57, %v919_v50  ;;  %v1070_v6 = vmul.f32 %v3271_v17, %v919_v50 }
 0x1bf   : > { %4594 = vst [vmem:[#allocation45_spill] sm:$0xff] %v3613_v1  ;;  %v1674_v51 = vadd.f32 %v1658_v12, %v1624_v33  ;;  %v1823_v49 = vadd.f32 %v1807_v47, %v1772_v48  ;;  %v971_v34 = vmul.f32 %v3258_v61, %v3524_v32  ;;  %v1120_v39 = vmul.f32 %v3276_v31, %v3524_v32  ;;  %v4599_v12 = vld [vmem:[#allocation18_spill] sm:$0xff] }
 0x1c0   : > { %4595 = vst [vmem:[#allocation46_spill] sm:$0xff] %v3615_v59  ;;  %v1220_v62 = vmul.f32 %v3299_v55, %v919_v50  ;;  %v1270_v38 = vmul.f32 %v3280_v35, %v3524_v32  ;;  %v1086_v33 = vadd.f32 %v1070_v6, %v1035_v14  ;;  %v4598_v48 = vmax.f32 %v3497_v56, 0.0 }
 0x1c1   : > { %4596 = vst [vmem:[#allocation47_spill] sm:$0xff] %v3618_v41  ;;  %v3638_v9 = vadd.f32 %v1708_v27, %v1674_v51  ;;  %v3640_v37 = vadd.f32 %v1857_v10, %v1823_v49  ;;  %v585_v43 = vadd.f32 3.0, %v3536_v44  ;;  %v778_v60 = vadd.f32 3.0, %v3542_v54  ;;  %v566_v10 = vpop.f32.mrf.mxu0 }
 0x1c2   : > { %v809_v8 = vmin.f32 %v4598_v48, 6.0  ;;  %v1236_v19 = vadd.f32 %v1220_v62, %v1184_v42  ;;  %v562_v47 = vadd.f32 %v4599_v12, %v3556_v26  ;;  %v3648_v50 = vadd.f32 %v1120_v39, %v1086_v33 }
 0x1c3   : > { %4597 = vst [vmem:[#allocation48_spill] sm:$0xff] %v3640_v37  ;;  %v753_v27 = vadd.f32 %v4599_v12, %v3566_v0  ;;  %v564_v14 = vadd.f32 %v4599_v12, %v563_v16  ;;  %v601_v42 = vmax.f32 %v585_v43, 0.0  ;;  %v794_v51 = vmax.f32 %v778_v60, 0.0  ;;  %v757_v0 = vpop.f32.mrf.mxu1 }
 0x1c4   : > { %v825_v32 = vmul.f32 %v809_v8, %v4600_v23  ;;  %v3654_v56 = vadd.f32 %v1270_v38, %v1236_v19  ;;  %v586_v49 = vadd.f32 3.0, %v562_v47  ;;  %v3657_v26 = vadd.f32 %v4599_v12, %v755_v52 }
 0x1c5   : > { %v779_v62 = vadd.f32 3.0, %v753_v27  ;;  %v587_v48 = vadd.f32 3.0, %v564_v14  ;;  %v617_v39 = vmin.f32 %v601_v42, 6.0  ;;  %v810_v33 = vmin.f32 %v794_v51, 6.0 }
 0x1c6   : > { %v841_v6 = vmul.f32 0.16666667, %v825_v32  ;;  %v602_v23 = vmax.f32 %v586_v49, 0.0  ;;  %v3660_v8 = vadd.f32 %v4599_v12, %v566_v10  ;;  %v3662_v16 = vadd.f32 %v1169_v15, %v1135_v22 }
 0x1c7   : > { %v1576_v38 = vadd.f32 %v1560_v63, %v1526_v11  ;;  %v3664_v19 = vadd.f32 %v971_v34, %v937_v20  ;;  %v795_v43 = vmax.f32 %v779_v62, 0.0  ;;  %v633_v60 = vmul.f32 %v617_v39, %v3536_v44 }
 0x1c8   : > { %858 = vst [vmem:[#allocation2 + $0x190] sm:$0xff] %v841_v6  ;;  %v826_v32 = vmul.f32 %v810_v33, %v3542_v54  ;;  %v618_v52 = vmin.f32 %v602_v23, 6.0  ;;  %v603_v21 = vmax.f32 %v587_v48, 0.0  ;;  %v780_v51 = vadd.f32 3.0, %v3657_v26 }
 0x1c9   : > { %v811_v42 = vmin.f32 %v795_v43, 6.0  ;;  %v588_v10 = vadd.f32 3.0, %v3660_v8  ;;  %v3671_v49 = vadd.f32 %v4599_v12, %v757_v0  ;;  %v649_v15 = vmul.f32 0.16666667, %v633_v60 }
 0x1ca   : > { %v842_v22 = vmul.f32 0.16666667, %v826_v32  ;;  %v634_v11 = vmul.f32 %v618_v52, %v562_v47  ;;  %v619_v63 = vmin.f32 %v603_v21, 6.0  ;;  %v1561_v20 = vmul.f32 %v3282_v36, %v841_v6 }
 0x1cb   : > { %v1709_v44 = vmul.f32 %v3285_v40, %v841_v6  ;;  %v827_v34 = vmul.f32 %v811_v42, %v753_v27  ;;  %v796_v54 = vmax.f32 %v780_v51, 0.0  ;;  %v3676_v62 = vmul.f32 %v3372_v24, %v841_v6  ;;  %666 = vst [vmem:[#allocation2 + $0xb0] sm:$0xff] %v649_v15 }
 0x1cc   : > { %v972_v48 = vmul.f32 %v3258_v61, %v649_v15  ;;  %v604_v39 = vmax.f32 %v588_v10, 0.0  ;;  %v3680_v12 = vadd.f32 3.0, %v3671_v49  ;;  %v1121_v33 = vmul.f32 %v3276_v31, %v649_v15  ;;  %859 = vst [vmem:[#allocation2 + $0x1a8] sm:$0xff] %v842_v22 }
 0x1cd   : > { %4601 = vst [vmem:[#allocation18_spill] sm:$0xff] %v3676_v62  ;;  %v1271_v21 = vmul.f32 %v3280_v35, %v649_v15  ;;  %v650_v47 = vmul.f32 0.16666667, %v634_v11  ;;  %v3684_v23 = vmul.f32 0.16666667, %v827_v34  ;;  %v3687_v6 = vmul.f32 %v3282_v36, %v842_v22 }
 0x1ce   : > { %v3690_v60 = vmul.f32 %v3285_v40, %v842_v22  ;;  %v3693_v32 = vmul.f32 %v3372_v24, %v842_v22  ;;  %v3695_v52 = vmul.f32 %v619_v63, %v564_v14  ;;  %v3700_v15 = vmin.f32 %v796_v54, 6.0  ;;  %v3708_v22 = vpop.f32.mrf.mxu0 }
 0x1cf   : > { %v1509_v27 = vld [vmem:[#allocation2 + $0x18f] sm:$0xff]  ;;  %667 = vst [vmem:[#allocation2 + $0xc8] sm:$0xff] %v650_v47  ;;  %v3705_v37 = vmin.f32 %v604_v39, 6.0 }
 0x1d0   : > { %v1592_v0 = vld [vmem:[#allocation2 + $0x189] sm:$0xff]  ;;  %v1593_v43 = vld [vmem:[#allocation2 + $0x191] sm:$0xff]  ;;  %4602 = vst [vmem:[#allocation38_spill] sm:$0xff] %v3693_v32  ;;  %v1527_v42 = vmul.f32 %v3304_v58, %v1509_v27  ;;  %v1659_v10 = vmul.f32 %v3327_v25, %v1509_v27  ;;  %v1808_v34 = vmul.f32 %v3409_v30, %v1509_v27 }
 0x1d1   : > { %v1610_v51 = vmul.f32 %v3341_v53, %v1592_v0  ;;  %v1758_v11 = vmul.f32 %v3351_v7, %v1592_v0  ;;  %860 = vst [vmem:[#allocation2 + $0x1b0] sm:$0xff] %v3684_v23  ;;  %v1611_v32 = vmul.f32 %v3341_v53, %v1593_v43  ;;  %v3713_v54 = vmul.f32 %v3351_v7, %v1593_v43 }
 0x1d2   : > { %v1577_v63 = vadd.f32 %v1561_v20, %v1527_v42  ;;  %v1675_v62 = vadd.f32 %v1659_v10, %v3586_v13  ;;  %v3719_v27 = vmul.f32 %v3568_v29, %v1592_v0  ;;  %v3722_v39 = vmul.f32 %v3568_v29, %v1593_v43  ;;  %v920_v42 = vld [vmem:[#allocation2 + $0xaf] sm:$0xff] }
 0x1d3   : > { %4603 = vst [vmem:[#allocation49_spill] sm:$0xff] %v3713_v54  ;;  %v1626_v28 = vadd.f32 %v1610_v51, %v1576_v38  ;;  %v3716_v41 = vadd.f32 %v1758_v11, %v3638_v9  ;;  %v3727_v20 = vadd.f32 %v1808_v34, %v3598_v18  ;;  %v1003_v13 = vld [vmem:[#allocation2 + $0xa9] sm:$0xff]  ;;  %v1004_v10 = vld [vmem:[#allocation2 + $0xb1] sm:$0xff]  ;;  %v973_v54 = vmul.f32 %v3258_v61, %v650_v47 }
 0x1d4   : > { %4605 = vst [vmem:[#allocation51_spill] sm:$0xff] %v3719_v27  ;;  %v3724_v14 = vadd.f32 %v1709_v44, %v1675_v62  ;;  %v1122_v38 = vmul.f32 %v3276_v31, %v650_v47  ;;  %v1627_v9 = vadd.f32 %v1611_v32, %v1577_v63  ;;  %v938_v51 = vmul.f32 %v3254_v57, %v920_v42  ;;  %v1510_v11 = vld [vmem:[#allocation2 + $0x1a7] sm:$0xff]  ;;  %v3734_v44 = vpop.f32.mrf.mxu1 }
 0x1d5   : > { %4604 = vst [vmem:[#allocation50_spill] sm:$0xff] %v3716_v41  ;;  %v1021_v0 = vmul.f32 %v3264_v2, %v1003_v13  ;;  %v1071_v43 = vmul.f32 %v3271_v17, %v920_v42  ;;  %v1170_v18 = vmul.f32 %v3290_v45, %v1003_v13  ;;  %v1221_v62 = vmul.f32 %v3299_v55, %v920_v42 }
 0x1d6   : > { %4606 = vst [vmem:[#allocation52_spill] sm:$0xff] %v3722_v39  ;;  %v1320_v34 = vmul.f32 %v3345_v4, %v1003_v13  ;;  %v1272_v61 = vmul.f32 %v3280_v35, %v650_v47  ;;  %v1022_v31 = vmul.f32 %v3264_v2, %v1004_v10  ;;  %v921_v32 = vld [vmem:[#allocation2 + $0xc7] sm:$0xff]  ;;  %v1563_v63 = vmul.f32 %v3282_v36, %v3684_v23 }
 0x1d7   : > { %4607 = vst [vmem:[#allocation53_spill] sm:$0xff] %v3724_v14  ;;  %v988_v14 = vadd.f32 %v972_v48, %v938_v51  ;;  %v1087_v57 = vadd.f32 %v1071_v43, %v3605_v5  ;;  %v1037_v41 = vadd.f32 %v1021_v0, %v3664_v19  ;;  %v1171_v39 = vmul.f32 %v3290_v45, %v1004_v10  ;;  %v3754_v19 = vld [vmem:[#allocation7] ss:$0 sm:$0xff]  ;;  %v571_v0 = vpop.f32.mrf.mxu0 }
 0x1d8   : > { %4608 = vst [vmem:[#allocation54_spill] sm:$0xff] %v3727_v20  ;;  %v1237_v27 = vadd.f32 %v1221_v62, %v3662_v16  ;;  %v1528_v42 = vmul.f32 %v3304_v58, %v1510_v11  ;;  %v1511_v13 = vld [vmem:[#allocation2 + $0x1af] sm:$0xff]  ;;  %v1186_v35 = vadd.f32 %v1170_v18, %v3648_v50  ;;  %v1321_v2 = vmul.f32 %v3345_v4, %v1004_v10 }
 0x1d9   : > { %v1137_v20 = vadd.f32 %v1121_v33, %v1087_v57  ;;  %v1660_v5 = vmul.f32 %v3327_v25, %v1510_v11  ;;  %v1594_v48 = vld [vmem:[#allocation2 + $0x1a9] sm:$0xff]  ;;  %v3752_v36 = vadd.f32 %v1320_v34, %v3654_v56  ;;  %v939_v45 = vmul.f32 %v3754_v19, %v921_v32 }
 0x1da   : > { %v1287_v47 = vadd.f32 %v1271_v21, %v1237_v27  ;;  %v1072_v16 = vmul.f32 %v3271_v17, %v921_v32  ;;  %v3758_v51 = vadd.f32 %v1022_v31, %v988_v14  ;;  %v1222_v50 = vmul.f32 %v3299_v55, %v921_v32  ;;  %v1595_v27 = vld [vmem:[#allocation2 + $0x1b1] sm:$0xff] }
 0x1db   : > { %4609 = vst [vmem:[#allocation55_spill] sm:$0xff] %v3752_v36  ;;  %v1676_v33 = vadd.f32 %v1660_v5, %v1626_v28  ;;  %v1529_v10 = vmul.f32 %v3304_v58, %v1511_v13  ;;  %v1578_v43 = vadd.f32 %v3687_v6, %v1528_v42  ;;  %v3764_v21 = vmul.f32 %v3409_v30, %v1510_v11  ;;  %v3811_v42 = vld [vmem:[#allocation7 + $0x1] ss:$0 sm:$0xff]  ;;  %v3826_v5 = vld [vmem:[#allocation7 + $0x5] ss:$0 sm:$0xff] }
 0x1dc   : > { %v1088_v56 = vadd.f32 %v1072_v16, %v1037_v41  ;;  %v1612_v18 = vmul.f32 %v3341_v53, %v1594_v48  ;;  %v3767_v62 = vadd.f32 %v1171_v39, %v1137_v20  ;;  %v1238_v14 = vadd.f32 %v1222_v50, %v1186_v35  ;;  %v762_v20 = vpop.f32.mrf.mxu1 }
 0x1dd   : > { %4610 = vst [vmem:[#allocation56_spill] sm:$0xff] %v3764_v21  ;;  %v1726_v17 = vadd.f32 %v3690_v60, %v1676_v33  ;;  %v1579_v28 = vadd.f32 %v1563_v63, %v1529_v10  ;;  %v3770_v34 = vadd.f32 %v1321_v2, %v1287_v47  ;;  %v3772_v55 = vadd.f32 %v973_v54, %v939_v45  ;;  %v3832_v45 = vld [vmem:[#allocation7 + $0x1] ss:$0 sm:$0xff]  ;;  %v3837_v33 = vld [vmem:[#allocation7 + $0x5] ss:$0 sm:$0xff] }
 0x1de   : > { %v3774_v58 = vadd.f32 %v1122_v38, %v1088_v56  ;;  %v1661_v6 = vmul.f32 %v3327_v25, %v1511_v13  ;;  %v3777_v11 = vadd.f32 %v1272_v61, %v1238_v14  ;;  %v1613_v41 = vmul.f32 %v3341_v53, %v1595_v27 }
 0x1df   : > { %4611 = vst [vmem:[#allocation57_spill] sm:$0xff] %v3770_v34  ;;  %v3780_v31 = vadd.f32 %v1612_v18, %v1578_v43  ;;  %v1760_v39 = vmul.f32 %v3351_v7, %v1594_v48  ;;  %v1711_v57 = vmul.f32 %v3285_v40, %v3684_v23  ;;  %v651_v54 = vmul.f32 0.16666667, %v3695_v52  ;;  %v3829_v48 = vld [vmem:[#allocation7 + $0x9] ss:$0 sm:$0xff]  ;;  %v573_v16 = vpop.f32.mrf.mxu0 }
 0x1e0   : > { %v1677_v60 = vadd.f32 %v1661_v6, %v1627_v9  ;;  %v828_v38 = vmul.f32 %v3700_v15, %v3657_v26  ;;  %v3788_v32 = vadd.f32 %v1613_v41, %v1579_v28  ;;  %v636_v25 = vmul.f32 %v3705_v37, %v3660_v8  ;;  %v3797_v9 = vld [vmem:[%s4527_s2] ss:$0 sm:$0xff] }
 0x1e1   : > { %v4612_v53 = vmax.f32 %v3680_v12, 0.0  ;;  %v3801_v40 = vadd.f32 %v3797_v9, %v3708_v22  ;;  %v1761_v26 = vmul.f32 %v3351_v7, %v1595_v27  ;;  %v3804_v52 = vadd.f32 %v1760_v39, %v1726_v17  ;;  %668 = vst [vmem:[#allocation2 + $0xd0] sm:$0xff] %v651_v54 }
 0x1e2   : > { %v1727_v23 = vadd.f32 %v1711_v57, %v1677_v60  ;;  %v3807_v15 = vmul.f32 %v3409_v30, %v1511_v13  ;;  %v844_v37 = vmul.f32 0.16666667, %v828_v38  ;;  %v652_v8 = vmul.f32 0.16666667, %v636_v25 }
 0x1e3   : > { %v813_v61 = vmin.f32 %v4612_v53, 6.0  ;;  %v589_v63 = vadd.f32 3.0, %v3801_v40  ;;  %v974_v22 = vmul.f32 %v3811_v42, %v651_v54  ;;  %v3816_v35 = vadd.f32 %v3797_v9, %v3734_v44 }
 0x1e4   : > { %4613 = vst [vmem:[#allocation58_spill] sm:$0xff] %v3807_v15  ;;  %v3819_v7 = vadd.f32 %v3797_v9, %v571_v0  ;;  %v3822_v13 = vadd.f32 %v3797_v9, %v762_v20  ;;  %v3824_v2 = vadd.f32 %v1761_v26, %v1727_v23  ;;  %v1273_v47 = vmul.f32 %v3829_v48, %v651_v54  ;;  %v765_v53 = vpop.f32.mrf.mxu1  ;;  %v3877_v23 = vld [vmem:[#allocation7 + $0x2] ss:$0 sm:$0xff] }
 0x1e5   : > { %v829_v12 = vmul.f32 %v813_v61, %v3671_v49  ;;  %v1123_v49 = vmul.f32 %v3826_v5, %v651_v54  ;;  %861 = vst [vmem:[#allocation2 + $0x1c8] sm:$0xff] %v844_v37  ;;  %v3835_v44 = vmul.f32 %v3832_v45, %v844_v37  ;;  %v3840_v50 = vmul.f32 %v3837_v33, %v844_v37 }
 0x1e6   : > { %v3843_v10 = vmul.f32 %v3372_v24, %v844_v37  ;;  %669 = vst [vmem:[#allocation2 + $0xe8] sm:$0xff] %v652_v8  ;;  %v605_v43 = vmax.f32 %v589_v63, 0.0  ;;  %v3846_v56 = vmul.f32 %v3811_v42, %v652_v8  ;;  %v3849_v27 = vadd.f32 3.0, %v3816_v35  ;;  %v3880_v37 = vld [vmem:[#allocation7 + $0x4] ss:$0 sm:$0xff] }
 0x1e7   : > { %v845_v0 = vmul.f32 0.16666667, %v829_v12  ;;  %v3852_v18 = vadd.f32 3.0, %v3819_v7  ;;  %v3855_v17 = vadd.f32 3.0, %v3822_v13  ;;  %v3858_v14 = vmul.f32 %v3826_v5, %v652_v8  ;;  %4614 = vst [vmem:[#allocation59_spill] sm:$0xff] %v3877_v23 }
 0x1e8   : > { %v3861_v28 = vmul.f32 %v3829_v48, %v652_v8  ;;  %v3865_v41 = vadd.f32 %v3797_v9, %v573_v16  ;;  %v922_v39 = vld [vmem:[#allocation2 + $0xcf] sm:$0xff]  ;;  %v3873_v38 = vmin.f32 %v605_v43, 6.0  ;;  %v3887_v16 = vld [vmem:[#allocation7 + $0x8] ss:$0 sm:$0xff]  ;;  %v3896_v12 = vadd.f32 %v3797_v9, %v765_v53 }
 0x1e9   : > { %862 = vst [vmem:[#allocation2 + $0x1d0] sm:$0xff] %v845_v0  ;;  %v1565_v6 = vmul.f32 %v3832_v45, %v845_v0  ;;  %v1005_v20 = vld [vmem:[#allocation2 + $0xc9] sm:$0xff]  ;;  %v1006_v60 = vld [vmem:[#allocation2 + $0xd1] sm:$0xff]  ;;  %v3868_v57 = vmul.f32 %v3837_v33, %v845_v0  ;;  %v3871_v54 = vmul.f32 %v3372_v24, %v845_v0  ;;  %v940_v61 = vmul.f32 %v3754_v19, %v922_v39 }
 0x1ea   : > { %v1023_v26 = vmul.f32 %v3877_v23, %v1005_v20  ;;  %v1073_v8 = vmul.f32 %v3880_v37, %v922_v39  ;;  %v3884_v63 = vld [vmem:[#allocation7 + $0x6] ss:$0 sm:$0xff]  ;;  %v1223_v0 = vmul.f32 %v3887_v16, %v922_v39  ;;  %v1322_v43 = vmul.f32 %v3345_v4, %v1005_v20  ;;  %v3900_v39 = vld [vmem:[#allocation7] ss:$0 sm:$0xff] }
 0x1eb   : > { %4615 = vst [vmem:[#allocation60_spill] sm:$0xff] %v3884_v63  ;;  %v1172_v24 = vmul.f32 %v3884_v63, %v1005_v20  ;;  %v799_v25 = vmax.f32 %v3855_v17, 0.0  ;;  %v1024_v15 = vmul.f32 %v3877_v23, %v1006_v60  ;;  %v1173_v1 = vmul.f32 %v3884_v63, %v1006_v60 }
 0x1ec   : > { %v1089_v21 = vadd.f32 %v1073_v8, %v3758_v51  ;;  %v1512_v3 = vld [vmem:[#allocation2 + $0x1c7] sm:$0xff]  ;;  %v990_v34 = vadd.f32 %v974_v22, %v940_v61  ;;  %v1039_v36 = vadd.f32 %v1023_v26, %v3772_v55  ;;  %v1239_v46 = vadd.f32 %v1223_v0, %v3767_v62  ;;  %v3905_v8 = vld [vmem:[#allocation7 + $0x4] ss:$0 sm:$0xff] }
 0x1ed   : > { %v1530_v20 = vmul.f32 %v3900_v39, %v1512_v3  ;;  %v923_v17 = vld [vmem:[#allocation2 + $0xe7] sm:$0xff]  ;;  %v1188_v23 = vadd.f32 %v1172_v24, %v3774_v58  ;;  %v1323_v51 = vmul.f32 %v3345_v4, %v1006_v60  ;;  %v1662_v63 = vmul.f32 %v3905_v8, %v1512_v3 }
 0x1ee   : > { %v1811_v53 = vmul.f32 %v3409_v30, %v1512_v3  ;;  %v1139_v22 = vadd.f32 %v1123_v49, %v1089_v21  ;;  %v1289_v61 = vadd.f32 %v1273_v47, %v1239_v46  ;;  %v3910_v55 = vadd.f32 %v1322_v43, %v3777_v11 }
 0x1ef   : > { %v1074_v62 = vmul.f32 %v3880_v37, %v923_v17  ;;  %v1678_v59 = vadd.f32 %v1662_v63, %v3780_v31  ;;  %v941_v4 = vmul.f32 %v3754_v19, %v923_v17  ;;  %v1224_v60 = vmul.f32 %v3887_v16, %v923_v17  ;;  %v3923_v31 = vld [vmem:[#allocation7 + $0x2] ss:$0 sm:$0xff] }
 0x1f0   : > { %v1513_v26 = vld [vmem:[#allocation2 + $0x1cf] sm:$0xff]  ;;  %v1827_v58 = vadd.f32 %v1811_v53, %v3804_v52  ;;  %v3917_v24 = vadd.f32 %v1024_v15, %v990_v34  ;;  %v1580_v3 = vadd.f32 %v3835_v44, %v1530_v20  ;;  %v3926_v63 = vadd.f32 %v1173_v1, %v1139_v22 }
 0x1f1   : > { %v1596_v0 = vld [vmem:[#allocation2 + $0x1c9] sm:$0xff]  ;;  %v1090_v46 = vadd.f32 %v1074_v62, %v1039_v36  ;;  %v1531_v21 = vmul.f32 %v3900_v39, %v1513_v26  ;;  %v1597_v11 = vld [vmem:[#allocation2 + $0x1d1] sm:$0xff]  ;;  %v1728_v49 = vadd.f32 %v3840_v50, %v1678_v59  ;;  %v1240_v43 = vadd.f32 %v1224_v60, %v1188_v23 }
 0x1f2   : > { %v1877_v47 = vadd.f32 %v3843_v10, %v1827_v58  ;;  %v1614_v52 = vmul.f32 %v3923_v31, %v1596_v0  ;;  %v1339_v17 = vadd.f32 %v1323_v51, %v1289_v61  ;;  %v1663_v15 = vmul.f32 %v3905_v8, %v1513_v26  ;;  %v3942_v23 = vld [vmem:[#allocation7 + $0x6] ss:$0 sm:$0xff] }
 0x1f3   : > { %v1581_v34 = vadd.f32 %v1565_v6, %v1531_v21  ;;  %v3930_v36 = vadd.f32 %v3846_v56, %v941_v4  ;;  %v3933_v44 = vadd.f32 %v3858_v14, %v1090_v46  ;;  %v3936_v59 = vadd.f32 %v3861_v28, %v1240_v43 }
 0x1f4   : > { %v1615_v50 = vmul.f32 %v3923_v31, %v1597_v11  ;;  %v3939_v10 = vadd.f32 %v1614_v52, %v1580_v3  ;;  %v1679_v1 = vadd.f32 %v1663_v15, %v3788_v32  ;;  %v1762_v6 = vmul.f32 %v3942_v23, %v1596_v0 }
 0x1f5   : > { %v1812_v20 = vmul.f32 %v3409_v30, %v1513_v26  ;;  %v1763_v56 = vmul.f32 %v3942_v23, %v1597_v11  ;;  %v1911_v14 = vmul.f32 %v3568_v29, %v1596_v0  ;;  %v637_v28 = vmul.f32 %v3873_v38, %v3801_v40 }
 0x1f6   : > { %v4616_v51 = vmax.f32 %v3849_v27, 0.0  ;;  %v3952_v22 = vadd.f32 %v1615_v50, %v1581_v34  ;;  %v1729_v32 = vadd.f32 %v3868_v57, %v1679_v1  ;;  %v4617_v62 = vmax.f32 %v3852_v18, 0.0 }
 0x1f7   : > { %v1828_v61 = vadd.f32 %v1812_v20, %v3824_v2  ;;  %v653_v30 = vmul.f32 0.16666667, %v637_v28  ;;  %v815_v4 = vmin.f32 %v799_v25, 6.0  ;;  %v591_v0 = vadd.f32 3.0, %v3865_v41 }
 0x1f8   : > { %v814_v53 = vmin.f32 %v4616_v51, 6.0  ;;  %v622_v58 = vmin.f32 %v4617_v62, 6.0  ;;  %v3960_v60 = vadd.f32 %v1762_v6, %v1728_v49  ;;  %v784_v38 = vadd.f32 3.0, %v3896_v12  ;;  %v767_v49 = vpop.f32.mrf.mxu1  ;;  %v4620_v6 = vld [vmem:[#allocation32_spill] sm:$0xff]  ;;  %v4006_v51 = vld [vmem:[%s4529_s4] ss:$0 sm:$0xff] }
 0x1f9   : > { %v1878_v40 = vadd.f32 %v3871_v54, %v1828_v61  ;;  %v3965_v57 = vadd.f32 %v1763_v56, %v1729_v32  ;;  %v1912_v2 = vmul.f32 %v3568_v29, %v1597_v11  ;;  %v3968_v18 = vadd.f32 %v1911_v14, %v1877_v47  ;;  %670 = vst [vmem:[#allocation2 + $0xf0] sm:$0xff] %v653_v30 }
 0x1fa   : > { %v830_v26 = vmul.f32 %v814_v53, %v3816_v35  ;;  %v638_v27 = vmul.f32 %v622_v58, %v3819_v7  ;;  %v976_v35 = vmul.f32 %v3811_v42, %v653_v30  ;;  %v831_v46 = vmul.f32 %v815_v4, %v3822_v13  ;;  %v3982_v42 = vld [vmem:[#allocation7 + $0x9] ss:$0 sm:$0xff] }
 0x1fb   : > { %4618 = vst [vmem:[#allocation61_spill] sm:$0xff] %v3968_v18  ;;  %v607_v21 = vmax.f32 %v591_v0, 0.0  ;;  %v3972_v54 = vadd.f32 %v1912_v2, %v1878_v40  ;;  %v1125_v7 = vmul.f32 %v3826_v5, %v653_v30  ;;  %v1275_v43 = vmul.f32 %v3829_v48, %v653_v30  ;;  %v4623_v0 = vld [vmem:[#allocation46_spill] sm:$0xff]  ;;  %v4624_v40 = vld [vmem:[#allocation44_spill] sm:$0xff] }
 0x1fc   : > { %v846_v3 = vmul.f32 0.16666667, %v830_v26  ;;  %v654_v25 = vmul.f32 0.16666667, %v638_v27  ;;  %v800_v52 = vmax.f32 %v784_v38, 0.0  ;;  %v3988_v1 = vadd.f32 %v3797_v9, %v767_v49 }
 0x1fd   : > { %4619 = vst [vmem:[#allocation62_spill] sm:$0xff] %v3972_v54  ;;  %v847_v34 = vmul.f32 0.16666667, %v831_v46  ;;  %v623_v15 = vmin.f32 %v607_v21, 6.0  ;;  %v3992_v20 = vadd.f32 %v4620_v6, %v3910_v55  ;;  %v4009_v9 = vadd.f32 %v4006_v51, %v1339_v17 }
 0x1fe   : > { %863 = vst [vmem:[#allocation2 + $0x1e8] sm:$0xff] %v846_v3  ;;  %v3977_v11 = vmul.f32 %v3832_v45, %v846_v3  ;;  %v3980_v47 = vmul.f32 %v3837_v33, %v846_v3  ;;  %v3985_v13 = vmul.f32 %v3982_v42, %v846_v3  ;;  %v816_v50 = vmin.f32 %v800_v52, 6.0  ;;  %v4628_v52 = vld [vmem:[#allocation55_spill] sm:$0xff] }
 0x1ff   : > { %671 = vst [vmem:[#allocation2 + $0x108] sm:$0xff] %v654_v25  ;;  %v3995_v56 = vmul.f32 %v3826_v5, %v654_v25  ;;  %v3998_v14 = vmul.f32 %v3829_v48, %v654_v25  ;;  %v4001_v28 = vmul.f32 %v3832_v45, %v654_v25  ;;  %v1567_v55 = vmul.f32 %v3832_v45, %v847_v34 }
 0x200   : > { %4621 = vst [vmem:[#allocation32_spill] sm:$0xff] %v3992_v20  ;;  %v4013_v53 = vmul.f32 %v3837_v33, %v847_v34  ;;  %v4016_v32 = vmul.f32 %v3982_v42, %v847_v34  ;;  %v4019_v61 = vmul.f32 %v623_v15, %v3865_v41  ;;  %v924_v62 = vld [vmem:[#allocation2 + $0xef] sm:$0xff]  ;;  %v4022_v26 = vmul.f32 %v816_v50, %v3896_v12  ;;  %v4626_v41 = vld [vmem:[#allocation59_spill] sm:$0xff] }
 0x201   : > { %864 = vst [vmem:[#allocation2 + $0x1f0] sm:$0xff] %v847_v34  ;;  %v1007_v58 = vld [vmem:[#allocation2 + $0xe9] sm:$0xff]  ;;  %v1008_v30 = vld [vmem:[#allocation2 + $0xf1] sm:$0xff]  ;;  %v4025_v17 = vadd.f32 3.0, %v3988_v1  ;;  %v4028_v4 = vadd.f32 3.0, %v3992_v20  ;;  %v4032_v27 = vadd.f32 %v4624_v40, %v4623_v0  ;;  %v942_v38 = vmul.f32 %v3754_v19, %v924_v62 }
 0x202   : > { %4622 = vst [vmem:[#allocation63_spill] sm:$0xff] %v4009_v9  ;;  %v1025_v2 = vmul.f32 %v4626_v41, %v1007_v58  ;;  %v1075_v3 = vmul.f32 %v3880_v37, %v924_v62  ;;  %v4038_v25 = vadd.f32 3.0, %v4009_v9  ;;  %v4627_v12 = vld [vmem:[#allocation60_spill] sm:$0xff]  ;;  %v1225_v21 = vmul.f32 %v3887_v16, %v924_v62  ;;  %v4629_v15 = vld [vmem:[#allocation57_spill] sm:$0xff] }
 0x203   : > { %4625 = vst [vmem:[#allocation46_spill] sm:$0xff] %v4032_v27  ;;  %v1174_v46 = vmul.f32 %v4627_v12, %v1007_v58  ;;  %v4044_v34 = vadd.f32 %v4006_v51, %v4628_v52  ;;  %v4048_v50 = vadd.f32 %v4006_v51, %v4629_v15  ;;  %v1026_v19 = vmul.f32 %v4626_v41, %v1008_v30  ;;  %v4053_v40 = vld [vmem:[#allocation7 + $0xa] ss:$0 sm:$0xff] }
 0x204   : > { %v1091_v6 = vadd.f32 %v1075_v3, %v3917_v24  ;;  %v1175_v0 = vmul.f32 %v4627_v12, %v1008_v30  ;;  %v1324_v27 = vmul.f32 %v4053_v40, %v1007_v58  ;;  %v992_v54 = vadd.f32 %v976_v35, %v942_v38  ;;  %v4061_v24 = vld [vmem:[#allocation7 + $0x8] ss:$0 sm:$0xff] }
 0x205   : > { %v1514_v49 = vld [vmem:[#allocation2 + $0x1e7] sm:$0xff]  ;;  %4630 = vst [vmem:[#allocation44_spill] sm:$0xff] %v4048_v50  ;;  %v1041_v18 = vadd.f32 %v1025_v2, %v3930_v36  ;;  %v1241_v52 = vadd.f32 %v1225_v21, %v3926_v63  ;;  %v1325_v9 = vmul.f32 %v4053_v40, %v1008_v30  ;;  %v1190_v58 = vadd.f32 %v1174_v46, %v3933_v44 }
 0x206   : > { %v1057_v62 = vld [vmem:[#allocation2 + $0x107] sm:$0xff]  ;;  %v1141_v15 = vadd.f32 %v1125_v7, %v1091_v6  ;;  %v1532_v20 = vmul.f32 %v3900_v39, %v1514_v49  ;;  %v1664_v41 = vmul.f32 %v3905_v8, %v1514_v49  ;;  %v1813_v3 = vmul.f32 %v4061_v24, %v1514_v49 }
 0x207   : > { %v1291_v50 = vadd.f32 %v1275_v43, %v1241_v52  ;;  %v1076_v35 = vmul.f32 %v3880_v37, %v1057_v62  ;;  %v1226_v36 = vmul.f32 %v3887_v16, %v1057_v62  ;;  %v4068_v30 = vadd.f32 %v1324_v27, %v3936_v59  ;;  %v2105_v43 = vld [vmem:[%s4530_s5 + $0x78] sm:$0xff]  ;;  %v2104_v59 = vld [vmem:[%s4530_s5 + $0x70] sm:$0xff] }
 0x208   : > { %v1515_v12 = vld [vmem:[#allocation2 + $0x1ef] sm:$0xff]  ;;  %v1680_v7 = vadd.f32 %v1664_v41, %v3939_v10  ;;  %v1829_v38 = vadd.f32 %v1813_v3, %v3960_v60  ;;  %v1518_v2 = vmul.f32 %v3900_v39, %v1057_v62  ;;  %v4073_v21 = vadd.f32 %v1026_v19, %v992_v54  ;;  %2107 = vmatpush.msra.mxu2 %v2105_v43 }
 0x209   : > { %v1598_v63 = vld [vmem:[#allocation2 + $0x1e9] sm:$0xff]  ;;  %v1092_v49 = vadd.f32 %v1076_v35, %v1041_v18  ;;  %v1242_v6 = vadd.f32 %v1226_v36, %v1190_v58  ;;  %v1533_v44 = vmul.f32 %v3900_v39, %v1515_v12  ;;  %v4082_v27 = vadd.f32 %v1175_v0, %v1141_v15  ;;  %v1599_v54 = vld [vmem:[#allocation2 + $0x1f1] sm:$0xff]  ;;  %v2102_v36 = vld [vmem:[%s4530_s5 + $0x60] sm:$0xff] }
 0x20a   : > { %v4084_v10 = vadd.f32 %v1325_v9, %v1291_v50  ;;  %v1582_v60 = vadd.f32 %v3977_v11, %v1532_v20  ;;  %v1616_v18 = vmul.f32 %v3923_v31, %v1598_v63  ;;  %v1730_v46 = vadd.f32 %v3980_v47, %v1680_v7  ;;  %v2103_v0 = vld [vmem:[%s4530_s5 + $0x68] sm:$0xff]  ;;  %2108 = vmatpush.msra.mxu2 %v2104_v59  ;;  %v2128_v59 = vld [vmem:[%s4532_s7] sm:$0xff] }
 0x20b   : > { %v1879_v19 = vadd.f32 %v3985_v13, %v1829_v38  ;;  %v4091_v62 = vadd.f32 %v4001_v28, %v1518_v2  ;;  %v1583_v52 = vadd.f32 %v1567_v55, %v1533_v44  ;;  %v4097_v9 = vadd.f32 %v3995_v56, %v1092_v49  ;;  %v2131_v13 = vld [vmem:[%s4532_s7 + $0x18] sm:$0xff]  ;;  %v2130_v28 = vld [vmem:[%s4532_s7 + $0x10] sm:$0xff]  ;;  %v1799_v15 = vld [vmem:[#allocation2 + $0x227] sm:$0xff] }
 0x20c   : > { %v4100_v11 = vadd.f32 %v3998_v14, %v1242_v6  ;;  %v1665_v20 = vmul.f32 %v3905_v8, %v1515_v12  ;;  %v1764_v47 = vmul.f32 %v3942_v23, %v1598_v63  ;;  %v1617_v55 = vmul.f32 %v3923_v31, %v1599_v54  ;;  %2148 = vmatpush.msra.mxu3 %v2131_v13  ;;  %v1800_v49 = vld [vmem:[#allocation2 + $0x22f] sm:$0xff] }
 0x20d   : > { %v4111_v56 = vadd.f32 %v1616_v18, %v1582_v60  ;;  %v1814_v14 = vmul.f32 %v4061_v24, %v1515_v12  ;;  %v1913_v50 = vmul.f32 %v3568_v29, %v1598_v63  ;;  %v1765_v3 = vmul.f32 %v3942_v23, %v1599_v54  ;;  %2109 = vmatpush.msra.mxu2 %v2103_v0  ;;  %v1900_v0 = vld [vmem:[#allocation2 + $0x231] sm:$0xff] }
 0x20e   : > { %v1681_v41 = vadd.f32 %v1665_v20, %v3952_v22  ;;  %v655_v58 = vmul.f32 0.16666667, %v4019_v61  ;;  %v848_v35 = vmul.f32 0.16666667, %v4022_v26  ;;  %v4122_v7 = vadd.f32 %v1617_v55, %v1583_v52  ;;  %2149 = vmatpush.msra.mxu3 %v2130_v28  ;;  %v2129_v22 = vld [vmem:[%s4532_s7 + $0x8] sm:$0xff]  ;;  %v2846_v52 = vld [vmem:[#allocation2] sm:$0xff] }
 0x20f   : > { %v1830_v12 = vadd.f32 %v1814_v14, %v3965_v57  ;;  %v1914_v63 = vmul.f32 %v3568_v29, %v1599_v54  ;;  %v801_v38 = vmax.f32 %v4025_v17, 0.0  ;;  %v4131_v26 = vadd.f32 %v1764_v47, %v1730_v46  ;;  %v2101_v57 = vld [vmem:[%s4530_s5 + $0x58] sm:$0xff]  ;;  %2110 = vmatpush.msra.mxu2 %v2102_v36  ;;  %v2099_v47 = vld [vmem:[%s4530_s5 + $0x48] sm:$0xff] }
 0x210   : > { %v1731_v61 = vadd.f32 %v4013_v53, %v1681_v41  ;;  %v4133_v2 = vadd.f32 %v1913_v50, %v1879_v19  ;;  %672 = vst [vmem:[#allocation2 + $0x110] sm:$0xff] %v655_v58  ;;  %v4136_v6 = vmul.f32 %v4061_v24, %v1799_v15  ;;  %v4143_v44 = vmul.f32 %v3826_v5, %v655_v58 }
 0x211   : > { %v1880_v17 = vadd.f32 %v4016_v32, %v1830_v12  ;;  %v4146_v53 = vmul.f32 %v3829_v48, %v655_v58  ;;  %865 = vst [vmem:[#allocation2 + $0x208] sm:$0xff] %v848_v35  ;;  %v817_v43 = vmin.f32 %v801_v38, 6.0  ;;  %v1553_v54 = vmul.f32 %v3832_v45, %v655_v58  ;;  %v2100_v48 = vld [vmem:[%s4530_s5 + $0x50] sm:$0xff]  ;;  %2150 = vmatpush.msra.mxu3 %v2129_v22 }
 0x212   : > { %v4151_v60 = vadd.f32 %v1765_v3, %v1731_v61  ;;  %v4155_v18 = vmul.f32 %v3837_v33, %v848_v35  ;;  %v4158_v5 = vmul.f32 %v3982_v42, %v848_v35  ;;  %v1899_v32 = vld [vmem:[#allocation2 + $0x229] sm:$0xff]  ;;  %v4165_v19 = vmul.f32 %v4061_v24, %v1800_v49  ;;  %2111 = vmatpush.msra.mxu2 %v2101_v57  ;;  %v4632_v22 = vld [vmem:[#allocation41_spill] sm:$0xff] }
 0x213   : > { %v833_v46 = vmul.f32 %v817_v43, %v3988_v1  ;;  %v4168_v45 = vmul.f32 %v2846_v52, %v3982_v42  ;;  %v4172_v20 = vadd.f32 %v4006_v51, %v4068_v30  ;;  %2151 = vmatpush.msra.mxu3 %v2128_v59  ;;  %v4179_v1 = vadd.f32 %v4006_v51, %v4084_v10  ;;  %v2098_v10 = vld [vmem:[%s4530_s5 + $0x40] sm:$0xff]  ;;  %v4631_v3 = vld [vmem:[#allocation44_spill] sm:$0xff]  ;;  %v4633_v61 = vld [vmem:[#allocation45_spill] sm:$0xff] }
 0x214   : > { %v1389_v13 = vmax.f32 %v4028_v4, 0.0  ;;  %v1390_v28 = vmax.f32 %v4038_v25, 0.0  ;;  %v4184_v55 = vadd.f32 3.0, %v4044_v34  ;;  %v4186_v14 = vadd.f32 %v1914_v63, %v1880_v17  ;;  %2112 = vmatpush.msra.mxu2 %v2100_v48  ;;  %v4634_v17 = vld [vmem:[#allocation60_spill] sm:$0xff] }
 0x215   : > { %v849_v30 = vmul.f32 0.16666667, %v833_v46  ;;  %v4189_v50 = vmul.f32 %v3568_v29, %v1899_v32  ;;  %v4192_v15 = vadd.f32 3.0, %v4172_v20  ;;  %v4198_v4 = vmul.f32 %v3568_v29, %v1900_v0 }
 0x216   : > { %v4201_v25 = vadd.f32 3.0, %v4179_v1  ;;  %v4203_v41 = vmin.f32 %v1389_v13, 6.0  ;;  %v4206_v58 = vadd.f32 3.0, %v4631_v3  ;;  %2113 = vmatpush.msra.mxu2 %v2099_v47  ;;  %v4211_v38 = vmin.f32 %v1390_v28, 6.0 }
 0x217   : > { %v1058_v35 = vld [vmem:[#allocation2 + $0x10f] sm:$0xff]  ;;  %866 = vst [vmem:[#allocation2 + $0x210] sm:$0xff] %v849_v30  ;;  %v4209_v63 = vmul.f32 %v3837_v33, %v849_v30  ;;  %v1387_v29 = vmax.f32 %v4184_v55, 0.0  ;;  %v4216_v49 = vadd.f32 %v4633_v61, %v4632_v22  ;;  %v4222_v32 = vmul.f32 %v3982_v42, %v849_v30  ;;  %v2097_v33 = vld [vmem:[%s4530_s5 + $0x38] sm:$0xff] }
 0x218   : > { %v1158_v36 = vld [vmem:[#allocation2 + $0x109] sm:$0xff]  ;;  %v1159_v12 = vld [vmem:[#allocation2 + $0x111] sm:$0xff]  ;;  %v1077_v57 = vmul.f32 %v3880_v37, %v1058_v35  ;;  %v1227_v59 = vmul.f32 %v3887_v16, %v1058_v35  ;;  %v1519_v52 = vmul.f32 %v3900_v39, %v1058_v35  ;;  %2114 = vmatpush.msra.mxu2 %v2098_v10  ;;  %v1391_v37 = vmax.f32 %v4192_v15, 0.0 }
 0x219   : > { %v1176_v43 = vmul.f32 %v4634_v17, %v1158_v36  ;;  %v1648_v48 = vld [vmem:[#allocation2 + $0x207] sm:$0xff]  ;;  %v1326_v46 = vmul.f32 %v4053_v40, %v1158_v36  ;;  %v1602_v0 = vmul.f32 %v3923_v31, %v1158_v36  ;;  %v1603_v28 = vmul.f32 %v3923_v31, %v1159_v12  ;;  %v2096_v30 = vld [vmem:[%s4530_s5 + $0x30] sm:$0xff] }
 0x21a   : > { %v1093_v47 = vadd.f32 %v1077_v57, %v4073_v21  ;;  %v1243_v13 = vadd.f32 %v1227_v59, %v4082_v27  ;;  %v1569_v39 = vadd.f32 %v1553_v54, %v1519_v52  ;;  %v1666_v10 = vmul.f32 %v3905_v8, %v1648_v48  ;;  %2115 = vmatpush.msra.mxu2 %v2097_v33  ;;  %v4635_v36 = vld [vmem:[#allocation21_spill] sm:$0xff]  ;;  %v2095_v61 = vld [vmem:[%s4530_s5 + $0x28] sm:$0xff]  ;;  %v4636_v57 = vld [vmem:[#allocation22_spill] sm:$0xff] }
 0x21b   : > { %v1192_v16 = vadd.f32 %v1176_v43, %v4097_v9  ;;  %v1342_v22 = vadd.f32 %v1326_v46, %v4100_v11  ;;  %v1618_v35 = vadd.f32 %v1602_v0, %v4091_v62  ;;  %v1177_v9 = vmul.f32 %v4634_v17, %v1159_v12  ;;  %v4637_v0 = vld [vmem:[#allocation28_spill] sm:$0xff] }
 0x21c   : > { %v1143_v21 = vadd.f32 %v4143_v44, %v1093_v47  ;;  %v1815_v31 = vmul.f32 %v4061_v24, %v1648_v48  ;;  %v1293_v11 = vadd.f32 %v4146_v53, %v1243_v13  ;;  %v1619_v54 = vadd.f32 %v1603_v28, %v1569_v39  ;;  %2116 = vmatpush.msra.mxu2 %v2096_v30  ;;  %v2094_v44 = vld [vmem:[%s4530_s5 + $0x20] sm:$0xff]  ;;  %v4639_v30 = vld [vmem:[#allocation25_spill] sm:$0xff] }
 0x21d   : > { %v1244_v27 = vadd.f32 %v4635_v36, %v1192_v16  ;;  %v1668_v62 = vadd.f32 %v4636_v57, %v1618_v35  ;;  %v1682_v43 = vadd.f32 %v1666_v10, %v4111_v56  ;;  %v1327_v59 = vmul.f32 %v4053_v40, %v1159_v12  ;;  %v4638_v16 = vld [vmem:[#allocation20_spill] sm:$0xff]  ;;  %v4640_v35 = vld [vmem:[#allocation19_spill] sm:$0xff]  ;;  %v2093_v10 = vld [vmem:[%s4530_s5 + $0x18] sm:$0xff] }
 0x21e   : > { %v1193_v17 = vadd.f32 %v1177_v9, %v1143_v21  ;;  %v1831_v48 = vadd.f32 %v1815_v31, %v4131_v26  ;;  %v1649_v33 = vld [vmem:[#allocation2 + $0x20f] sm:$0xff]  ;;  %v1388_v53 = vmax.f32 %v4206_v58, 0.0  ;;  %v1669_v47 = vadd.f32 %v4637_v0, %v1619_v54  ;;  %2117 = vmatpush.msra.mxu2 %v2095_v61 }
 0x21f   : > { %v1748_v46 = vld [vmem:[#allocation2 + $0x209] sm:$0xff]  ;;  %v1749_v52 = vld [vmem:[#allocation2 + $0x211] sm:$0xff]  ;;  %v1718_v13 = vadd.f32 %v4638_v16, %v1668_v62  ;;  %v1667_v56 = vmul.f32 %v3905_v8, %v1649_v33  ;;  %v1361_v28 = vadd.f32 %v4006_v51, %v1342_v22  ;;  %v1294_v40 = vadd.f32 %v4640_v35, %v1244_v27 }
 0x220   : > { %v1245_v39 = vadd.f32 %v4639_v30, %v1193_v17  ;;  %v1732_v26 = vadd.f32 %v4155_v18, %v1682_v43  ;;  %v1766_v12 = vmul.f32 %v3942_v23, %v1748_v46  ;;  %v1343_v21 = vadd.f32 %v1327_v59, %v1293_v11  ;;  %2118 = vmatpush.msra.mxu2 %v2094_v44  ;;  %v4641_v22 = vld [vmem:[#allocation23_spill] sm:$0xff]  ;;  %v4273_v18 = vld [vmem:[#allocation7 + $0xa] ss:$0 sm:$0xff]  ;;  %v2092_v11 = vld [vmem:[%s4530_s5 + $0x10] sm:$0xff] }
 0x221   : > { %v1683_v9 = vadd.f32 %v1667_v56, %v4122_v7  ;;  %v1767_v8 = vmul.f32 %v3942_v23, %v1749_v52  ;;  %v1816_v36 = vmul.f32 %v4061_v24, %v1649_v33  ;;  %v1881_v27 = vadd.f32 %v4158_v5, %v1831_v48  ;;  %v4642_v57 = vld [vmem:[#allocation24_spill] sm:$0xff]  ;;  %v4643_v5 = vld [vmem:[#allocation29_spill] sm:$0xff]  ;;  %v4644_v17 = vld [vmem:[#allocation26_spill] sm:$0xff] }
 0x222   : > { %v1295_v31 = vadd.f32 %v4641_v22, %v1245_v39  ;;  %v1782_v61 = vadd.f32 %v1766_v12, %v1732_v26  ;;  %v1915_v54 = vmul.f32 %v4273_v18, %v1748_v46  ;;  %v4280_v7 = vadd.f32 %v4642_v57, %v1669_v47  ;;  %2119 = vmatpush.msra.mxu2 %v2093_v10  ;;  %v4645_v48 = vld [vmem:[#allocation27_spill] sm:$0xff] }
 0x223   : > { %v1733_v23 = vadd.f32 %v4209_v63, %v1683_v9  ;;  %v1832_v24 = vadd.f32 %v1816_v36, %v4151_v60  ;;  %v1916_v62 = vmul.f32 %v4273_v18, %v1749_v52  ;;  %v4286_v43 = vadd.f32 %v4643_v5, %v1718_v13  ;;  %v2091_v46 = vld [vmem:[%s4530_s5 + $0x8] sm:$0xff]  ;;  %v2090_v13 = vld [vmem:[%s4530_s5] sm:$0xff] }
 0x224   : > { %v1833_v44 = vadd.f32 %v4136_v6, %v1782_v61  ;;  %v1344_v59 = vadd.f32 %v4644_v17, %v1294_v40  ;;  %v1345_v33 = vadd.f32 %v4645_v48, %v1295_v31  ;;  %v1931_v60 = vadd.f32 %v1915_v54, %v1881_v27  ;;  %2120 = vmatpush.msra.mxu2 %v2092_v11 }
 0x225   : > { %v1783_v0 = vadd.f32 %v1767_v8, %v1733_v23  ;;  %v1882_v63 = vadd.f32 %v4222_v32, %v1832_v24  ;;  %v1362_v52 = vadd.f32 %v4006_v51, %v1343_v21  ;;  %v1377_v56 = vadd.f32 3.0, %v1361_v28 }
 0x226   : > { %v1883_v47 = vadd.f32 %v4168_v45, %v1833_v44  ;;  %v1363_v16 = vadd.f32 %v4006_v51, %v1344_v59  ;;  %v1364_v6 = vadd.f32 %v4006_v51, %v1345_v33  ;;  %2121 = vmatpush.msra.mxu2 %v2091_v46  ;;  %v1392_v35 = vmax.f32 %v4201_v25, 0.0 }
 0x227   : > { %v1834_v30 = vadd.f32 %v4165_v19, %v1783_v0  ;;  %v1932_v39 = vadd.f32 %v1916_v62, %v1882_v63  ;;  %v1378_v32 = vadd.f32 3.0, %v1362_v52  ;;  %v1393_v12 = vmax.f32 %v1377_v56, 0.0 }
 0x228   : > { %v1379_v40 = vadd.f32 3.0, %v1363_v16  ;;  %v1380_v26 = vadd.f32 3.0, %v1364_v6  ;;  %v1933_v10 = vadd.f32 %v4189_v50, %v1883_v47  ;;  %2122 = vmatpush.msra.mxu2 %v2090_v13  ;;  %v1407_v8 = vmin.f32 %v1391_v37, 6.0 }
 0x229   : > { %v1884_v21 = vadd.f32 %v4168_v45, %v1834_v30  ;;  %v1394_v9 = vmax.f32 %v1378_v32, 0.0  ;;  %v1408_v36 = vmin.f32 %v1392_v35, 6.0  ;;  %v1409_v31 = vmin.f32 %v1393_v12, 6.0  ;;  %v4647_v30 = vld [vmem:[#allocation63_spill] sm:$0xff] }
 0x22a   : > { %v1395_v22 = vmax.f32 %v1379_v40, 0.0  ;;  %v1396_v19 = vmax.f32 %v1380_v26, 0.0  ;;  %v1949_v27 = vadd.f32 %v4006_v51, %v1933_v10  ;;  %v1423_v54 = vmul.f32 %v1407_v8, %v4172_v20 }
 0x22b   : > { %v1410_v61 = vmin.f32 %v1394_v9, 6.0  ;;  %v1934_v25 = vadd.f32 %v4198_v4, %v1884_v21  ;;  %v1424_v50 = vmul.f32 %v1408_v36, %v4179_v1  ;;  %v1425_v57 = vmul.f32 %v1409_v31, %v1361_v28 }
 0x22c   : > { %v1411_v11 = vmin.f32 %v1395_v22, 6.0  ;;  %v1412_v45 = vmin.f32 %v1396_v19, 6.0  ;;  %v1965_v23 = vadd.f32 3.0, %v1949_v27  ;;  %v4313_v37 = vmul.f32 0.16666667, %v1423_v54 }
 0x22d   : > { %v1426_v24 = vmul.f32 %v1410_v61, %v1362_v52  ;;  %v1950_v15 = vadd.f32 %v4006_v51, %v1934_v25  ;;  %v4315_v62 = vmul.f32 0.16666667, %v1424_v50  ;;  %v4317_v17 = vmul.f32 0.16666667, %v1425_v57 }
 0x22e   : > { %v1427_v5 = vmul.f32 %v1411_v11, %v1363_v16  ;;  %v1428_v44 = vmul.f32 %v1412_v45, %v1364_v6  ;;  %v1981_v4 = vmax.f32 %v1965_v23, 0.0  ;;  %v1947_v28 = vadd.f32 %v4006_v51, %v1931_v60  ;;  %v4646_v16 = vld [vmem:[#allocation32_spill] sm:$0xff] }
 0x22f   : > { %v4319_v59 = vmul.f32 0.16666667, %v1426_v24  ;;  %v1966_v20 = vadd.f32 3.0, %v1950_v15  ;;  %v2641_v1 = vpack.c.bf16 %v4315_v62, %v4313_v37  ;;  %v1948_v0 = vadd.f32 %v4006_v51, %v1932_v39 }
 0x230   : > { %v4324_v48 = vmul.f32 0.16666667, %v1427_v5  ;;  %v4326_v33 = vmul.f32 0.16666667, %v1428_v44  ;;  %v1997_v46 = vmin.f32 %v1981_v4, 6.0  ;;  %v1963_v47 = vadd.f32 3.0, %v1947_v28 }
 0x231   : > { %v2646_v63 = vpack.c.bf16 %v4319_v59, %v4317_v17  ;;  %v1982_v52 = vmax.f32 %v1966_v20, 0.0  ;;  %2697 = vst [vmem:[#allocation3 + $0x68] sm:$0xff] %v2641_v1   ;;  %v1421_v6 = vmul.f32 %v4203_v41, %v4646_v16  ;;  %v1964_v56 = vadd.f32 3.0, %v1948_v0  ;;  %v4650_v20 = vld [vmem:[#allocation46_spill] sm:$0xff]  ;;  %v4651_v1 = vld [vmem:[#allocation47_spill] sm:$0xff] }
 0x232   : > { %v2651_v13 = vpack.c.bf16 %v4326_v33, %v4324_v48  ;;  %v2013_v60 = vmul.f32 %v1997_v46, %v1949_v27  ;;  %v1422_v32 = vmul.f32 %v4211_v38, %v4647_v30  ;;  %v1979_v39 = vmax.f32 %v1963_v47, 0.0  ;;  %v4652_v46 = vld [vmem:[#allocation39_spill] sm:$0xff] }
 0x233   : > { %2698 = vst [vmem:[#allocation3 + $0x8] sm:$0xff] %v2646_v63   ;;  %v1998_v35 = vmin.f32 %v1982_v52, 6.0  ;;  %v4337_v40 = vmul.f32 0.16666667, %v1421_v6  ;;  %v1945_v26 = vadd.f32 %v4006_v51, %v4133_v2  ;;  %v1980_v41 = vmax.f32 %v1964_v56, 0.0 }
 0x234   : > { %2699 = vst [vmem:[#allocation3 + $0x48] sm:$0xff] %v2651_v13   ;;  %v4341_v12 = vmul.f32 0.16666667, %v2013_v60  ;;  %v4343_v10 = vmul.f32 0.16666667, %v1422_v32  ;;  %v1946_v21 = vadd.f32 %v4006_v51, %v4186_v14  ;;  %v1995_v8 = vmin.f32 %v1979_v39, 6.0 }
 0x235   : > { %v2014_v9 = vmul.f32 %v1998_v35, %v1950_v15  ;;  %v1961_v38 = vadd.f32 3.0, %v1945_v26  ;;  %v1403_v36 = vmin.f32 %v1387_v29, 6.0  ;;  %v1996_v22 = vmin.f32 %v1980_v41, 6.0  ;;  %v4648_v29 = vld [vmem:[#allocation61_spill] sm:$0xff]  ;;  %v4649_v15 = vld [vmem:[#allocation62_spill] sm:$0xff]  ;;  %v4653_v60 = vld [vmem:[#allocation40_spill] sm:$0xff] }
 0x236   : > { %v2636_v19 = vpack.c.bf16 %v4343_v10, %v4337_v40  ;;  %v1962_v2 = vadd.f32 3.0, %v1946_v21  ;;  %v1404_v31 = vmin.f32 %v1388_v53, 6.0  ;;  %v2011_v61 = vmul.f32 %v1995_v8, %v1947_v28 }
 0x237   : > { %v4353_v27 = vmul.f32 0.16666667, %v2014_v9  ;;  %v1977_v25 = vmax.f32 %v1961_v38, 0.0  ;;  %v1419_v14 = vmul.f32 %v1403_v36, %v4044_v34  ;;  %v2012_v54 = vmul.f32 %v1996_v22, %v1948_v0  ;;  %v4655_v9 = vld [vmem:[#allocation35_spill] sm:$0xff] }
 0x238   : > { %2696 = vst [vmem:[#allocation3 + $0x50] sm:$0xff] %v2636_v19   ;;  %v1978_v50 = vmax.f32 %v1962_v2, 0.0  ;;  %v1420_v55 = vmul.f32 %v1404_v31, %v4631_v3  ;;  %v1943_v11 = vadd.f32 %v4006_v51, %v4648_v29  ;;  %v4361_v57 = vmul.f32 0.16666667, %v2011_v61 }
 0x239   : > { %v2691_v45 = vpack.c.bf16 %v4353_v27, %v4341_v12  ;;  %v1993_v58 = vmin.f32 %v1977_v25, 6.0  ;;  %v4363_v53 = vmul.f32 0.16666667, %v1419_v14  ;;  %v4365_v23 = vmul.f32 0.16666667, %v2012_v54 }
 0x23a   : > { %v1994_v24 = vmin.f32 %v1978_v50, 6.0  ;;  %v4367_v34 = vmul.f32 0.16666667, %v1420_v55  ;;  %v1944_v5 = vadd.f32 %v4006_v51, %v4649_v15  ;;  %v1959_v4 = vadd.f32 3.0, %v1943_v11 }
 0x23b   : > { %v2602_v3 = vld [vmem:[#allocation3 + $0x48] sm:$0xff]  ;;  %2707 = vst [vmem:[#allocation3 + $0x28] sm:$0xff] %v2691_v45   ;;  %v2009_v44 = vmul.f32 %v1993_v58, %v1945_v26  ;;  %v1335_v28 = vadd.f32 %v4651_v1, %v4650_v20  ;;  %v1351_v0 = vadd.f32 %v4006_v51, %v4652_v46  ;;  %v2686_v63 = vpack.c.bf16 %v4365_v23, %v4361_v57  ;;  %v4654_v26 = vld [vmem:[#allocation34_spill] sm:$0xff] }
 0x23c   : > { %v2010_v52 = vmul.f32 %v1994_v24, %v1946_v21  ;;  %v2631_v47 = vpack.c.bf16 %v4367_v34, %v4363_v53  ;;  %v1960_v16 = vadd.f32 3.0, %v1944_v5  ;;  %2319 = vmatpush.bf16.xpose.msrb.mxu3 %v2602_v3  ;;  %v1975_v13 = vmax.f32 %v1959_v4, 0.0  ;;  %v2601_v58 = vld [vmem:[#allocation3 + $0x8] sm:$0xff] }
 0x23d   : > { %v4379_v6 = vmul.f32 0.16666667, %v2009_v44  ;;  %v1352_v56 = vadd.f32 %v4006_v51, %v4653_v60  ;;  %v1353_v30 = vadd.f32 %v4006_v51, %v4216_v49  ;;  %2706 = vst [vmem:[#allocation3 + $0x78] sm:$0xff] %v2686_v63   ;;  %v1354_v39 = vadd.f32 %v4006_v51, %v1335_v28  ;;  %v4656_v63 = vld [vmem:[#allocation54_spill] sm:$0xff] }
 0x23e   : > { %v4385_v32 = vmul.f32 0.16666667, %v2010_v52  ;;  %v1976_v35 = vmax.f32 %v1960_v16, 0.0  ;;  %v1365_v41 = vadd.f32 3.0, %v4654_v26  ;;  %2695 = vst [vmem:[#allocation3 + $0x18] sm:$0xff] %v2631_v47   ;;  %v1991_v21 = vmin.f32 %v1975_v13, 6.0 }
 0x23f   : > { %v1366_v8 = vadd.f32 3.0, %v4655_v9  ;;  %v1367_v38 = vadd.f32 3.0, %v1351_v0  ;;  %v1368_v36 = vadd.f32 3.0, %v1352_v56  ;;  %v1369_v2 = vadd.f32 3.0, %v1353_v30  ;;  %v4657_v52 = vld [vmem:[#allocation18_spill] sm:$0xff] }
 0x240   : > { %v2681_v22 = vpack.c.bf16 %v4385_v32, %v4379_v6  ;;  %v1992_v19 = vmin.f32 %v1976_v35, 6.0  ;;  %v1370_v49 = vadd.f32 3.0, %v1354_v39  ;;  %v2007_v31 = vmul.f32 %v1991_v21, %v1943_v11 }
 0x241   : > { %v1381_v61 = vmax.f32 %v1365_v41, 0.0  ;;  %v1382_v25 = vmax.f32 %v1366_v8, 0.0  ;;  %v1383_v14 = vmax.f32 %v1367_v38, 0.0  ;;  %v1384_v55 = vmax.f32 %v1368_v36, 0.0  ;;  %v4658_v41 = vld [vmem:[#allocation30_spill] sm:$0xff] }
 0x242   : > { %v2610_v54 = vld [vmem:[#allocation3 + $0x28] sm:$0xff]  ;;  %2705 = vst [vmem:[#allocation3 + $0x70] sm:$0xff] %v2681_v22   ;;  %v2008_v50 = vmul.f32 %v1992_v19, %v1944_v5  ;;  %v1385_v29 = vmax.f32 %v1369_v2, 0.0  ;;  %v1386_v45 = vmax.f32 %v1370_v49, 0.0  ;;  %v4392_v24 = vmul.f32 0.16666667, %v2007_v31 }
 0x243   : > { %v1397_v15 = vmin.f32 %v1381_v61, 6.0  ;;  %v1398_v3 = vmin.f32 %v1382_v25, 6.0  ;;  %v1399_v44 = vmin.f32 %v1383_v14, 6.0  ;;  %2338 = vmatpush.bf16.xpose.msrb.mxu2 %v2610_v54  ;;  %v1400_v20 = vmin.f32 %v1384_v55, 6.0  ;;  %v4661_v19 = vld [vmem:[#allocation51_spill] sm:$0xff]  ;;  %v4662_v49 = vld [vmem:[#allocation52_spill] sm:$0xff] }
 0x244   : > { %v4394_v4 = vmul.f32 0.16666667, %v2008_v50  ;;  %v1401_v11 = vmin.f32 %v1385_v29, 6.0  ;;  %v1402_v1 = vmin.f32 %v1386_v45, 6.0  ;;  %2320 = vmatpush.bf16.xpose.msrb.mxu3 %v2601_v58  ;;  %v1874_v47 = vadd.f32 %v4657_v52, %v4656_v63  ;;  %v4664_v14 = vld [vmem:[#allocation43_spill] sm:$0xff]  ;;  %v4665_v58 = vld [vmem:[#allocation50_spill] sm:$0xff] }
 0x245   : > { %v1413_v28 = vmul.f32 %v1397_v15, %v4654_v26  ;;  %v1414_v5 = vmul.f32 %v1398_v3, %v4655_v9  ;;  %v1415_v46 = vmul.f32 %v1399_v44, %v1351_v0  ;;  %v1416_v13 = vmul.f32 %v1400_v20, %v1352_v56  ;;  %v4659_v26 = vld [vmem:[#allocation33_spill] sm:$0xff]  ;;  %v4660_v9 = vld [vmem:[#allocation48_spill] sm:$0xff] }
 0x246   : > { %v2676_v16 = vpack.c.bf16 %v4394_v4, %v4392_v24  ;;  %v1417_v60 = vmul.f32 %v1401_v11, %v1353_v30  ;;  %v1418_v35 = vmul.f32 %v1402_v1, %v1354_v39  ;;  %v1769_v21 = vadd.f32 %v4658_v41, %v4280_v7  ;;  %v4663_v39 = vld [vmem:[#allocation42_spill] sm:$0xff]  ;;  %v2600_v29 = vld [vmem:[#allocation3 + $0x68] sm:$0xff]  ;;  %v4667_v11 = vld [vmem:[#allocation37_spill] sm:$0xff] }
 0x247   : > { %v1429_v8 = vmul.f32 0.16666667, %v1413_v28  ;;  %v1430_v38 = vmul.f32 0.16666667, %v1414_v5  ;;  %v1431_v36 = vmul.f32 0.16666667, %v1415_v46  ;;  %v1819_v22 = vadd.f32 %v4659_v26, %v4286_v43 }
 0x248   : > { %2704 = vst [vmem:[#allocation3 + $0x60] sm:$0xff] %v2676_v16   ;;  %v1432_v0 = vmul.f32 0.16666667, %v1416_v13  ;;  %v1923_v2 = vadd.f32 %v4661_v19, %v4660_v9  ;;  %v1924_v31 = vadd.f32 %v4662_v49, %v1874_v47  ;;  %v1433_v61 = vmul.f32 0.16666667, %v1417_v60  ;;  %v2609_v7 = vld [vmem:[#allocation3 + $0x78] sm:$0xff] }
 0x249   : > { %v1434_v56 = vmul.f32 0.16666667, %v1418_v35  ;;  %v1445_v30 = vadd.f32 %v1430_v38, %v1429_v8  ;;  %v1937_v25 = vadd.f32 %v4006_v51, %v4663_v39  ;;  %v1938_v54 = vadd.f32 %v4006_v51, %v4664_v14  ;;  %v4666_v15 = vld [vmem:[#allocation56_spill] sm:$0xff]  ;;  %v4668_v47 = vld [vmem:[#allocation38_spill] sm:$0xff]  ;;  %v4669_v9 = vld [vmem:[#allocation53_spill] sm:$0xff] }
 0x24a   : > { %v1939_v50 = vadd.f32 %v4006_v51, %v1923_v2  ;;  %v1940_v43 = vadd.f32 %v4006_v51, %v1924_v31  ;;  %v2621_v55 = vpack.c.bf16 %v1432_v0, %v1431_v36  ;;  %v1825_v3 = vadd.f32 %v4666_v15, %v4665_v58  ;;  %v2848_v60 = vld [vmem:[#allocation2 + $0x149] sm:$0xff]  ;;  %v4670_v19 = vld [vmem:[#allocation49_spill] sm:$0xff] }
 0x24b   : > { %v1446_v45 = vadd.f32 %v1445_v30, %v1431_v36  ;;  %v1953_v44 = vadd.f32 3.0, %v1937_v25  ;;  %v2616_v20 = vpack.c.bf16 %v1430_v38, %v1429_v8  ;;  %v1820_v1 = vadd.f32 %v4667_v11, %v1769_v21  ;;  %2339 = vmatpush.bf16.xpose.msrb.mxu2 %v2609_v7  ;;  %v2849_v38 = vld [vmem:[#allocation2 + $0x151] sm:$0xff]  ;;  %v4672_v58 = vld [vmem:[#allocation31_spill] sm:$0xff] }
 0x24c   : > { %v1954_v28 = vadd.f32 3.0, %v1938_v54  ;;  %v1955_v5 = vadd.f32 3.0, %v1939_v50  ;;  %v1956_v46 = vadd.f32 3.0, %v1940_v43  ;;  %2693 = vst [vmem:[#allocation3] sm:$0xff] %v2621_v55   ;;  %2321 = vmatpush.bf16.xpose.msrb.mxu3 %v2600_v29  ;;  %v2626_v52 = vpack.c.bf16 %v1434_v56, %v1433_v61  ;;  %v1892_v30 = vld [vmem:[#allocation2 + $0x1b1] sm:$0xff]  ;;  %v4671_v29 = vld [vmem:[#allocation58_spill] sm:$0xff] }
 0x24d   : > { %v1447_v63 = vadd.f32 %v1446_v45, %v1432_v0  ;;  %v1875_v16 = vadd.f32 %v4668_v47, %v1825_v3  ;;  %v1969_v13 = vmax.f32 %v1953_v44, 0.0  ;;  %2617 = vst [vmem:[#allocation3 + $0x30] sm:$0xff] %v2616_v20   ;;  %v1903_v35 = vmul.f32 %v2848_v60, %v4273_v18  ;;  %v2850_v0 = vld [vmem:[#allocation2 + $0x1b0] sm:$0xff] }
 0x24e   : > { %v1970_v41 = vmax.f32 %v1954_v28, 0.0  ;;  %v1971_v36 = vmax.f32 %v1955_v5, 0.0  ;;  %v1972_v8 = vmax.f32 %v1956_v46, 0.0  ;;  %v1904_v21 = vmul.f32 %v2849_v38, %v4273_v18  ;;  %2694 = vst [vmem:[#allocation3 + $0x58] sm:$0xff] %v2626_v52   ;;  %v4673_v3 = vld [vmem:[#allocation36_spill] sm:$0xff] }
 0x24f   : > { %v1448_v26 = vadd.f32 %v1447_v63, %v1433_v61  ;;  %v1775_v2 = vadd.f32 %v4670_v19, %v4669_v9  ;;  %v1985_v49 = vmin.f32 %v1969_v13, 6.0  ;;  %v1860_v31 = vmul.f32 %v2850_v0, %v3982_v42  ;;  %v2608_v61 = vld [vmem:[#allocation3 + $0x70] sm:$0xff]  ;;  %v2607_v0 = vld [vmem:[#allocation3 + $0x60] sm:$0xff] }
 0x250   : > { %v1986_v39 = vmin.f32 %v1970_v41, 6.0  ;;  %v1987_v7 = vmin.f32 %v1971_v36, 6.0  ;;  %v1988_v14 = vmin.f32 %v1972_v8, 6.0  ;;  %v1869_v15 = vadd.f32 %v4672_v58, %v1819_v22  ;;  %v2851_v20 = vld [vmem:[#allocation2 + $0x1a9] sm:$0xff] }
 0x251   : > { %v1449_v55 = vadd.f32 %v1448_v26, %v1434_v56  ;;  %v1826_v45 = vadd.f32 %v4671_v29, %v1775_v2  ;;  %v1870_v44 = vadd.f32 %v4673_v3, %v1820_v1  ;;  %v1909_v11 = vmul.f32 %v2851_v20, %v4273_v18  ;;  %v2599_v42 = vld [vmem:[#allocation3 + $0x50] sm:$0xff] }
 0x252   : > { %v1910_v28 = vmul.f32 %v4273_v18, %v1892_v30  ;;  %v2001_v5 = vmul.f32 %v1985_v49, %v1937_v25  ;;  %v2002_v46 = vmul.f32 %v1986_v39, %v1938_v54  ;;  %v1919_v47 = vadd.f32 %v1903_v35, %v1869_v15  ;;  %v2598_v30 = vld [vmem:[#allocation3 + $0x18] sm:$0xff] }
 0x253   : > { %v1450_v63 = vadd.f32 %v1449_v55, %v4363_v53  ;;  %v1876_v52 = vadd.f32 %v1860_v31, %v1826_v45  ;;  %v1920_v56 = vadd.f32 %v1904_v21, %v1870_v44  ;;  %2340 = vmatpush.bf16.xpose.msrb.mxu2 %v2608_v61  ;;  %v1925_v13 = vadd.f32 %v1909_v11, %v1875_v16 }
 0x254   : > { %v2003_v60 = vmul.f32 %v1987_v7, %v1939_v50  ;;  %v2004_v22 = vmul.f32 %v1988_v14, %v1940_v43  ;;  %v2017_v41 = vmul.f32 0.16666667, %v2001_v5  ;;  %2322 = vmatpush.bf16.xpose.msrb.mxu3 %v2599_v42  ;;  %v1935_v8 = vadd.f32 %v4006_v51, %v1919_v47 }
 0x255   : > { %v1451_v1 = vadd.f32 %v1450_v63, %v4367_v34  ;;  %v1926_v36 = vadd.f32 %v1910_v28, %v1876_v52  ;;  %v1936_v18 = vadd.f32 %v4006_v51, %v1920_v56  ;;  %v1941_v25 = vadd.f32 %v4006_v51, %v1925_v13  ;;  %v2597_v42 = vld [vmem:[#allocation3 + $0x58] sm:$0xff]  ;;  %v2596_v13 = vld [vmem:[#allocation3] sm:$0xff] }
 0x256   : > { %v2018_v54 = vmul.f32 0.16666667, %v2002_v46  ;;  %v2019_v53 = vmul.f32 0.16666667, %v2003_v60  ;;  %v2020_v38 = vmul.f32 0.16666667, %v2004_v22 }
 0x257   : > { %v1452_v35 = vadd.f32 %v1451_v1, %v4337_v40  ;;  %v1942_v16 = vadd.f32 %v4006_v51, %v1926_v36  ;;  %v1951_v50 = vadd.f32 3.0, %v1935_v8  ;;  %v1952_v43 = vadd.f32 3.0, %v1936_v18 }
 0x258   : > { %v1957_v21 = vadd.f32 3.0, %v1941_v25  ;;  %v2666_v26 = vpack.c.bf16 %v2020_v38, %v2019_v53  ;;  %v2661_v9 = vpack.c.bf16 %v2018_v54, %v2017_v41 }
 0x259   : > { %v1453_v34 = vadd.f32 %v1452_v35, %v4343_v10  ;;  %v1958_v19 = vadd.f32 3.0, %v1942_v16  ;;  %v1967_v2 = vmax.f32 %v1951_v50, 0.0  ;;  %v1968_v49 = vmax.f32 %v1952_v43, 0.0 }
 0x25a   : > { %v1973_v31 = vmax.f32 %v1957_v21, 0.0  ;;  %2702 = vst [vmem:[#allocation3 + $0x10] sm:$0xff] %v2666_v26  }
 0x25b   : > { %v1454_v39 = vadd.f32 %v1453_v34, %v4313_v37  ;;  %v1974_v7 = vmax.f32 %v1958_v19, 0.0  ;;  %v1983_v40 = vmin.f32 %v1967_v2, 6.0  ;;  %v1984_v14 = vmin.f32 %v1968_v49, 6.0  ;;  %2701 = vst [vmem:[#allocation3 + $0x20] sm:$0xff] %v2661_v9   ;;  %2341 = vmatpush.bf16.xpose.msrb.mxu2 %v2607_v0 }
 0x25c   : > { %v1989_v51 = vmin.f32 %v1973_v31, 6.0  ;;  %2323 = vmatpush.bf16.xpose.msrb.mxu3 %v2598_v30  ;;  %v3030_v0 = vmov 0   ;;  %v2132_v31 = vld [vmem:[%s4533_s8] sm:$0x1] }
 0x25d   : > { %v1455_v55 = vadd.f32 %v1454_v39, %v4315_v62  ;;  %v1990_v29 = vmin.f32 %v1974_v7, 6.0  ;;  %v1999_v10 = vmul.f32 %v1983_v40, %v1935_v8  ;;  %v2000_v45 = vmul.f32 %v1984_v14, %v1936_v18  ;;  %2804 = vset.pattern.permute.xlu1 %v3030_v0  ;;  %2805 = vset.pattern.permute.xlu2 %v3030_v0  ;;  %v2199_v7 = vld [vmem:[%s4535_s10] sm:$0xff]  ;;  %v2201_v40 = vld [vmem:[%s4535_s10 + $0x10] sm:$0xff] }
 0x25e   : > { %v2005_v58 = vmul.f32 %v1989_v51, %v1941_v25  ;;  %2806 = vset.pattern.permute.xlu0 %v3030_v0  ;;  %2205 = vperm.xlu1 %2804, %v2199_v7  }
 0x25f   : > { %v1456_v15 = vadd.f32 %v1455_v55, %v4317_v17  ;;  %v2006_v3 = vmul.f32 %v1990_v29, %v1942_v16  ;;  %v2015_v44 = vmul.f32 0.16666667, %v1999_v10  ;;  %v2016_v61 = vmul.f32 0.16666667, %v2000_v45  ;;  %2215 = vperm.xlu2 %2805, %v2201_v40   ;;  %v2200_v29 = vld [vmem:[%s4535_s10 + $0x8] sm:$0xff]  ;;  %v2202_v10 = vld [vmem:[%s4535_s10 + $0x18] sm:$0xff] }
 0x260   : > { %v2021_v5 = vmul.f32 0.16666667, %v2005_v58  ;;  %v2085_v58 = vld [vmem:[#allocation9] sm:$0xff] }
 0x261   : > { %v1457_v37 = vadd.f32 %v1456_v15, %v4319_v59  ;;  %v2022_v20 = vmul.f32 0.16666667, %v2006_v3  ;;  %v2031_v11 = vadd.f32 %v2016_v61, %v2015_v44  ;;  %v2656_v1 = vpack.c.bf16 %v2016_v61, %v2015_v44  ;;  %v2605_v18 = vld [vmem:[#allocation3 + $0x10] sm:$0xff]  ;;  %v2086_v15 = vld [vmem:[#allocation9 + $0x8] sm:$0xff] }
 0x262   : > { %v2604_v35 = vld [vmem:[#allocation3 + $0x20] sm:$0xff] }
 0x263   : > { %v1458_v28 = vadd.f32 %v1457_v37, %v4324_v48  ;;  %v2032_v46 = vadd.f32 %v2031_v11, %v2017_v41  ;;  %v2671_v52 = vpack.c.bf16 %v2022_v20, %v2021_v5  ;;  %2700 = vst [vmem:[#allocation3 + $0x40] sm:$0xff] %v2656_v1   ;;  %v2595_v41 = vld [vmem:[#allocation3 + $0x30] sm:$0xff] }
 0x264   : > { %2324 = vmatpush.bf16.xpose.msrb.mxu3 %v2597_v42  ;;  %v2088_v11 = vld [vmem:[#allocation9 + $0x18] sm:$0xff] }
 0x265   : > { %v1459_v62 = vadd.f32 %v1458_v28, %v4326_v33  ;;  %v2033_v63 = vadd.f32 %v2032_v46, %v2018_v54  ;;  %2703 = vst [vmem:[#allocation3 + $0x38] sm:$0xff] %v2671_v52  }
 0x266   : > { %2210 = vperm.xlu1 %2804, %v2200_v29  }
 0x267   : > { %v2034_v47 = vadd.f32 %v2033_v63, %v2019_v53  ;;  %v1460_v36 = vrot.slane %v1459_v62, 4  ;;  %2220 = vperm.xlu2 %2805, %v2202_v10  }
 0x269   : > { %v2035_v17 = vadd.f32 %v2034_v47, %v2020_v38  ;;  %v1461_v54 = vadd.f32 %v1460_v36, %v1459_v62 }
 0x26a   : > { %v2603_v26 = vld [vmem:[#allocation3 + $0x40] sm:$0xff] }
 0x26b   : > { %v2036_v56 = vadd.f32 %v2035_v17, %v2021_v5  ;;  %v1462_v38 = vrot.slane %v1461_v54, 2  ;;  %v2852_v17 = vld [vmem:[%s3183_s26] sm:$0xff] }
 0x26c   : > { %2325 = vmatpush.bf16.xpose.msrb.mxu3 %v2596_v13  ;;  %v2606_v59 = vld [vmem:[#allocation3 + $0x38] sm:$0xff]  ;;  %v2853_v13 = vld [vmem:[%s3183_s26 + $0x8] sm:$0xff] }
 0x26d   : > { %v2037_v60 = vadd.f32 %v2036_v56, %v2022_v20  ;;  %2342 = vmatpush.bf16.xpose.msrb.mxu2 %v2606_v59  ;;  %v2087_v20 = vld [vmem:[#allocation9 + $0x10] sm:$0xff] }
 0x26f   : > { %v2038_v22 = vadd.f32 %v2037_v60, %v4392_v24 }
 0x271   : > { %v2039_v48 = vadd.f32 %v2038_v22, %v4394_v4 }
 0x273   : > { %v2040_v33 = vadd.f32 %v2039_v48, %v4379_v6  ;;  %v1463_v6 = vadd.f32 %v1462_v38, %v1461_v54 }
 0x274   : > { %2326 = vmatpush.bf16.xpose.msrb.mxu3 %v2595_v41  ;;  %v2854_v41 = vld [vmem:[%s3183_s26 + $0x10] sm:$0xff] }
 0x275   : > { %v2041_v8 = vadd.f32 %v2040_v33, %v4385_v32  ;;  %2343 = vmatpush.bf16.xpose.msrb.mxu2 %v2605_v18  ;;  %v1464_v32 = vrot.slane %v1463_v6, 1 }
 0x277   : > { %v2042_v25 = vadd.f32 %v2041_v8, %v4361_v57  ;;  %v1465_v57 = vadd.f32 %v1464_v32, %v1463_v6  ;;  %v2855_v8 = vld [vmem:[%s3183_s26 + $0x18] sm:$0xff] }
 0x279   : > { %v2043_v53 = vadd.f32 %v2042_v25, %v4365_v23 }
 0x27b   : > { %v2044_v24 = vadd.f32 %v2043_v53, %v4341_v12  ;;  %v2106_v12 = vld [vmem:[%s4531_s6] sm:$0x1] }
 0x27d   : > { %v2045_v4 = vadd.f32 %v2044_v24, %v4353_v27  ;;  %2344 = vmatpush.bf16.xpose.msrb.mxu2 %v2604_v35 }
 0x27f   : > { %v2046_v16 = vrot.slane %v2045_v4, 4 }
 0x281   : > { %v2047_v50 = vadd.f32 %v2046_v16, %v2045_v4  ;;  %v2856_v4 = vld [vmem:[%s3183_s26 + $0x20] sm:$0xff]  ;;  %v2857_v16 = vld [vmem:[%s3183_s26 + $0x28] sm:$0xff] }
 0x283   : > { %v2048_v43 = vrot.slane %v2047_v50, 2 }
 0x285   : > { %v2049_v21 = vadd.f32 %v2048_v43, %v2047_v50  ;;  %2345 = vmatpush.bf16.xpose.msrb.mxu2 %v2603_v26 }
 0x287   : > { %v2050_v9 = vrot.slane %v2049_v21, 1 }
 0x289   : > { %v2051_v34 = vadd.f32 %v2050_v9, %v2049_v21  ;;  %v2858_v9 = vld [vmem:[%s3183_s26 + $0x30] sm:$0xff] }
 0x28b   : > { %v2052_v19 = vadd.f32 %v2051_v34, %v1465_v57  ;;  %v2859_v34 = vld [vmem:[%s3183_s26 + $0x38] sm:$0xff] }
 0x28d   : > { %v2089_v23 = vmul.f32 0.00390625, %v2052_v19 }
 0x28f   : > { %2123 = vmatmul.f32.vlgmr.msra.gmra.mxu2 %v2089_v23 }
 0x2b9   : > { %v2216_v25 = vpop.permute.xlu2 %2215 }
 0x2c1   : > { %v2221_v50 = vpop.permute.xlu2 %2220 }
 0x2d0   : > { %v2206_v42 = vpop.permute.xlu1 %2205 }
 0x2d8   : > { %v2211_v59 = vpop.permute.xlu1 %2210 }
 0x312   : > { %v2124_v27 = vpop.f32.mrf.mxu2 }
 0x313   : > { %v2125_v2 = vadd.f32 %v2124_v27, %v2106_v12 }
 0x315   : > { %v2127_v49 = vmax.f32 %v2125_v2, 0.0 }
 0x317   : > { %2521 = vmatmul.msk.f32.vlgmr.msra.gmra.mxu3 %vm502_vm0, %v2127_v49 }
 0x39a   : > { %v2153_v30 = vpop.f32.mrf.mxu3 }
 0x39b   : > { %v2154_v39 = vadd.f32 %v2153_v30, %v2132_v31 }
 0x39d   : > { %v2156_v14 = vadd.f32 3.0, %v2154_v39 }
 0x39f   : > { %v2157_v51 = vmax.f32 %v2156_v14, 0.0 }
 0x3a1   : > { %v2158_v55 = vmin.f32 %v2157_v51, 6.0 }
 0x3a3   : > { %v2159_v45 = vmul.f32 0.16666667, %v2158_v55 }
 0x3a5   : > { %v2160_v3 = vperm.slane %v2159_v45, 0 }
 0x3a7   : > { %v2161_v44 = vmul.f32 %v2160_v3, %v2085_v58  ;;  %v2162_v61 = vmul.f32 %v2160_v3, %v2086_v15  ;;  %v2163_v28 = vmul.f32 %v2160_v3, %v2087_v20  ;;  %v2164_v5 = vmul.f32 %v2160_v3, %v2088_v11 }
 0x3a9   : > { %v2165_v37 = vpack.c.bf16 %v2162_v61, %v2161_v44  ;;  %v2166_v46 = vpack.c.bf16 %v2164_v5, %v2163_v28 }
 0x3ab   : > { %2327 = vmatmul.bf16.vlgmr.msrb.gmra.mxu3 %v2165_v37  ;;  %2346 = vmatmul.bf16.vlgmr.msrb.gmra.mxu2 %v2165_v37 }
 0x3bb   : > { %2332 = vmatmul.bf16.gmra.mxu3 %v2166_v46  ;;  %2351 = vmatmul.bf16.gmra.mxu2 %v2166_v46 }
 0x42e   : > { %v2328_v62 = vpop.f32.mrf.mxu3  ;;  %v2347_v63 = vpop.f32.mrf.mxu2 }
 0x42f   : > { %v2329_v52 = vadd.f32 %v2328_v62, %v2206_v42  ;;  %v2348_v47 = vadd.f32 %v2347_v63, %v2206_v42 }
 0x431   : > { %v2357_v56 = vadd.f32 %v2852_v17, %v2329_v52  ;;  %v2358_v60 = vadd.f32 %v2853_v13, %v2348_v47 }
 0x433   : > { %2365 = vst [vmem:[%s4475_s13] sm:$0xff] %v2357_v56 }
 0x434   : > { %2366 = vst [vmem:[%s4475_s13 + $0x8] sm:$0xff] %v2358_v60 }
 0x436   : > { %v2330_v22 = vpop.f32.mrf.mxu3  ;;  %v2349_v1 = vpop.f32.mrf.mxu2 }
 0x437   : > { %v2331_v48 = vadd.f32 %v2330_v22, %v2211_v59  ;;  %v2350_v33 = vadd.f32 %v2349_v1, %v2211_v59 }
 0x439   : > { %v2359_v36 = vadd.f32 %v2854_v41, %v2331_v48  ;;  %v2360_v18 = vadd.f32 %v2855_v8, %v2350_v33 }
 0x43b   : > { %2367 = vst [vmem:[%s4475_s13 + $0x10] sm:$0xff] %v2359_v36 }
 0x43c   : > { %2368 = vst [vmem:[%s4475_s13 + $0x18] sm:$0xff] %v2360_v18 }
 0x43e   : > { %v2333_v54 = vpop.f32.mrf.mxu3  ;;  %v2352_v53 = vpop.f32.mrf.mxu2 }
 0x43f   : > { %v2334_v24 = vadd.f32 %v2333_v54, %v2216_v25  ;;  %v2353_v38 = vadd.f32 %v2352_v53, %v2216_v25 }
 0x441   : > { %v2361_v35 = vadd.f32 %v2856_v4, %v2334_v24  ;;  %v2362_v6 = vadd.f32 %v2857_v16, %v2353_v38 }
 0x443   : > { %2369 = vst [vmem:[%s4475_s13 + $0x20] sm:$0xff] %v2361_v35 }
 0x444   : > { %2370 = vst [vmem:[%s4475_s13 + $0x28] sm:$0xff] %v2362_v6 }
 0x446   : > { %v2335_v43 = vpop.f32.mrf.mxu3  ;;  %v2354_v32 = vpop.f32.mrf.mxu2 }
 0x447   : > { %v2336_v21 = vadd.f32 %v2335_v43, %v2221_v50  ;;  %v2355_v26 = vadd.f32 %v2354_v32, %v2221_v50 }
 0x449   : > { %v2363_v57 = vadd.f32 %v2858_v9, %v2336_v21  ;;  %v2364_v19 = vadd.f32 %v2859_v34, %v2355_v26 }
 0x44b   : > { %2371 = vst [vmem:[%s4475_s13 + $0x30] sm:$0xff] %v2363_v57 }
 0x44c   : > { %2372 = vst [vmem:[%s4475_s13 + $0x38] sm:$0xff] %v2364_v19 }
 0x44d   : > { %2977 = shalt.err (!%p2974_p8)
}
 0x44e   : > { %s3031_s26 = smov 256   ;;  %s3032_s28 = smov 16  }
 0x44f   : > { %2720 = dma.vmem_to_hbm [thread:$0]  (%p3131_p5), %s2388_s12, 1024, %s2390_s14, %s2374_s21, %s3031_s26, %s3031_s26, %s3032_s28  }
 0x450 PF: > { %p2742_p9 = scmp.ge.s32.totalorder %s3020_s20, 2  ;;  %s2404_s16 = sand.u32 1, %s3008_s17  }
 0x451   : > { %s2405_s22 = scalar_lea.sflag [#allocation6], %s2404_s16 }
 0x452   : > { %p2733_p10 = pnand %p2742_p9, %p3135_p6 }
 0x454   : > { %p2734_p11 = pneg %p2733_p10 }
 0x456   : > { %3003 = dma.done.wait (%p2734_p11), %s2405_s22, 1024  }
 0x457   : > { %3005 = vsyncadd (%p2734_p11), %s2405_s22, 4294966272  ;;  %s4675_s20 = sld [smem:[#allocation15_spill]]  ;;  %s4678_s17 = smov %s3012_s18 }
 0x458   : > { %s4676_s25 = sld [smem:[#allocation14_spill]] }
 0x459   : > { %s4677_s19 = sld [smem:[#allocation16_spill]] }
 0x45d   : > { %p23_p12 = scmp.ge.s32.totalorder %s4675_s20, 4  }
 0x45e   : > { %s4679_s18 = smov %s4676_s25 }
 0x45f   :  { %25 = sbr.rel (!%p23_p12) target bundleno = 8 (0x8), region = 120 }
 0x464   :  { %2411 = vsyncpa [#allocation5], 1 }
 0x465   :  { %2413 = vsyncpa [#allocation5 + $0x1], 1 }
 0x466   :  { %2414 = vsyncpa [#allocation8], 1 }
 0x467   :  { %2415 = vsyncpa [#allocation6], 1 }
 0x468   :  { %2417 = vsyncpa [#allocation6 + $0x1], 1 }

</bundles_post_ra>
